<compile_context>
chip_gen: v6e
topology: v6e:2x2x1
jax: 0.10.0
libtpu: 0.0.40
codegen_flags: <defaults>
</compile_context>

<pallas_src>
import jax
import jax.numpy as jnp
from jax.experimental import pallas as pl
from jax.experimental.pallas import tpu as pltpu

EPS = 1e-5  # nn.InstanceNorm2d default eps


def _resblock_kernel(x_ref, w1_ref, b1_ref, w2_ref, b2_ref, o_ref, col_ref):
    Hp2, W, C3 = col_ref.shape
    H = Hp2 - 2
    C = C3 // 3
    HW = H * W
    cdt = col_ref.dtype          # MXU operand dtype (bf16 by default, or f32)

    # (8, HW) ones: per-channel spatial sums become MXU dots (row 0 used).
    ones_rows = jnp.ones((8, HW), dtype=jnp.float32)
    inv_hw = jnp.float32(1.0 / HW)

    def build_col(a):
        """im2col along W with reflection padding, written into col_ref.

        a: (H, W, C) f32.  col_ref[1+r, w, dx*C:(dx+1)*C] = padded[r, w+dx, :];
        rows 0 / H+1 are the reflected top / bottom padded rows.
        All col_ref stores are lane-aligned (offsets are multiples of 128) and
        full-width on the sublane axis.
        """
        left = jnp.concatenate([a[:, 1:2, :], a[:, :W - 1, :]], axis=1)
        right = jnp.concatenate([a[:, 1:, :], a[:, W - 2:W - 1, :]], axis=1)
        col_ref[1:H + 1, :, 0:C] = left.astype(cdt)        # dx = 0 tap
        col_ref[1:H + 1, :, C:2 * C] = a.astype(cdt)       # dx = 1 tap
        col_ref[1:H + 1, :, 2 * C:3 * C] = right.astype(cdt)  # dx = 2 tap
        # Reflection rows: padded row -1 == x row 1 (== col row 2),
        #                  padded row  H == x row H-2 (== col row H-1).
        col_ref[0, :, :] = col_ref[2, :, :]
        col_ref[H + 1, :, :] = col_ref[H - 1, :, :]

    def conv3x3(w_ref, b_ref):
        """3x3 conv from col_ref: 3 matmuls of K = 3*C. Returns (HW, C) f32."""
        acc = jnp.zeros((HW, C), dtype=jnp.float32)
        for dy in range(3):
            operand = col_ref[dy:dy + H, :, :].reshape(HW, 3 * C)
            acc = acc + jnp.dot(operand, w_ref[dy],
                                preferred_element_type=jnp.float32)
        return acc + b_ref[...]          # bias broadcast (1, C)

    def instance_norm(acc):
        """InstanceNorm2d (affine=False) over the HW rows; stats on the MXU,
        kept in f32 (single-pass E[x^2] - mean^2, clamped)."""
        s = jnp.dot(ones_rows, acc, preferred_element_type=jnp.float32)[0:1]
        s2 = jnp.dot(ones_rows, acc * acc,
                     preferred_element_type=jnp.float32)[0:1]
        mean = s * inv_hw
        var = jnp.maximum(s2 * inv_hw - mean * mean, 0.0)
        return (acc - mean) * jax.lax.rsqrt(var + EPS)

    x = x_ref[0].astype(jnp.float32)                     # (H, W, C)

    # conv block 1: reflect-pad -> conv3x3 -> instance norm -> relu
    build_col(x)
    h = jnp.maximum(instance_norm(conv3x3(w1_ref, b1_ref)), 0.0)

    # conv block 2: reflect-pad -> conv3x3 -> instance norm
    build_col(h.reshape(H, W, C))
    h = instance_norm(conv3x3(w2_ref, b2_ref))

    # residual add
    o_ref[0] = (x + h.reshape(H, W, C)).astype(o_ref.dtype)


def residual_block_nhwc(x_nhwc, w1, b1, w2, b2, *, compute_dtype=jnp.bfloat16):
    """Channels-last entry point (preferred: no NCHW<->NHWC HBM round trips).

    x_nhwc: (N, H, W, C). w*: (3, 3, C, C) HWIO. b*: (C,).
    Returns (N, H, W, C) in x_nhwc.dtype.
    """
    N, H, W, C = x_nhwc.shape
    assert H >= 2 and W >= 2, "ReflectionPad2d(1) requires H, W >= 2"

    Cp = max(128, ((C + 127) // 128) * 128)     # lane-dense channel count
    pad_c = Cp - C

    xp = x_nhwc if pad_c == 0 else jnp.pad(
        x_nhwc, ((0, 0), (0, 0), (0, 0), (0, pad_c)))

    def prep_w(w):
        wp = w if pad_c == 0 else jnp.pad(
            w, ((0, 0), (0, 0), (0, pad_c), (0, pad_c)))
        # fold (dx, Cin) into the contraction dim: (3, 3*Cp, Cp)
        return wp.reshape(3, 3 * Cp, Cp).astype(compute_dtype)

    def prep_b(b):
        bp = b if pad_c == 0 else jnp.pad(b, ((0, pad_c),))
        return bp.reshape(1, Cp).astype(jnp.float32)

    # Explicit VMEM budget (double-buffered blocks + scratch + live f32 values)
    in_size = jnp.dtype(x_nhwc.dtype).itemsize
    cdt_size = jnp.dtype(compute_dtype).itemsize
    blk = H * W * Cp
    vmem_needed = (
        2 * blk * in_size                      # input block (double-buffered)
        + 2 * blk * in_size                    # output block (double-buffered)
        + 2 * 2 * 9 * Cp * Cp * cdt_size       # two folded weight slabs
        + (H + 2) * W * 3 * Cp * cdt_size      # im2col scratch
        + 6 * blk * 4                          # live f32 intermediates headroom
    )
    vmem_limit = int(min(max(vmem_needed + vmem_needed // 4, 16 * 2**20),
                         64 * 2**20))

    grid_spec = pltpu.PrefetchScalarGridSpec(
        num_scalar_prefetch=0,
        grid=(N,),
        in_specs=[
            pl.BlockSpec((1, H, W, Cp), lambda n: (n, 0, 0, 0)),
            pl.BlockSpec((3, 3 * Cp, Cp), lambda n: (0, 0, 0)),
            pl.BlockSpec((1, Cp), lambda n: (0, 0)),
            pl.BlockSpec((3, 3 * Cp, Cp), lambda n: (0, 0, 0)),
            pl.BlockSpec((1, Cp), lambda n: (0, 0)),
        ],
        out_specs=pl.BlockSpec((1, H, W, Cp), lambda n: (n, 0, 0, 0)),
        scratch_shapes=[pltpu.VMEM((H + 2, W, 3 * Cp), compute_dtype)],
    )

    # TODO(synk): for very large H*W (v7x's 64 MiB VMEM) or N==1 inference,
    # add an H-tile grid axis with a 1-row halo so work shards across both
    # v7x TensorCores and the per-step block shrinks.
    out = pl.pallas_call(
        _resblock_kernel,
        out_shape=jax.ShapeDtypeStruct((N, H, W, Cp), x_nhwc.dtype),
        grid_spec=grid_spec,
        compiler_params=pltpu.CompilerParams(
            dimension_semantics=("parallel",),
            vmem_limit_bytes=vmem_limit),
    )(xp, prep_w(w1), prep_b(b1), prep_w(w2), prep_b(b2))

    return out if pad_c == 0 else out[..., :C]


def residual_block(x_nchw, w1, b1, w2, b2, *, compute_dtype=jnp.bfloat16):
    """PyTorch-interface (NCHW) wrapper. NOTE: the two transposes below are
    pure HBM glue; in a channels-last model call residual_block_nhwc directly."""
    x = jnp.transpose(x_nchw, (0, 2, 3, 1))
    out = residual_block_nhwc(x, w1, b1, w2, b2, compute_dtype=compute_dtype)
    return jnp.transpose(out, (0, 3, 1, 2))


def _reference(x_nchw, w1, b1, w2, b2):
    """Pure-JAX f32 reference of the PyTorch forward pass (NCHW interface)."""
    x = jnp.transpose(x_nchw, (0, 2, 3, 1)).astype(jnp.float32)  # NHWC

    def conv(a, w, b):
        p = jnp.pad(a, ((0, 0), (1, 1), (1, 1), (0, 0)), mode="reflect")
        y = jax.lax.conv_general_dilated(
            p, w, window_strides=(1, 1), padding="VALID",
            dimension_numbers=("NHWC", "HWIO", "NHWC"))
        return y + b.reshape(1, 1, 1, -1)

    def inorm(a):
        m = jnp.mean(a, axis=(1, 2), keepdims=True)
        v = jnp.mean((a - m) ** 2, axis=(1, 2), keepdims=True)
        return (a - m) * jax.lax.rsqrt(v + EPS)

    h = jnp.maximum(inorm(conv(x, w1, b1)), 0.0)
    h = inorm(conv(h, w2, b2))
    return jnp.transpose(x + h, (0, 3, 1, 2))


if __name__ == "__main__":
    N, C, H, W = 2, 4, 16, 16
    key = jax.random.PRNGKey(0)
    kx, k1, k2, kb1, kb2 = jax.random.split(key, 5)

    x = jax.random.normal(kx, (N, C, H, W), dtype=jnp.float32)
    # Conv2d(C, C, 3) parameters, HWIO layout, deterministic init
    fan_in = C * 3 * 3
    bound = 1.0 / (fan_in ** 0.5)
    w1 = jax.random.uniform(k1, (3, 3, C, C), jnp.float32, -bound, bound)
    w2 = jax.random.uniform(k2, (3, 3, C, C), jnp.float32, -bound, bound)
    b1 = jax.random.uniform(kb1, (C,), jnp.float32, -bound, bound)
    b2 = jax.random.uniform(kb2, (C,), jnp.float32, -bound, bound)

    ref = _reference(x, w1, b1, w2, b2)

    # f32-MXU path: strict check against the PyTorch-equivalent reference.
    out_f32 = jax.block_until_ready(
        residual_block(x, w1, b1, w2, b2, compute_dtype=jnp.float32))
    assert out_f32.shape == (N, C, H, W)
    assert out_f32.dtype == x.dtype
    assert jnp.allclose(out_f32, ref, atol=1e-4, rtol=1e-4), "f32 path mismatch"

    # bf16-MXU path (default: 2x MXU rate, half the operand traffic).
    out_bf16 = jax.block_until_ready(residual_block(x, w1, b1, w2, b2))
    assert out_bf16.shape == (N, C, H, W)
    assert jnp.allclose(out_bf16, ref, atol=8e-2, rtol=5e-2), "bf16 path mismatch"

    print("KERNEL_OK")
</pallas_src>

<mosaic_0001>
module attributes {stable_mosaic.version = 11 : i64} {
  func.func @_resblock_kernel(%arg0: i32, %arg1: memref<1x16x16x128xf32, #tpu.memory_space<vmem>>, %arg2: memref<3x384x128xf32, #tpu.memory_space<vmem>>, %arg3: memref<1x128xf32, #tpu.memory_space<vmem>>, %arg4: memref<3x384x128xf32, #tpu.memory_space<vmem>>, %arg5: memref<1x128xf32, #tpu.memory_space<vmem>>, %arg6: memref<1x16x16x128xf32, #tpu.memory_space<vmem>>, %arg7: memref<18x16x384xf32, #tpu.memory_space<vmem>>) attributes {dimension_semantics = [#tpu.dimension_semantics<parallel>], iteration_bounds = array<i64: 2>, scalar_prefetch = 0 : i64, scratch_operands = 1 : i64, tpu.core_type = #tpu.core_type<tc>, window_params = [{transform_indices = @transform_0, window_bounds = array<i64: 1, 16, 16, 128>}, {pipeline_mode = #tpu.pipeline_mode<synchronous>, transform_indices = @transform_1, window_bounds = array<i64: 3, 384, 128>}, {pipeline_mode = #tpu.pipeline_mode<synchronous>, transform_indices = @transform_2, window_bounds = array<i64: 1, 128>}, {pipeline_mode = #tpu.pipeline_mode<synchronous>, transform_indices = @transform_3, window_bounds = array<i64: 3, 384, 128>}, {pipeline_mode = #tpu.pipeline_mode<synchronous>, transform_indices = @transform_4, window_bounds = array<i64: 1, 128>}, {transform_indices = @transform_5, window_bounds = array<i64: 1, 16, 16, 128>}]} {
    %cst = arith.constant 1.000000e+00 : f32
    %0 = vector.broadcast %cst : f32 to vector<8x256xf32>
    %c0 = arith.constant 0 : index
    %c0_0 = arith.constant 0 : index
    %c0_1 = arith.constant 0 : index
    %c0_2 = arith.constant 0 : index
    %1 = vector.load %arg1[%c0, %c0_0, %c0_1, %c0_2] : memref<1x16x16x128xf32, #tpu.memory_space<vmem>>, vector<1x16x16x128xf32>
    %2 = vector.shape_cast %1 : vector<1x16x16x128xf32> to vector<16x16x128xf32>
    %3 = vector.extract_strided_slice %2 {offsets = [0, 1, 0], sizes = [16, 1, 128], strides = [1, 1, 1]} : vector<16x16x128xf32> to vector<16x1x128xf32>
    %4 = vector.extract_strided_slice %2 {offsets = [0, 0, 0], sizes = [16, 15, 128], strides = [1, 1, 1]} : vector<16x16x128xf32> to vector<16x15x128xf32>
    %5 = tpu.concatenate %3, %4 in 1 : vector<16x1x128xf32>, vector<16x15x128xf32> -> vector<16x16x128xf32>
    %6 = vector.extract_strided_slice %2 {offsets = [0, 1, 0], sizes = [16, 15, 128], strides = [1, 1, 1]} : vector<16x16x128xf32> to vector<16x15x128xf32>
    %7 = vector.extract_strided_slice %2 {offsets = [0, 14, 0], sizes = [16, 1, 128], strides = [1, 1, 1]} : vector<16x16x128xf32> to vector<16x1x128xf32>
    %8 = tpu.concatenate %6, %7 in 1 : vector<16x15x128xf32>, vector<16x1x128xf32> -> vector<16x16x128xf32>
    %c1 = arith.constant 1 : index
    %c0_3 = arith.constant 0 : index
    %c0_4 = arith.constant 0 : index
    %9 = vector.load %arg7[%c1, %c0_3, %c0_4] : memref<18x16x384xf32, #tpu.memory_space<vmem>>, vector<16x16x128xf32>
    tpu.vector_store %arg7[%c1, %c0_3, %c0_4], %5 {strides = array<i32>} : memref<18x16x384xf32, #tpu.memory_space<vmem>>, vector<16x16x128xf32>,
    %c1_5 = arith.constant 1 : index
    %c0_6 = arith.constant 0 : index
    %c128 = arith.constant 128 : index
    %10 = vector.load %arg7[%c1_5, %c0_6, %c128] : memref<18x16x384xf32, #tpu.memory_space<vmem>>, vector<16x16x128xf32>
    tpu.vector_store %arg7[%c1_5, %c0_6, %c128], %2 {strides = array<i32>} : memref<18x16x384xf32, #tpu.memory_space<vmem>>, vector<16x16x128xf32>,
    %c1_7 = arith.constant 1 : index
    %c0_8 = arith.constant 0 : index
    %c256 = arith.constant 256 : index
    %11 = vector.load %arg7[%c1_7, %c0_8, %c256] : memref<18x16x384xf32, #tpu.memory_space<vmem>>, vector<16x16x128xf32>
    tpu.vector_store %arg7[%c1_7, %c0_8, %c256], %8 {strides = array<i32>} : memref<18x16x384xf32, #tpu.memory_space<vmem>>, vector<16x16x128xf32>,
    %c2 = arith.constant 2 : index
    %c0_9 = arith.constant 0 : index
    %c0_10 = arith.constant 0 : index
    %12 = vector.load %arg7[%c2, %c0_9, %c0_10] : memref<18x16x384xf32, #tpu.memory_space<vmem>>, vector<1x16x384xf32>
    %13 = vector.shape_cast %12 : vector<1x16x384xf32> to vector<16x384xf32>
    %c0_11 = arith.constant 0 : index
    %c0_12 = arith.constant 0 : index
    %c0_13 = arith.constant 0 : index
    %14 = vector.load %arg7[%c0_11, %c0_12, %c0_13] : memref<18x16x384xf32, #tpu.memory_space<vmem>>, vector<1x16x384xf32>
    %15 = vector.shape_cast %14 : vector<1x16x384xf32> to vector<16x384xf32>
    %16 = vector.shape_cast %13 : vector<16x384xf32> to vector<1x16x384xf32>
    tpu.vector_store %arg7[%c0_11, %c0_12, %c0_13], %16 {strides = array<i32>} : memref<18x16x384xf32, #tpu.memory_space<vmem>>, vector<1x16x384xf32>,
    %c15 = arith.constant 15 : index
    %c0_14 = arith.constant 0 : index
    %c0_15 = arith.constant 0 : index
    %17 = vector.load %arg7[%c15, %c0_14, %c0_15] : memref<18x16x384xf32, #tpu.memory_space<vmem>>, vector<1x16x384xf32>
    %18 = vector.shape_cast %17 : vector<1x16x384xf32> to vector<16x384xf32>
    %c17 = arith.constant 17 : index
    %c0_16 = arith.constant 0 : index
    %c0_17 = arith.constant 0 : index
    %19 = vector.load %arg7[%c17, %c0_16, %c0_17] : memref<18x16x384xf32, #tpu.memory_space<vmem>>, vector<1x16x384xf32>
    %20 = vector.shape_cast %19 : vector<1x16x384xf32> to vector<16x384xf32>
    %21 = vector.shape_cast %18 : vector<16x384xf32> to vector<1x16x384xf32>
    tpu.vector_store %arg7[%c17, %c0_16, %c0_17], %21 {strides = array<i32>} : memref<18x16x384xf32, #tpu.memory_space<vmem>>, vector<1x16x384xf32>,
    %cst_18 = arith.constant 0.000000e+00 : f32
    %22 = vector.broadcast %cst_18 : f32 to vector<256x128xf32>
    %c0_19 = arith.constant 0 : index
    %c0_20 = arith.constant 0 : index
    %c0_21 = arith.constant 0 : index
    %23 = vector.load %arg7[%c0_19, %c0_20, %c0_21] : memref<18x16x384xf32, #tpu.memory_space<vmem>>, vector<16x16x384xf32>
    %24 = vector.shape_cast %23 : vector<16x16x384xf32> to vector<256x384xf32>
    %c0_22 = arith.constant 0 : index
    %c0_23 = arith.constant 0 : index
    %c0_24 = arith.constant 0 : index
    %25 = vector.load %arg2[%c0_22, %c0_23, %c0_24] : memref<3x384x128xf32, #tpu.memory_space<vmem>>, vector<1x384x128xf32>
    %26 = vector.shape_cast %25 : vector<1x384x128xf32> to vector<384x128xf32>
    %cst_25 = arith.constant dense<0.000000e+00> : vector<256x128xf32>
    %27 = tpu.matmul %24, %26, %cst_25 {dimension_numbers = #tpu.dot_dimension_numbers<[1], [0], [0], [1], [0, 0, 1, 1], [], []>} : vector<256x384xf32>, vector<384x128xf32>, vector<256x128xf32> -> vector<256x128xf32>
    %28 = arith.addf %22, %27 : vector<256x128xf32>
    %c1_26 = arith.constant 1 : index
    %c0_27 = arith.constant 0 : index
    %c0_28 = arith.constant 0 : index
    %29 = vector.load %arg7[%c1_26, %c0_27, %c0_28] : memref<18x16x384xf32, #tpu.memory_space<vmem>>, vector<16x16x384xf32>
    %30 = vector.shape_cast %29 : vector<16x16x384xf32> to vector<256x384xf32>
    %c1_29 = arith.constant 1 : index
    %c0_30 = arith.constant 0 : index
    %c0_31 = arith.constant 0 : index
    %31 = vector.load %arg2[%c1_29, %c0_30, %c0_31] : memref<3x384x128xf32, #tpu.memory_space<vmem>>, vector<1x384x128xf32>
    %32 = vector.shape_cast %31 : vector<1x384x128xf32> to vector<384x128xf32>
    %cst_32 = arith.constant dense<0.000000e+00> : vector<256x128xf32>
    %33 = tpu.matmul %30, %32, %cst_32 {dimension_numbers = #tpu.dot_dimension_numbers<[1], [0], [0], [1], [0, 0, 1, 1], [], []>} : vector<256x384xf32>, vector<384x128xf32>, vector<256x128xf32> -> vector<256x128xf32>
    %34 = arith.addf %28, %33 : vector<256x128xf32>
    %c2_33 = arith.constant 2 : index
    %c0_34 = arith.constant 0 : index
    %c0_35 = arith.constant 0 : index
    %35 = vector.load %arg7[%c2_33, %c0_34, %c0_35] : memref<18x16x384xf32, #tpu.memory_space<vmem>>, vector<16x16x384xf32>
    %36 = vector.shape_cast %35 : vector<16x16x384xf32> to vector<256x384xf32>
    %c2_36 = arith.constant 2 : index
    %c0_37 = arith.constant 0 : index
    %c0_38 = arith.constant 0 : index
    %37 = vector.load %arg2[%c2_36, %c0_37, %c0_38] : memref<3x384x128xf32, #tpu.memory_space<vmem>>, vector<1x384x128xf32>
    %38 = vector.shape_cast %37 : vector<1x384x128xf32> to vector<384x128xf32>
    %cst_39 = arith.constant dense<0.000000e+00> : vector<256x128xf32>
    %39 = tpu.matmul %36, %38, %cst_39 {dimension_numbers = #tpu.dot_dimension_numbers<[1], [0], [0], [1], [0, 0, 1, 1], [], []>} : vector<256x384xf32>, vector<384x128xf32>, vector<256x128xf32> -> vector<256x128xf32>
    %40 = arith.addf %34, %39 : vector<256x128xf32>
    %c0_40 = arith.constant 0 : index
    %c0_41 = arith.constant 0 : index
    %41 = vector.load %arg3[%c0_40, %c0_41] : memref<1x128xf32, #tpu.memory_space<vmem>>, vector<1x128xf32>
    %42 = vector.broadcast %41 : vector<1x128xf32> to vector<256x128xf32>
    %43 = arith.addf %40, %42 : vector<256x128xf32>
    %cst_42 = arith.constant dense<0.000000e+00> : vector<8x128xf32>
    %44 = tpu.matmul %0, %43, %cst_42 {dimension_numbers = #tpu.dot_dimension_numbers<[1], [0], [0], [1], [0, 0, 1, 1], [], []>} : vector<8x256xf32>, vector<256x128xf32>, vector<8x128xf32> -> vector<8x128xf32>
    %45 = vector.extract_strided_slice %44 {offsets = [0, 0], sizes = [1, 128], strides = [1, 1]} : vector<8x128xf32> to vector<1x128xf32>
    %46 = arith.mulf %43, %43 : vector<256x128xf32>
    %cst_43 = arith.constant dense<0.000000e+00> : vector<8x128xf32>
    %47 = tpu.matmul %0, %46, %cst_43 {dimension_numbers = #tpu.dot_dimension_numbers<[1], [0], [0], [1], [0, 0, 1, 1], [], []>} : vector<8x256xf32>, vector<256x128xf32>, vector<8x128xf32> -> vector<8x128xf32>
    %48 = vector.extract_strided_slice %47 {offsets = [0, 0], sizes = [1, 128], strides = [1, 1]} : vector<8x128xf32> to vector<1x128xf32>
    %cst_44 = arith.constant 3.906250e-03 : f32
    %49 = vector.broadcast %cst_44 : f32 to vector<1x128xf32>
    %50 = arith.mulf %45, %49 : vector<1x128xf32>
    %cst_45 = arith.constant 3.906250e-03 : f32
    %51 = vector.broadcast %cst_45 : f32 to vector<1x128xf32>
    %52 = arith.mulf %48, %51 : vector<1x128xf32>
    %53 = arith.mulf %50, %50 : vector<1x128xf32>
    %54 = arith.subf %52, %53 : vector<1x128xf32>
    %cst_46 = arith.constant 0.000000e+00 : f32
    %55 = vector.broadcast %cst_46 : f32 to vector<1x128xf32>
    %56 = arith.maximumf %54, %55 : vector<1x128xf32>
    %57 = vector.broadcast %50 : vector<1x128xf32> to vector<256x128xf32>
    %58 = arith.subf %43, %57 : vector<256x128xf32>
    %cst_47 = arith.constant 9.99999974E-6 : f32
    %59 = vector.broadcast %cst_47 : f32 to vector<1x128xf32>
    %60 = arith.addf %56, %59 : vector<1x128xf32>
    %61 = math.rsqrt %60 : vector<1x128xf32>
    %62 = vector.broadcast %61 : vector<1x128xf32> to vector<256x128xf32>
    %63 = arith.mulf %58, %62 : vector<256x128xf32>
    %cst_48 = arith.constant 0.000000e+00 : f32
    %64 = vector.broadcast %cst_48 : f32 to vector<256x128xf32>
    %65 = arith.maximumf %63, %64 : vector<256x128xf32>
    %66 = vector.shape_cast %65 : vector<256x128xf32> to vector<16x16x128xf32>
    %67 = vector.extract_strided_slice %66 {offsets = [0, 1, 0], sizes = [16, 1, 128], strides = [1, 1, 1]} : vector<16x16x128xf32> to vector<16x1x128xf32>
    %68 = vector.extract_strided_slice %66 {offsets = [0, 0, 0], sizes = [16, 15, 128], strides = [1, 1, 1]} : vector<16x16x128xf32> to vector<16x15x128xf32>
    %69 = tpu.concatenate %67, %68 in 1 : vector<16x1x128xf32>, vector<16x15x128xf32> -> vector<16x16x128xf32>
    %70 = vector.extract_strided_slice %66 {offsets = [0, 1, 0], sizes = [16, 15, 128], strides = [1, 1, 1]} : vector<16x16x128xf32> to vector<16x15x128xf32>
    %71 = vector.extract_strided_slice %66 {offsets = [0, 14, 0], sizes = [16, 1, 128], strides = [1, 1, 1]} : vector<16x16x128xf32> to vector<16x1x128xf32>
    %72 = tpu.concatenate %70, %71 in 1 : vector<16x15x128xf32>, vector<16x1x128xf32> -> vector<16x16x128xf32>
    %c1_49 = arith.constant 1 : index
    %c0_50 = arith.constant 0 : index
    %c0_51 = arith.constant 0 : index
    %73 = vector.load %arg7[%c1_49, %c0_50, %c0_51] : memref<18x16x384xf32, #tpu.memory_space<vmem>>, vector<16x16x128xf32>
    tpu.vector_store %arg7[%c1_49, %c0_50, %c0_51], %69 {strides = array<i32>} : memref<18x16x384xf32, #tpu.memory_space<vmem>>, vector<16x16x128xf32>,
    %c1_52 = arith.constant 1 : index
    %c0_53 = arith.constant 0 : index
    %c128_54 = arith.constant 128 : index
    %74 = vector.load %arg7[%c1_52, %c0_53, %c128_54] : memref<18x16x384xf32, #tpu.memory_space<vmem>>, vector<16x16x128xf32>
    tpu.vector_store %arg7[%c1_52, %c0_53, %c128_54], %66 {strides = array<i32>} : memref<18x16x384xf32, #tpu.memory_space<vmem>>, vector<16x16x128xf32>,
    %c1_55 = arith.constant 1 : index
    %c0_56 = arith.constant 0 : index
    %c256_57 = arith.constant 256 : index
    %75 = vector.load %arg7[%c1_55, %c0_56, %c256_57] : memref<18x16x384xf32, #tpu.memory_space<vmem>>, vector<16x16x128xf32>
    tpu.vector_store %arg7[%c1_55, %c0_56, %c256_57], %72 {strides = array<i32>} : memref<18x16x384xf32, #tpu.memory_space<vmem>>, vector<16x16x128xf32>,
    %c2_58 = arith.constant 2 : index
    %c0_59 = arith.constant 0 : index
    %c0_60 = arith.constant 0 : index
    %76 = vector.load %arg7[%c2_58, %c0_59, %c0_60] : memref<18x16x384xf32, #tpu.memory_space<vmem>>, vector<1x16x384xf32>
    %77 = vector.shape_cast %76 : vector<1x16x384xf32> to vector<16x384xf32>
    %c0_61 = arith.constant 0 : index
    %c0_62 = arith.constant 0 : index
    %c0_63 = arith.constant 0 : index
    %78 = vector.load %arg7[%c0_61, %c0_62, %c0_63] : memref<18x16x384xf32, #tpu.memory_space<vmem>>, vector<1x16x384xf32>
    %79 = vector.shape_cast %78 : vector<1x16x384xf32> to vector<16x384xf32>
    %80 = vector.shape_cast %77 : vector<16x384xf32> to vector<1x16x384xf32>
    tpu.vector_store %arg7[%c0_61, %c0_62, %c0_63], %80 {strides = array<i32>} : memref<18x16x384xf32, #tpu.memory_space<vmem>>, vector<1x16x384xf32>,
    %c15_64 = arith.constant 15 : index
    %c0_65 = arith.constant 0 : index
    %c0_66 = arith.constant 0 : index
    %81 = vector.load %arg7[%c15_64, %c0_65, %c0_66] : memref<18x16x384xf32, #tpu.memory_space<vmem>>, vector<1x16x384xf32>
    %82 = vector.shape_cast %81 : vector<1x16x384xf32> to vector<16x384xf32>
    %c17_67 = arith.constant 17 : index
    %c0_68 = arith.constant 0 : index
    %c0_69 = arith.constant 0 : index
    %83 = vector.load %arg7[%c17_67, %c0_68, %c0_69] : memref<18x16x384xf32, #tpu.memory_space<vmem>>, vector<1x16x384xf32>
    %84 = vector.shape_cast %83 : vector<1x16x384xf32> to vector<16x384xf32>
    %85 = vector.shape_cast %82 : vector<16x384xf32> to vector<1x16x384xf32>
    tpu.vector_store %arg7[%c17_67, %c0_68, %c0_69], %85 {strides = array<i32>} : memref<18x16x384xf32, #tpu.memory_space<vmem>>, vector<1x16x384xf32>,
    %cst_70 = arith.constant 0.000000e+00 : f32
    %86 = vector.broadcast %cst_70 : f32 to vector<256x128xf32>
    %c0_71 = arith.constant 0 : index
    %c0_72 = arith.constant 0 : index
    %c0_73 = arith.constant 0 : index
    %87 = vector.load %arg7[%c0_71, %c0_72, %c0_73] : memref<18x16x384xf32, #tpu.memory_space<vmem>>, vector<16x16x384xf32>
    %88 = vector.shape_cast %87 : vector<16x16x384xf32> to vector<256x384xf32>
    %c0_74 = arith.constant 0 : index
    %c0_75 = arith.constant 0 : index
    %c0_76 = arith.constant 0 : index
    %89 = vector.load %arg4[%c0_74, %c0_75, %c0_76] : memref<3x384x128xf32, #tpu.memory_space<vmem>>, vector<1x384x128xf32>
    %90 = vector.shape_cast %89 : vector<1x384x128xf32> to vector<384x128xf32>
    %cst_77 = arith.constant dense<0.000000e+00> : vector<256x128xf32>
    %91 = tpu.matmul %88, %90, %cst_77 {dimension_numbers = #tpu.dot_dimension_numbers<[1], [0], [0], [1], [0, 0, 1, 1], [], []>} : vector<256x384xf32>, vector<384x128xf32>, vector<256x128xf32> -> vector<256x128xf32>
    %92 = arith.addf %86, %91 : vector<256x128xf32>
    %c1_78 = arith.constant 1 : index
    %c0_79 = arith.constant 0 : index
    %c0_80 = arith.constant 0 : index
    %93 = vector.load %arg7[%c1_78, %c0_79, %c0_80] : memref<18x16x384xf32, #tpu.memory_space<vmem>>, vector<16x16x384xf32>
    %94 = vector.shape_cast %93 : vector<16x16x384xf32> to vector<256x384xf32>
    %c1_81 = arith.constant 1 : index
    %c0_82 = arith.constant 0 : index
    %c0_83 = arith.constant 0 : index
    %95 = vector.load %arg4[%c1_81, %c0_82, %c0_83] : memref<3x384x128xf32, #tpu.memory_space<vmem>>, vector<1x384x128xf32>
    %96 = vector.shape_cast %95 : vector<1x384x128xf32> to vector<384x128xf32>
    %cst_84 = arith.constant dense<0.000000e+00> : vector<256x128xf32>
    %97 = tpu.matmul %94, %96, %cst_84 {dimension_numbers = #tpu.dot_dimension_numbers<[1], [0], [0], [1], [0, 0, 1, 1], [], []>} : vector<256x384xf32>, vector<384x128xf32>, vector<256x128xf32> -> vector<256x128xf32>
    %98 = arith.addf %92, %97 : vector<256x128xf32>
    %c2_85 = arith.constant 2 : index
    %c0_86 = arith.constant 0 : index
    %c0_87 = arith.constant 0 : index
    %99 = vector.load %arg7[%c2_85, %c0_86, %c0_87] : memref<18x16x384xf32, #tpu.memory_space<vmem>>, vector<16x16x384xf32>
    %100 = vector.shape_cast %99 : vector<16x16x384xf32> to vector<256x384xf32>
    %c2_88 = arith.constant 2 : index
    %c0_89 = arith.constant 0 : index
    %c0_90 = arith.constant 0 : index
    %101 = vector.load %arg4[%c2_88, %c0_89, %c0_90] : memref<3x384x128xf32, #tpu.memory_space<vmem>>, vector<1x384x128xf32>
    %102 = vector.shape_cast %101 : vector<1x384x128xf32> to vector<384x128xf32>
    %cst_91 = arith.constant dense<0.000000e+00> : vector<256x128xf32>
    %103 = tpu.matmul %100, %102, %cst_91 {dimension_numbers = #tpu.dot_dimension_numbers<[1], [0], [0], [1], [0, 0, 1, 1], [], []>} : vector<256x384xf32>, vector<384x128xf32>, vector<256x128xf32> -> vector<256x128xf32>
    %104 = arith.addf %98, %103 : vector<256x128xf32>
    %c0_92 = arith.constant 0 : index
    %c0_93 = arith.constant 0 : index
    %105 = vector.load %arg5[%c0_92, %c0_93] : memref<1x128xf32, #tpu.memory_space<vmem>>, vector<1x128xf32>
    %106 = vector.broadcast %105 : vector<1x128xf32> to vector<256x128xf32>
    %107 = arith.addf %104, %106 : vector<256x128xf32>
    %cst_94 = arith.constant dense<0.000000e+00> : vector<8x128xf32>
    %108 = tpu.matmul %0, %107, %cst_94 {dimension_numbers = #tpu.dot_dimension_numbers<[1], [0], [0], [1], [0, 0, 1, 1], [], []>} : vector<8x256xf32>, vector<256x128xf32>, vector<8x128xf32> -> vector<8x128xf32>
    %109 = vector.extract_strided_slice %108 {offsets = [0, 0], sizes = [1, 128], strides = [1, 1]} : vector<8x128xf32> to vector<1x128xf32>
    %110 = arith.mulf %107, %107 : vector<256x128xf32>
    %cst_95 = arith.constant dense<0.000000e+00> : vector<8x128xf32>
    %111 = tpu.matmul %0, %110, %cst_95 {dimension_numbers = #tpu.dot_dimension_numbers<[1], [0], [0], [1], [0, 0, 1, 1], [], []>} : vector<8x256xf32>, vector<256x128xf32>, vector<8x128xf32> -> vector<8x128xf32>
    %112 = vector.extract_strided_slice %111 {offsets = [0, 0], sizes = [1, 128], strides = [1, 1]} : vector<8x128xf32> to vector<1x128xf32>
    %cst_96 = arith.constant 3.906250e-03 : f32
    %113 = vector.broadcast %cst_96 : f32 to vector<1x128xf32>
    %114 = arith.mulf %109, %113 : vector<1x128xf32>
    %cst_97 = arith.constant 3.906250e-03 : f32
    %115 = vector.broadcast %cst_97 : f32 to vector<1x128xf32>
    %116 = arith.mulf %112, %115 : vector<1x128xf32>
    %117 = arith.mulf %114, %114 : vector<1x128xf32>
    %118 = arith.subf %116, %117 : vector<1x128xf32>
    %cst_98 = arith.constant 0.000000e+00 : f32
    %119 = vector.broadcast %cst_98 : f32 to vector<1x128xf32>
    %120 = arith.maximumf %118, %119 : vector<1x128xf32>
    %121 = vector.broadcast %114 : vector<1x128xf32> to vector<256x128xf32>
    %122 = arith.subf %107, %121 : vector<256x128xf32>
    %cst_99 = arith.constant 9.99999974E-6 : f32
    %123 = vector.broadcast %cst_99 : f32 to vector<1x128xf32>
    %124 = arith.addf %120, %123 : vector<1x128xf32>
    %125 = math.rsqrt %124 : vector<1x128xf32>
    %126 = vector.broadcast %125 : vector<1x128xf32> to vector<256x128xf32>
    %127 = arith.mulf %122, %126 : vector<256x128xf32>
    %128 = vector.shape_cast %127 : vector<256x128xf32> to vector<16x16x128xf32>
    %129 = arith.addf %2, %128 : vector<16x16x128xf32>
    %c0_100 = arith.constant 0 : index
    %c0_101 = arith.constant 0 : index
    %c0_102 = arith.constant 0 : index
    %c0_103 = arith.constant 0 : index
    %130 = vector.load %arg6[%c0_100, %c0_101, %c0_102, %c0_103] : memref<1x16x16x128xf32, #tpu.memory_space<vmem>>, vector<1x16x16x128xf32>
    %131 = vector.shape_cast %130 : vector<1x16x16x128xf32> to vector<16x16x128xf32>
    %132 = vector.shape_cast %129 : vector<16x16x128xf32> to vector<1x16x16x128xf32>
    tpu.vector_store %arg6[%c0_100, %c0_101, %c0_102, %c0_103], %132 {strides = array<i32>} : memref<1x16x16x128xf32, #tpu.memory_space<vmem>>, vector<1x16x16x128xf32>,
    return
  }
  func.func @transform_0(%arg0: i32) -> (i32, i32, i32, i32) {
    %c0_i32 = arith.constant 0 : i32
    %c0_i32_0 = arith.constant 0 : i32
    %c0_i32_1 = arith.constant 0 : i32
    %c0_i32_2 = arith.constant 0 : i32
    return %arg0, %c0_i32, %c0_i32_0, %c0_i32_1 : i32, i32, i32, i32
  }
  func.func @transform_1(%arg0: i32) -> (i32, i32, i32) {
    %c0_i32 = arith.constant 0 : i32
    %c0_i32_0 = arith.constant 0 : i32
    %c0_i32_1 = arith.constant 0 : i32
    %c0_i32_2 = arith.constant 0 : i32
    return %c0_i32, %c0_i32_0, %c0_i32_1 : i32, i32, i32
  }
  func.func @transform_2(%arg0: i32) -> (i32, i32) {
    %c0_i32 = arith.constant 0 : i32
    %c0_i32_0 = arith.constant 0 : i32
    %c0_i32_1 = arith.constant 0 : i32
    return %c0_i32, %c0_i32_0 : i32, i32
  }
  func.func @transform_3(%arg0: i32) -> (i32, i32, i32) {
    %c0_i32 = arith.constant 0 : i32
    %c0_i32_0 = arith.constant 0 : i32
    %c0_i32_1 = arith.constant 0 : i32
    %c0_i32_2 = arith.constant 0 : i32
    return %c0_i32, %c0_i32_0, %c0_i32_1 : i32, i32, i32
  }
  func.func @transform_4(%arg0: i32) -> (i32, i32) {
    %c0_i32 = arith.constant 0 : i32
    %c0_i32_0 = arith.constant 0 : i32
    %c0_i32_1 = arith.constant 0 : i32
    return %c0_i32, %c0_i32_0 : i32, i32
  }
  func.func @transform_5(%arg0: i32) -> (i32, i32, i32, i32) {
    %c0_i32 = arith.constant 0 : i32
    %c0_i32_0 = arith.constant 0 : i32
    %c0_i32_1 = arith.constant 0 : i32
    %c0_i32_2 = arith.constant 0 : i32
    return %arg0, %c0_i32, %c0_i32_0, %c0_i32_1 : i32, i32, i32, i32
  }
}

</mosaic_0001>

<bundles_post_ra>
// kernel: tpu_custom_call.1
= control target key start
LH: loop header
LB: loop body
LE: loop exit
PB: predicated region body
PF: predicated region fallthrough
CT: control target
= control target key end

     0   :  { %10 = vsyncpa [#allocation4], 0  ;;  %s10085_s0 = inlined_call_operand.hbm [shape: f32[2,16,16,128], index: 0, kind: input, shape index: {}]   ;;  %s10086_s1 = inlined_call_operand.hbm [shape: f32[3,384,128], index: 1, kind: input, shape index: {}]   ;;  %s10087_s2 = inlined_call_operand.vmem [shape: f32[1,128], index: 2, kind: input, shape index: {}]   ;;  %s10088_s3 = inlined_call_operand.hbm [shape: f32[3,384,128], index: 3, kind: input, shape index: {}]   ;;  %s10089_s4 = inlined_call_operand.vmem [shape: f32[1,128], index: 4, kind: input, shape index: {}]   ;;  %s10090_s5 = inlined_call_operand.hbm [shape: f32[2,16,16,128], index: 5, kind: output, shape index: {}]  }
   0x1   :  { %12 = vsyncpa [#allocation4 + $0x1], 0 }
   0x2   :  { %13 = vsyncpa [#allocation7], 0 }
   0x3   :  { %14 = vsyncpa [#allocation5], 0 }
   0x4   :  { %16 = vsyncpa [#allocation5 + $0x1], 0  ;;  %s6735_s18 = smov 0   ;;  %s6737_s19 = smov 0  }
   0x5   :  { %s6739_s20 = smov 0   ;;  %s6741_s21 = smov 0  }
   0x6 LB: > { %s6756_s22 = sadd.s32 4294967295, %s6693_s21   ;;  %s5476_s23 = sadd.s32 4294967294, %s6693_s21   ;;  %s6693_s21 = sphi %s6741_s21, %s10573_s21   ;;  %s6689_s20 = sphi %s6739_s20, %s10572_s20   ;;  %s6685_s19 = sphi %s6737_s19, %s10571_s19   ;;  %s6681_s18 = sphi %s6735_s18, %s10570_s18  }
   0x7   : > { %p42_p0 = scmp.ne.s32.totalorder %s6685_s19, %s6681_s18  ;;  %p10091_p1 = scmp.eq.s32.totalorder %s6756_s22, 0 }
   0x8   : > { %p150_p2 = scmp.eq.s32.totalorder %s6756_s22, 1  ;;  %p156_p3 = scmp.eq.s32.totalorder %s5476_s23, 1 }
   0x9   : > { %p6765_p4 = por %p10091_p1, %p42_p0  ;;  %p5477_p5 = scmp.ge.s32.totalorder %s6693_s21, 1 }
   0xa   : > { %p6770_p6 = por %p156_p3, %p42_p0  ;;  %p163_p7 = scmp.lt.s32.totalorder %s6693_s21, 3 }
   0xb   : > { %s10275_s24 = scalar_select %p6765_p4, 1, 0 }
   0xc   : > { %s10276_s25 = scalar_select %p6770_p6, 1, 0 }
   0xd   : > { %p6775_p8 = pnand %p5477_p5, %p163_p7  ;;  %s6695_s27 = smov [#allocation6]  }
   0xe   : > { %s175_s28 = sshll.u32 %s6695_s27, 4  ;;  %s6696_s30 = smov [#allocation8]   ;;  %s176_s28 = int_to_ptr.vmem [resolvable:$true] %s175_s28 }
   0xf   : > { %s10277_s26 = scalar_select %p6775_p8, 1, 0 }
  0x10   : > { %p6418_p9 = pneg %p6775_p8  ;;  %s191_s6 = sshll.u32 %s6696_s30, 4  ;;  %s192_s6 = int_to_ptr.vmem [resolvable:$true] %s191_s6 }
  0x11   : > { %s6556_s7 = scalar_lea.vmem %s176_s28, 18432  ;;  %p6564_p5 = scmp.lt.s32.totalorder %s176_s28, %s176_s28 }
  0x12   : > { %p6784_p11 = pnand %p6418_p9, %p10091_p1  ;;  %p6557_p13 = scmp.ne.s32.totalorder %s176_s28, %s6556_s7 }
  0x13   : > { %p6565_p7 = scmp.lt.s32.totalorder %s6556_s7, %s6556_s7 }
  0x14   : > { %p6547_p12 = pneg %p6784_p11 }
  0x15   : > { %p6566_p10 = por %p6565_p7, %p6564_p5 }
  0x16   : > { %p6559_p0 = pnand %p6557_p13, %p6547_p12 }
  0x18   : > { %p6560_p3 = pneg %p6559_p0 }
  0x1a   : > { %p6567_p9 = pnand %p6566_p10, %p6560_p3 }
  0x1c   : > { %6570 = shalt.err (!%p6567_p9)
}
  0x1d   : > { %s10092_s8 = smov 128   ;;  %s6698_s9 = smov 8  }
  0x1e   : > { %6421 = dma.hbm_to_vmem [thread:$0]  (!%p6784_p11), %s10086_s1, 18432, %s176_s28, [#allocation7], %s10092_s8, %s10092_s8, %s6698_s9  }
  0x1f   : > { %s6582_s12 = scalar_lea.vmem %s192_s6, 18432  ;;  %p6590_p10 = scmp.lt.s32.totalorder %s192_s6, %s192_s6 }
  0x20   : > { %p6583_p13 = scmp.ne.s32.totalorder %s192_s6, %s6582_s12  ;;  %p6591_p3 = scmp.lt.s32.totalorder %s6582_s12, %s6582_s12 }
  0x22   : > { %p6585_p0 = pnand %p6583_p13, %p6547_p12  ;;  %p6592_p7 = por %p6591_p3, %p6590_p10 }
  0x24   : > { %p6586_p5 = pneg %p6585_p0 }
  0x26   : > { %p6593_p9 = pnand %p6592_p7, %p6586_p5 }
  0x28   : > { %6596 = shalt.err (!%p6593_p9)
}
  0x29   : > { %6424 = dma.hbm_to_vmem [thread:$0]  (!%p6784_p11), %s10088_s3, 18432, %s192_s6, [#allocation7], %s10092_s8, %s10092_s8, %s6698_s9  }
  0x2a   : > { %s6813_s15 = sadd.s32 1, %s6693_s21   ;;  %s29_s16 = sadd.s32 1, %s6689_s20 }
  0x2b   : > { %s26_s17 = ssub.s32 %s6693_s21, %s6813_s15  ;;  %p36_p12 = scmp.ne.s32.totalorder %s6689_s20, %s6685_s19 }
  0x2c   : > { %p27_p13 = scmp.eq.s32.totalorder %s26_s17, 0  ;;  %p37_p0 = scmp.eq.s32.totalorder %s6693_s21, 0 }
  0x2d   : > { %p6823_p5 = por %p150_p2, %p36_p12  ;;  %p6435_p10 = scmp.lt.s32.totalorder %s6693_s21, 2 }
  0x2e   : > { %s6829_s27 = scalar_select %p27_p13, %s6689_s20, %s29_s16  }
  0x2f   : > { %s10279_s23 = scalar_select %p6823_p5, 1, 0 }
  0x30   : > { %p38_p3 = por %p37_p0, %p36_p12  ;;  %s208_s28 = sand.u32 1, %s6689_s20  }
  0x31   : > { %s5481_s29 = sshll.u32 %s208_s28, 8  ;;  %s5496_s30 = sshll.u32 %s6693_s21, 12 }
  0x32   : > { %s6836_s10 = scalar_lea.hbm %s10085_s0, %s5496_s30  ;;  %s212_s11 = scalar_lea.vmem [#allocation3], %s5481_s29 }
  0x33   : > { %s219_s12 = sshll.u32 %s212_s11, 4  ;;  %p6840_p2 = pnand %p6435_p10, %p38_p3  ;;  %s6838_s12 = int_to_ptr.vmem [resolvable:$true] %s219_s12 }
  0x34   : > { %s6844_s14 = scalar_lea.sflag [#allocation4], %s208_s28  ;;  %s6597_s16 = scalar_lea.hbm %s6836_s10, 4096 }
  0x35   : > { %p6598_p11 = scmp.ne.s32.totalorder %s6836_s10, %s6597_s16  ;;  %p6599_p7 = pneg %p6840_p2 }
  0x36   : > { %s6602_s29 = scalar_lea.hbm %s10085_s0, 8192  ;;  %p6603_p13 = scmp.lt.s32.totalorder %s6836_s10, %s10085_s0 }
  0x37   : > { %p6600_p9 = pnand %p6599_p7, %p6598_p11  ;;  %p6604_p0 = scmp.lt.s32.totalorder %s6602_s29, %s6597_s16 }
  0x39   : > { %p6601_p12 = pneg %p6600_p9  ;;  %p6605_p10 = por %p6604_p0, %p6603_p13 }
  0x3b   : > { %p6606_p3 = pnand %p6605_p10, %p6601_p12 }
  0x3d   : > { %6609 = shalt.err (!%p6606_p3)
}
  0x3e   : > { %s6610_s28 = scalar_lea.vmem %s6838_s12, 4096  ;;  %s6699_s11 = smov [#allocation3]  }
  0x3f   : > { %p6611_p1 = scmp.ne.s32.totalorder %s6838_s12, %s6610_s28  ;;  %s6615_s8 = sshll.u32 %s6699_s11, 4  ;;  %s6616_s8 = int_to_ptr.vmem [resolvable:$false] %s6615_s8 }
  0x40   : > { %s6617_s17 = scalar_lea.vmem %s6616_s8, 8192  ;;  %p6618_p9 = scmp.lt.s32.totalorder %s6838_s12, %s6616_s8 }
  0x41   : > { %p6613_p6 = pnand %p6611_p1, %p6599_p7  ;;  %p6619_p5 = scmp.lt.s32.totalorder %s6617_s17, %s6610_s28 }
  0x43   : > { %p6614_p11 = pneg %p6613_p6  ;;  %p6620_p4 = por %p6619_p5, %p6618_p9 }
  0x45   : > { %p6621_p8 = pnand %p6620_p4, %p6614_p11 }
  0x47   : > { %6624 = shalt.err (!%p6621_p8)
}
  0x48   : > { %s10281_s16 = smov 128   ;;  %p10282_p1 = scmp.ne.s32.totalorder %s10277_s26, 0 }
  0x49   : > { %6428 = dma.hbm_to_vmem [thread:$0]  (!%p6840_p2), %s6836_s10, 4096, %s6838_s12, %s6844_s14, %s10281_s16, %s10281_s16, %s6698_s9  }
  0x4a   : > { %231 = sbr.rel (%p10282_p1) target bundleno = 1780 (0x6f4), region = 40 }
  0x4f   : > { %s6871_s30 = sand.u32 1, %s6685_s19   ;;  %p10283_p4 = scmp.ne.s32.totalorder %s10275_s24, 0 }
  0x50   : > { %s5485_s8 = sshll.u32 %s6871_s30, 8  ;;  %s234_s29 = scalar_lea.sflag [#allocation4], %s6871_s30 }
  0x51   : > { %s6877_s13 = scalar_lea.vmem [#allocation3], %s5485_s8 }
  0x52   : > { %6668 = dma.done.wait (%p10283_p4), %s234_s29, 4096  }
  0x53   : > { %6670 = vsyncadd (%p10283_p4), %s234_s29, 4294963200  ;;  %p10284_p6 = scmp.eq.s32.totalorder %s6756_s22, 0 }
  0x55   : > { %6672 = dma.done.wait (%p10284_p6), [#allocation7], 36864   ;;  %p10285_p8 = pmov %p10284_p6 }
  0x56   : > { %v10114_v0 = vmov 0.0   ;;  %v942_v1 = vld [vmem:[#allocation6 + $0x1f8] sm:$0xff]  ;;  %v941_v3 = vld [vmem:[#allocation6 + $0x1f0] sm:$0xff]  ;;  %v940_v5 = vld [vmem:[#allocation6 + $0x1e8] sm:$0xff]  ;;  %vm465_vm0 = vcmask 1046528   ;;  %vm368_vm1 = vcmask 1040384  }
  0x57   : > { %6674 = vsyncadd (%p10285_p8), [#allocation7], 4294930432  ;;  %975 = vmatprep.subr.mxu0 %v10114_v0  ;;  %v974_v2 = vld [vmem:[#allocation6 + $0x2f8] sm:$0xff]  ;;  %v973_v4 = vld [vmem:[#allocation6 + $0x2f0] sm:$0xff]  ;;  %s9964_s12 = scalar_lea.vmem [#allocation9], %s5485_s8  ;;  %s5497_s14 = sshll.u32 %s6756_s22, 12 }
  0x58   : > { %976 = vmatpush1.msra.mxu0 %v942_v1  ;;  %5926 = vmatprep.subr.mxu1 %v974_v2  ;;  %v972_v6 = vld [vmem:[#allocation6 + $0x2e8] sm:$0xff]  ;;  %v939_v7 = vld [vmem:[#allocation6 + $0x1e0] sm:$0xff]  ;;  %v938_v9 = vld [vmem:[#allocation6 + $0x1d8] sm:$0xff]  ;;  %s5384_s6 = sshll.u32 %s9964_s12, 4  ;;  %s10018_s11 = scalar_lea.hbm %s10090_s5, %s5497_s14  ;;  %s10022_s6 = int_to_ptr.vmem [resolvable:$true] %s5384_s6 }
  0x59   : > { %977 = vmatprep.subr.mxu0 %v10114_v0  ;;  %5927 = vmatpush3.msra.mxu1 %v974_v2  ;;  %v971_v8 = vld [vmem:[#allocation6 + $0x2e0] sm:$0xff]  ;;  %v970_v10 = vld [vmem:[#allocation6 + $0x2d8] sm:$0xff]  ;;  %v937_v11 = vld [vmem:[#allocation6 + $0x1d0] sm:$0xff]  ;;  %s5371_s22 = scalar_lea.sflag [#allocation5], %s6871_s30  ;;  %s6625_s17 = scalar_lea.vmem %s10022_s6, 4096 }
  0x5a   : > { %978 = vmatpush1.msra.mxu0 %v941_v3  ;;  %5928 = vmatprep.subr.mxu1 %v973_v4  ;;  %v969_v12 = vld [vmem:[#allocation6 + $0x2d0] sm:$0xff]  ;;  %v936_v13 = vld [vmem:[#allocation6 + $0x1c8] sm:$0xff]  ;;  %v935_v15 = vld [vmem:[#allocation6 + $0x1c0] sm:$0xff]  ;;  %p6626_p5 = scmp.ne.s32.totalorder %s10022_s6, %s6625_s17  ;;  %p10567_p2 = scmp.ne.s32.totalorder %s10279_s23, 0 }
  0x5b   : > { %979 = vmatprep.subr.mxu0 %v10114_v0  ;;  %5929 = vmatpush3.msra.mxu1 %v973_v4  ;;  %v968_v14 = vld [vmem:[#allocation6 + $0x2c8] sm:$0xff]  ;;  %v967_v16 = vld [vmem:[#allocation6 + $0x2c0] sm:$0xff]  ;;  %v934_v17 = vld [vmem:[#allocation6 + $0x1b8] sm:$0xff]  ;;  %s6702_s16 = smov [#allocation9]  }
  0x5c   : > { %980 = vmatpush1.msra.mxu0 %v940_v5  ;;  %5930 = vmatprep.subr.mxu1 %v972_v6  ;;  %v966_v18 = vld [vmem:[#allocation6 + $0x2b8] sm:$0xff]  ;;  %v933_v19 = vld [vmem:[#allocation6 + $0x1b0] sm:$0xff]  ;;  %v932_v21 = vld [vmem:[#allocation6 + $0x1a8] sm:$0xff]  ;;  %p6627_p7 = pnand %p6626_p5, %p10567_p2  ;;  %s6629_s8 = sshll.u32 %s6702_s16, 4  ;;  %s6630_s8 = int_to_ptr.vmem [resolvable:$false] %s6629_s8 }
  0x5d   : > { %981 = vmatprep.subr.mxu0 %v10114_v0  ;;  %5931 = vmatpush3.msra.mxu1 %v972_v6  ;;  %v965_v20 = vld [vmem:[#allocation6 + $0x2b0] sm:$0xff]  ;;  %v964_v22 = vld [vmem:[#allocation6 + $0x2a8] sm:$0xff]  ;;  %v931_v23 = vld [vmem:[#allocation6 + $0x1a0] sm:$0xff]  ;;  %s6631_s29 = scalar_lea.vmem %s6630_s8, 8192  ;;  %p6632_p13 = scmp.lt.s32.totalorder %s10022_s6, %s6630_s8 }
  0x5e   : > { %982 = vmatpush1.msra.mxu0 %v939_v7  ;;  %5932 = vmatprep.subr.mxu1 %v971_v8  ;;  %v963_v24 = vld [vmem:[#allocation6 + $0x2a0] sm:$0xff]  ;;  %v930_v25 = vld [vmem:[#allocation6 + $0x198] sm:$0xff]  ;;  %v6903_v28 = vld [vmem:[%s6877_s13 + $0x8] sm:$0xff]  ;;  %p6628_p12 = pneg %p6627_p7  ;;  %p6633_p0 = scmp.lt.s32.totalorder %s6631_s29, %s6625_s17 }
  0x5f   : > { %983 = vmatprep.subr.mxu0 %v10114_v0  ;;  %5933 = vmatpush3.msra.mxu1 %v971_v8  ;;  %v962_v26 = vld [vmem:[#allocation6 + $0x298] sm:$0xff]  ;;  %v6900_v27 = vld [vmem:[%s6877_s13] sm:$0xff]  ;;  %v929_v29 = vld [vmem:[#allocation6 + $0x190] sm:$0xff]  ;;  %v466_v34 = vrot.slane %v6903_v28, 1  ;;  %v370_v35 = vrot.slane %v6903_v28, 7 }
  0x60   : > { %984 = vmatpush1.msra.mxu0 %v938_v9  ;;  %5934 = vmatprep.subr.mxu1 %v970_v10  ;;  %v961_v30 = vld [vmem:[#allocation6 + $0x290] sm:$0xff]  ;;  %v928_v31 = vld [vmem:[#allocation6 + $0x188] sm:$0xff]  ;;  %v320_v33 = vrot.slane %v6900_v27, 1  ;;  %v6914_v37 = vld [vmem:[%s6877_s13 + $0x18] sm:$0xff]  ;;  %p6634_p10 = por %p6633_p0, %p6632_p13 }
  0x61   : > { %985 = vmatprep.subr.mxu0 %v10114_v0  ;;  %5935 = vmatpush3.msra.mxu1 %v970_v10  ;;  %v960_v32 = vld [vmem:[#allocation6 + $0x288] sm:$0xff]  ;;  %v6911_v36 = vld [vmem:[%s6877_s13 + $0x10] sm:$0xff]  ;;  %v927_v38 = vld [vmem:[#allocation6 + $0x180] sm:$0xff]  ;;  %v468_v43 = vrot.slane %v6914_v37, 1  ;;  %v6928_v44 = vsel %vm465_vm0, %v466_v34, %v370_v35  ;;  %v373_v46 = vrot.slane %v6914_v37, 7 }
  0x62   : > { %986 = vmatpush1.msra.mxu0 %v937_v11  ;;  %5936 = vmatprep.subr.mxu1 %v969_v12  ;;  %v959_v39 = vld [vmem:[#allocation6 + $0x280] sm:$0xff]  ;;  %v6921_v40 = vsel %vm465_vm0, %v320_v33, %v466_v34  ;;  %v958_v41 = vld [vmem:[#allocation6 + $0x278] sm:$0xff]  ;;  %v321_v42 = vrot.slane %v6911_v36, 1  ;;  %v6936_v48 = vld [vmem:[%s6877_s13 + $0x28] sm:$0xff]  ;;  %p6635_p3 = pnand %p6634_p10, %p6628_p12 }
  0x63   : > { %987 = vmatprep.subr.mxu0 %v10114_v0  ;;  %5937 = vmatpush3.msra.mxu1 %v969_v12  ;;  %v797_v45 = vld [vmem:[#allocation6 + $0x78] sm:$0xff]  ;;  %v6933_v47 = vld [vmem:[%s6877_s13 + $0x20] sm:$0xff]  ;;  %v957_v49 = vld [vmem:[#allocation6 + $0x270] sm:$0xff]  ;;  %v470_v54 = vrot.slane %v6936_v48, 1  ;;  %v6953_v55 = vsel %vm465_vm0, %v468_v43, %v373_v46  ;;  %v10112_v57 = vrot.slane %v6936_v48, 7 }
  0x64   : > { %988 = vmatpush1.msra.mxu0 %v936_v13  ;;  %5938 = vmatprep.subr.mxu1 %v968_v14  ;;  %v6944_v50 = vsel %vm465_vm0, %v321_v42, %v468_v43  ;;  %v796_v51 = vld [vmem:[#allocation6 + $0x70] sm:$0xff]  ;;  %v956_v52 = vld [vmem:[#allocation6 + $0x268] sm:$0xff]  ;;  %v10113_v53 = vrot.slane %v6933_v47, 1  ;;  %v6962_v59 = vld [vmem:[%s6877_s13 + $0x38] sm:$0xff] }
  0x65   : > { %989 = vmatprep.subr.mxu0 %v10114_v0  ;;  %5939 = vmatpush3.msra.mxu1 %v968_v14  ;;  %v795_v56 = vld [vmem:[#allocation6 + $0x68] sm:$0xff]  ;;  %v6959_v58 = vld [vmem:[%s6877_s13 + $0x30] sm:$0xff]  ;;  %v955_v60 = vld [vmem:[#allocation6 + $0x260] sm:$0xff]  ;;  %v472_v2 = vrot.slane %v6962_v59, 1  ;;  %v6978_v3 = vsel %vm465_vm0, %v470_v54, %v10112_v57  ;;  %v10108_v5 = vrot.slane %v6962_v59, 7 }
  0x66   : > { %990 = vmatpush1.msra.mxu0 %v935_v15  ;;  %5940 = vmatprep.subr.mxu1 %v967_v16  ;;  %v6969_v61 = vsel %vm465_vm0, %v10113_v53, %v470_v54  ;;  %v794_v62 = vld [vmem:[#allocation6 + $0x60] sm:$0xff]  ;;  %v954_v63 = vld [vmem:[#allocation6 + $0x258] sm:$0xff]  ;;  %v10109_v1 = vrot.slane %v6959_v58, 1  ;;  %v6987_v7 = vld [vmem:[%s6877_s13 + $0x48] sm:$0xff]  ;;  %v10299_v53 = vrot.slane %v6933_v47, 1 }
  0x67   : > { %991 = vmatprep.subr.mxu0 %v10114_v0  ;;  %5941 = vmatpush3.msra.mxu1 %v967_v16  ;;  %v793_v4 = vld [vmem:[#allocation6 + $0x58] sm:$0xff]  ;;  %v6984_v6 = vld [vmem:[%s6877_s13 + $0x40] sm:$0xff]  ;;  %v953_v8 = vld [vmem:[#allocation6 + $0x250] sm:$0xff]  ;;  %v474_v13 = vrot.slane %v6987_v7, 1  ;;  %v7003_v14 = vsel %vm465_vm0, %v472_v2, %v10108_v5  ;;  %v10106_v16 = vrot.slane %v6987_v7, 7 }
  0x68   : > { %992 = vmatpush1.msra.mxu0 %v934_v17  ;;  %5942 = vmatprep.subr.mxu1 %v966_v18  ;;  %v6994_v9 = vsel %vm465_vm0, %v10109_v1, %v472_v2  ;;  %v792_v10 = vld [vmem:[#allocation6 + $0x50] sm:$0xff]  ;;  %v952_v11 = vld [vmem:[#allocation6 + $0x248] sm:$0xff]  ;;  %v10107_v12 = vrot.slane %v6984_v6, 1  ;;  %v7062_v54 = vld [vmem:[%s6877_s13 + $0x78] sm:$0xff] }
  0x69   : > { %993 = vmatprep.subr.mxu0 %v10114_v0  ;;  %5943 = vmatpush3.msra.mxu1 %v966_v18  ;;  %v791_v15 = vld [vmem:[#allocation6 + $0x48] sm:$0xff]  ;;  %v7009_v17 = vld [vmem:[%s6877_s13 + $0x50] sm:$0xff]  ;;  %v7012_v18 = vld [vmem:[%s6877_s13 + $0x58] sm:$0xff] }
  0x6a   : > { %994 = vmatpush1.msra.mxu0 %v933_v19  ;;  %5944 = vmatprep.subr.mxu1 %v965_v20  ;;  %v951_v19 = vld [vmem:[#allocation6 + $0x240] sm:$0xff]  ;;  %v7202_v1 = vld [vmem:[%s6877_s13 + $0xc8] sm:$0xff]  ;;  %v808_v57 = vld [vmem:[#allocation6 + $0xd0] sm:$0xff] }
  0x6b   : > { %995 = vmatprep.subr.mxu0 %v10114_v0  ;;  %5945 = vmatpush3.msra.mxu1 %v965_v20  ;;  %v7019_v20 = vsel %vm465_vm0, %v10107_v12, %v474_v13  ;;  %v7199_v5 = vld [vmem:[%s6877_s13 + $0xc0] sm:$0xff] }
  0x6c   : > { %996 = vmatpush1.msra.mxu0 %v932_v21  ;;  %5946 = vmatprep.subr.mxu1 %v964_v22  ;;  %v790_v21 = vld [vmem:[#allocation6 + $0x40] sm:$0xff] }
  0x6d   : > { %997 = vmatprep.subr.mxu0 %v10114_v0  ;;  %5947 = vmatpush3.msra.mxu1 %v964_v22  ;;  %v950_v22 = vld [vmem:[#allocation6 + $0x238] sm:$0xff] }
  0x6e   : > { %998 = vmatpush1.msra.mxu0 %v931_v23  ;;  %5948 = vmatprep.subr.mxu1 %v963_v24  ;;  %v10103_v23 = vrot.slane %v7009_v17, 1 }
  0x6f   : > { %999 = vmatprep.subr.mxu0 %v10114_v0  ;;  %5949 = vmatpush3.msra.mxu1 %v963_v24  ;;  %v476_v24 = vrot.slane %v7012_v18, 1 }
  0x70   : > { %1000 = vmatpush1.msra.mxu0 %v930_v25  ;;  %5950 = vmatprep.subr.mxu1 %v962_v26  ;;  %v7028_v25 = vsel %vm465_vm0, %v474_v13, %v10106_v16  ;;  %v945_v13 = vld [vmem:[#allocation6 + $0x210] sm:$0xff] }
  0x71   : > { %1001 = vmatprep.subr.mxu0 %v10114_v0  ;;  %5951 = vmatpush3.msra.mxu1 %v962_v26  ;;  %v789_v26 = vld [vmem:[#allocation6 + $0x38] sm:$0xff]  ;;  %v7044_v34 = vsel %vm465_vm0, %v10103_v23, %v476_v24 }
  0x72   : > { %1002 = vmatpush1.msra.mxu0 %v929_v29  ;;  %5952 = vmatprep.subr.mxu1 %v961_v30  ;;  %v10102_v29 = vrot.slane %v7012_v18, 7  ;;  %v7172_v23 = vld [vmem:[%s6877_s13 + $0xb8] sm:$0xff] }
  0x73   : > { %1003 = vmatprep.subr.mxu0 %v10114_v0  ;;  %5953 = vmatpush3.msra.mxu1 %v961_v30  ;;  %v7034_v30 = vld [vmem:[%s6877_s13 + $0x60] sm:$0xff]  ;;  %v488_v12 = vrot.slane %v7172_v23, 1 }
  0x74   : > { %1004 = vmatpush1.msra.mxu0 %v928_v31  ;;  %5954 = vmatprep.subr.mxu1 %v960_v32  ;;  %v7037_v31 = vld [vmem:[%s6877_s13 + $0x68] sm:$0xff] }
  0x75   : > { %1005 = vmatprep.subr.mxu0 %v10114_v0  ;;  %5955 = vmatpush3.msra.mxu1 %v960_v32  ;;  %v949_v32 = vld [vmem:[#allocation6 + $0x230] sm:$0xff]  ;;  %v478_v43 = vrot.slane %v7037_v31, 1 }
  0x76   : > { %1006 = vmatpush1.msra.mxu0 %v927_v38  ;;  %5956 = vmatprep.subr.mxu1 %v959_v39  ;;  %v788_v38 = vld [vmem:[#allocation6 + $0x30] sm:$0xff] }
  0x77   : > { %1007 = vmatprep.subr.mxu0 %v10114_v0  ;;  %5957 = vmatpush3.msra.mxu1 %v959_v39  ;;  %v948_v39 = vld [vmem:[#allocation6 + $0x228] sm:$0xff] }
  0x78   : > { %5958 = vmatprep.mubr.f32.mxu1 %v6921_v40  ;;  %1008 = vmatpush2.msra.mxu0 %v958_v41  ;;  %v10101_v41 = vrot.slane %v7034_v30, 1 }
  0x79   : > { %5959 = vmatmul.mubr.f32.vlgmr.msra.gmra.mxu1 %v6928_v44  ;;  %1425 = vmatprep.subr.mxu1 %v10114_v0 }
  0x7a   : > { %1009 = vmatprep.subr.mxu0 %v10114_v0  ;;  %1426 = vmatpush1.msra.mxu1 %v797_v45  ;;  %v7053_v45 = vsel %vm465_vm0, %v476_v24, %v10102_v29  ;;  %v944_v24 = vld [vmem:[#allocation6 + $0x208] sm:$0xff]  ;;  %v7169_v29 = vld [vmem:[%s6877_s13 + $0xb0] sm:$0xff] }
  0x7b   : > { %1010 = vmatpush2.msra.mxu0 %v957_v49  ;;  %1427 = vmatprep.subr.mxu1 %v10114_v0  ;;  %v787_v49 = vld [vmem:[#allocation6 + $0x28] sm:$0xff]  ;;  %v10118_v16 = vrot.slane %v7169_v29, 1 }
  0x7c   : > { %1011 = vmatprep.subr.mxu0 %v10114_v0  ;;  %5961 = vmatprep.mubr.f32.mxu1 %v6944_v50 }
  0x7d   : > { %1428 = vmatpush1.msra.mxu1 %v796_v51  ;;  %1012 = vmatpush2.msra.mxu0 %v956_v52  ;;  %v10100_v51 = vrot.slane %v7037_v31, 7  ;;  %v7059_v52 = vld [vmem:[%s6877_s13 + $0x70] sm:$0xff] }
  0x7e   : > { %5962 = vmatmul.mubr.f32.gmra.mxu1 %v6953_v55  ;;  %1429 = vmatprep.subr.mxu1 %v10114_v0  ;;  %v10097_v2 = vrot.slane %v7059_v52, 1 }
  0x7f   : > { %1013 = vmatprep.subr.mxu0 %v10114_v0  ;;  %1430 = vmatpush1.msra.mxu1 %v795_v56  ;;  %v947_v56 = vld [vmem:[#allocation6 + $0x220] sm:$0xff] }
  0x80   : > { %1014 = vmatpush2.msra.mxu0 %v955_v60  ;;  %1431 = vmatprep.subr.mxu1 %v10114_v0  ;;  %v7069_v60 = vsel %vm465_vm0, %v10101_v41, %v478_v43 }
  0x81   : > { %1015 = vmatprep.subr.mxu0 %v10114_v0  ;;  %5964 = vmatprep.mubr.f32.mxu1 %v6969_v61  ;;  %10286 = vst [vmem:[#allocation13_spill] sm:$0xff] %v7069_v60 }
  0x82   : > { %1432 = vmatpush1.msra.mxu1 %v794_v62  ;;  %1016 = vmatpush2.msra.mxu0 %v954_v63  ;;  %v786_v62 = vld [vmem:[#allocation6 + $0x20] sm:$0xff]  ;;  %v946_v63 = vld [vmem:[#allocation6 + $0x218] sm:$0xff] }
  0x83   : > { %5965 = vmatmul.mubr.f32.gmra.mxu1 %v6978_v3  ;;  %1433 = vmatprep.subr.mxu1 %v10114_v0 }
  0x84   : > { %1017 = vmatprep.subr.mxu0 %v10114_v0  ;;  %1434 = vmatpush1.msra.mxu1 %v793_v4  ;;  %v480_v4 = vrot.slane %v7062_v54, 1 }
  0x85   : > { %1018 = vmatpush2.msra.mxu0 %v953_v8  ;;  %1435 = vmatprep.subr.mxu1 %v10114_v0  ;;  %v7078_v8 = vsel %vm465_vm0, %v478_v43, %v10100_v51  ;;  %v783_v43 = vld [vmem:[#allocation6 + $0x8] sm:$0xff]  ;;  %v812_v51 = vld [vmem:[#allocation6 + $0xf0] sm:$0xff] }
  0x86   : > { %1019 = vmatprep.subr.mxu0 %v10114_v0  ;;  %5967 = vmatprep.mubr.f32.mxu1 %v6994_v9  ;;  %10287 = vst [vmem:[#allocation14_spill] sm:$0xff] %v7078_v8 }
  0x87   : > { %1436 = vmatpush1.msra.mxu1 %v792_v10  ;;  %1020 = vmatpush2.msra.mxu0 %v952_v11  ;;  %v785_v10 = vld [vmem:[#allocation6 + $0x18] sm:$0xff]  ;;  %v10096_v11 = vrot.slane %v7062_v54, 7 }
  0x88   : > { %5968 = vmatmul.mubr.f32.gmra.mxu1 %v7003_v14  ;;  %1437 = vmatprep.subr.mxu1 %v10114_v0 }
  0x89   : > { %1021 = vmatprep.subr.mxu0 %v10114_v0  ;;  %1438 = vmatpush1.msra.mxu1 %v791_v15  ;;  %v7084_v15 = vld [vmem:[%s6877_s13 + $0x80] sm:$0xff] }
  0x8a   : > { %1022 = vmatpush2.msra.mxu0 %v951_v19  ;;  %1439 = vmatprep.subr.mxu1 %v10114_v0  ;;  %v7087_v19 = vld [vmem:[%s6877_s13 + $0x88] sm:$0xff] }
  0x8b   : > { %1023 = vmatprep.subr.mxu0 %v10114_v0  ;;  %5970 = vmatprep.mubr.f32.mxu1 %v7019_v20 }
  0x8c   : > { %1440 = vmatpush1.msra.mxu1 %v790_v21  ;;  %1024 = vmatpush2.msra.mxu0 %v950_v22  ;;  %v7094_v21 = vsel %vm465_vm0, %v10097_v2, %v480_v4  ;;  %v784_v22 = vld [vmem:[#allocation6 + $0x10] sm:$0xff]  ;;  %v7141_v2 = vld [vmem:[%s6877_s13 + $0xa8] sm:$0xff] }
  0x8d   : > { %5971 = vmatmul.mubr.f32.gmra.mxu1 %v7028_v25  ;;  %1441 = vmatprep.subr.mxu1 %v10114_v0  ;;  %10288 = vst [vmem:[#allocation15_spill] sm:$0xff] %v7094_v21 }
  0x8e   : > { %1025 = vmatprep.subr.mxu0 %v10114_v0  ;;  %1442 = vmatpush1.msra.mxu1 %v789_v26  ;;  %v369_v26 = vrot.slane %v6900_v27, 7 }
  0x8f   : > { %1026 = vmatpush2.msra.mxu0 %v949_v32  ;;  %1443 = vmatprep.subr.mxu1 %v10114_v0  ;;  %v7102_v32 = vsel %vm465_vm0, %v480_v4, %v10096_v11  ;;  %v7138_v11 = vld [vmem:[%s6877_s13 + $0xa0] sm:$0xff] }
  0x90   : > { %1027 = vmatprep.subr.mxu0 %v10114_v0  ;;  %5973 = vmatprep.mubr.f32.mxu1 %v7044_v34  ;;  %10289 = vst [vmem:[#allocation16_spill] sm:$0xff] %v7102_v32  ;;  %v7120_v4 = vsel %vm368_vm1, %v320_v33, %v369_v26  ;;  %v10110_v41 = vrot.slane %v7138_v11, 1 }
  0x91   : > { %1444 = vmatpush1.msra.mxu1 %v788_v38  ;;  %1028 = vmatpush2.msra.mxu0 %v948_v39  ;;  %v10098_v38 = vrot.slane %v7084_v15, 1  ;;  %v482_v39 = vrot.slane %v7087_v19, 1 }
  0x92   : > { %5974 = vmatmul.mubr.f32.gmra.mxu1 %v7053_v45  ;;  %1445 = vmatprep.subr.mxu1 %v10114_v0 }
  0x93   : > { %1029 = vmatprep.subr.mxu0 %v10114_v0  ;;  %1446 = vmatpush1.msra.mxu1 %v787_v49  ;;  %v10099_v49 = vrot.slane %v7087_v19, 7 }
  0x94   : > { %1030 = vmatpush2.msra.mxu0 %v947_v56  ;;  %1447 = vmatprep.subr.mxu1 %v10114_v0  ;;  %v7110_v56 = vld [vmem:[%s6877_s13 + $0x90] sm:$0xff] }
  0x95   : > { %1031 = vmatprep.subr.mxu0 %v10114_v0  ;;  %5976 = vmatprep.mubr.f32.mxu1 %v7069_v60  ;;  %v7134_v33 = vsel %vm465_vm0, %v482_v39, %v10099_v49  ;;  %v381_v60 = vrot.slane %v6984_v6, 7 }
  0x96   : > { %1448 = vmatpush1.msra.mxu1 %v786_v62  ;;  %1032 = vmatpush2.msra.mxu0 %v946_v63  ;;  %v7113_v62 = vld [vmem:[%s6877_s13 + $0x98] sm:$0xff]  ;;  %v943_v63 = vld [vmem:[#allocation6 + $0x200] sm:$0xff]  ;;  %10291 = vst [vmem:[#allocation18_spill] sm:$0xff] %v7134_v33 }
  0x97   : > { %5977 = vmatmul.mubr.f32.gmra.mxu1 %v7078_v8  ;;  %1449 = vmatprep.subr.mxu1 %v10114_v0  ;;  %v10313_v8 = vrot.slane %v6962_v59, 7 }
  0x98   : > { %1033 = vmatprep.subr.mxu0 %v10114_v0  ;;  %1450 = vmatpush1.msra.mxu1 %v785_v10  ;;  %v7126_v10 = vsel %vm465_vm0, %v10098_v38, %v482_v39  ;;  %v813_v38 = vld [vmem:[#allocation6 + $0xf8] sm:$0xff]  ;;  %v7149_v39 = vsel %vm368_vm1, %v369_v26, %v370_v35  ;;  %v10111_v26 = vrot.slane %v7141_v2, 7 }
  0x99   : > { %1034 = vmatpush2.msra.mxu0 %v945_v13  ;;  %1451 = vmatprep.subr.mxu1 %v10114_v0  ;;  %10290 = vst [vmem:[#allocation17_spill] sm:$0xff] %v7126_v10  ;;  %v782_v13 = vld [vmem:[#allocation6] sm:$0xff] }
  0x9a   : > { %1035 = vmatprep.subr.mxu0 %v10114_v0  ;;  %5979 = vmatprep.mubr.f32.mxu1 %v7094_v21  ;;  %v7294_v21 = vld [vmem:[%s6877_s13 + $0xf8] sm:$0xff] }
  0x9b   : > { %1452 = vmatpush1.msra.mxu1 %v784_v22  ;;  %1036 = vmatpush2.msra.mxu0 %v944_v24  ;;  %v10105_v22 = vrot.slane %v7110_v56, 1  ;;  %v484_v24 = vrot.slane %v7113_v62, 1 }
  0x9c   : > { %5980 = vmatmul.mubr.f32.gmra.mxu1 %v7102_v32  ;;  %1453 = vmatprep.subr.mxu1 %v10114_v0  ;;  %v7291_v32 = vld [vmem:[%s6877_s13 + $0xf0] sm:$0xff] }
  0x9d   : > { %1037 = vmatprep.subr.mxu0 %v10114_v0  ;;  %1454 = vmatpush1.msra.mxu1 %v783_v43  ;;  %v10104_v43 = vrot.slane %v7113_v62, 7  ;;  %v7157_v49 = vsel %vm465_vm0, %v10105_v22, %v484_v24  ;;  %v810_v22 = vld [vmem:[#allocation6 + $0xe0] sm:$0xff] }
  0x9e   : > { %1038 = vmatpush2.msra.mxu0 %v943_v63  ;;  %1039 = vmatprep.mubr.f32.mxu0 %v6900_v27  ;;  %v372_v63 = vrot.slane %v6911_v36, 7  ;;  %10292 = vst [vmem:[#allocation19_spill] sm:$0xff] %v7157_v49 }
  0x9f   : > { %1455 = vmatprep.subr.mxu1 %v10114_v0  ;;  %1040 = vmatmul.mubr.f32.vlgmr.msra.gmra.mxu0 %v7120_v4  ;;  %v7165_v35 = vsel %vm465_vm0, %v484_v24, %v10104_v43 }
  0xa0   : > { %5982 = vmatprep.mubr.f32.mxu1 %v7126_v10  ;;  %1456 = vmatpush1.msra.mxu1 %v782_v13  ;;  %v486_v13 = vrot.slane %v7141_v2, 1  ;;  %10293 = vst [vmem:[#allocation20_spill] sm:$0xff] %v7165_v35  ;;  %v7180_v24 = vsel %vm368_vm1, %v321_v42, %v372_v63  ;;  %v804_v10 = vld [vmem:[#allocation6 + $0xb0] sm:$0xff] }
  0xa1   : > { %5983 = vmatmul.mubr.f32.gmra.mxu1 %v7134_v33  ;;  %1457 = vmatprep.subr.mxu1 %v10114_v0  ;;  %v7263_v33 = vld [vmem:[%s6877_s13 + $0xe8] sm:$0xff] }
  0xa2   : > { %1458 = vmatpush2.msra.mxu1 %v813_v38  ;;  %1044 = vmatprep.mubr.f32.mxu0 %v6903_v28  ;;  %v811_v38 = vld [vmem:[#allocation6 + $0xe8] sm:$0xff]  ;;  %v7187_v43 = vsel %vm465_vm0, %v10110_v41, %v486_v13  ;;  %v7195_v42 = vsel %vm465_vm0, %v486_v13, %v10111_v26  ;;  %v809_v41 = vld [vmem:[#allocation6 + $0xd8] sm:$0xff]  ;;  %v7210_v13 = vsel %vm368_vm1, %v372_v63, %v373_v46 }
  0xa3   : > { %1459 = vmatprep.subr.mxu1 %v10114_v0  ;;  %1045 = vmatmul.mubr.f32.gmra.mxu0 %v7149_v39  ;;  %10294 = vst [vmem:[#allocation21_spill] sm:$0xff] %v7187_v43  ;;  %10295 = vst [vmem:[#allocation22_spill] sm:$0xff] %v7195_v42  ;;  %v7218_v26 = vsel %vm465_vm0, %v10118_v16, %v488_v12  ;;  %v10298_v16 = vmov 0.0  }
  0xa4   : > { %5985 = vmatprep.mubr.f32.mxu1 %v7157_v49  ;;  %1460 = vmatpush2.msra.mxu1 %v812_v51  ;;  %v10119_v51 = vrot.slane %v7172_v23, 7  ;;  %10296 = vst [vmem:[#allocation23_spill] sm:$0xff] %v7218_v26  ;;  %v7260_v49 = vld [vmem:[%s6877_s13 + $0xe0] sm:$0xff] }
  0xa5   : > { %5986 = vmatmul.mubr.f32.gmra.mxu1 %v7165_v35  ;;  %1461 = vmatprep.subr.mxu1 %v10114_v0 }
  0xa6   : > { %1462 = vmatpush2.msra.mxu1 %v811_v38  ;;  %1049 = vmatprep.mubr.f32.mxu0 %v6911_v36  ;;  %v375_v38 = vrot.slane %v6933_v47, 7  ;;  %v7226_v46 = vsel %vm465_vm0, %v488_v12, %v10119_v51  ;;  %v10300_v51 = vrot.slane %v7199_v5, 1 }
  0xa7   : > { %1463 = vmatprep.subr.mxu1 %v10114_v0  ;;  %1050 = vmatmul.mubr.f32.gmra.mxu0 %v7180_v24  ;;  %10297 = vst [vmem:[#allocation24_spill] sm:$0xff] %v7226_v46 }
  0xa8   : > { %5988 = vmatprep.mubr.f32.mxu1 %v7187_v43  ;;  %1464 = vmatpush2.msra.mxu1 %v810_v22  ;;  %v490_v22 = vrot.slane %v7202_v1, 1  ;;  %v7241_v12 = vsel %vm368_vm1, %v10299_v53, %v375_v38  ;;  %v806_v43 = vld [vmem:[#allocation6 + $0xc0] sm:$0xff]  ;;  %v10302_v53 = vrot.slane %v7202_v1, 7 }
  0xa9   : > { %5989 = vmatmul.mubr.f32.gmra.mxu1 %v7195_v42  ;;  %1465 = vmatprep.subr.mxu1 %v10114_v0  ;;  %v7230_v0 = vld [vmem:[%s6877_s13 + $0xd0] sm:$0xff]  ;;  %v7233_v42 = vld [vmem:[%s6877_s13 + $0xd8] sm:$0xff] }
  0xaa   : > { %1466 = vmatpush2.msra.mxu1 %v809_v41  ;;  %1054 = vmatprep.mubr.f32.mxu0 %v6914_v37  ;;  %v807_v41 = vld [vmem:[#allocation6 + $0xc8] sm:$0xff]  ;;  %v7248_v63 = vsel %vm465_vm0, %v10300_v51, %v490_v22  ;;  %v10142_v35 = vrot.slane %v7230_v0, 1  ;;  %v805_v51 = vld [vmem:[#allocation6 + $0xb8] sm:$0xff] }
  0xab   : > { %1467 = vmatprep.subr.mxu1 %v10298_v16  ;;  %1055 = vmatmul.mubr.f32.gmra.mxu0 %v7210_v13  ;;  %10301 = vst [vmem:[#allocation25_spill] sm:$0xff] %v7248_v63 }
  0xac   : > { %5991 = vmatprep.mubr.f32.mxu1 %v7218_v26  ;;  %1468 = vmatpush2.msra.mxu1 %v808_v57  ;;  %v492_v26 = vrot.slane %v7233_v42, 1  ;;  %v7256_v57 = vsel %vm465_vm0, %v490_v22, %v10302_v53  ;;  %v378_v53 = vrot.slane %v6959_v58, 7 }
  0xad   : > { %5992 = vmatmul.mubr.f32.gmra.mxu1 %v7226_v46  ;;  %1469 = vmatprep.subr.mxu1 %v10298_v16  ;;  %10303 = vst [vmem:[#allocation26_spill] sm:$0xff] %v7256_v57 }
  0xae   : > { %1470 = vmatpush2.msra.mxu1 %v807_v41  ;;  %1059 = vmatprep.mubr.f32.mxu0 %v6933_v47  ;;  %v10304_v41 = vrot.slane %v6936_v48, 7  ;;  %v7279_v46 = vsel %vm465_vm0, %v10142_v35, %v492_v26  ;;  %v803_v35 = vld [vmem:[#allocation6 + $0xa8] sm:$0xff] }
  0xaf   : > { %1471 = vmatprep.subr.mxu1 %v10298_v16  ;;  %1060 = vmatmul.mubr.f32.gmra.mxu0 %v7241_v12  ;;  %10305 = vst [vmem:[#allocation27_spill] sm:$0xff] %v7279_v46 }
  0xb0   : > { %5994 = vmatprep.mubr.f32.mxu1 %v7248_v63  ;;  %1472 = vmatpush2.msra.mxu1 %v806_v43  ;;  %v7271_v22 = vsel %vm368_vm1, %v375_v38, %v10304_v41  ;;  %v494_v43 = vrot.slane %v7263_v33, 1  ;;  %v10306_v38 = vrot.slane %v7233_v42, 7 }
  0xb1   : > { %5995 = vmatmul.mubr.f32.gmra.mxu1 %v7256_v57  ;;  %1473 = vmatprep.subr.mxu1 %v10298_v16  ;;  %v802_v57 = vld [vmem:[#allocation6 + $0xa0] sm:$0xff] }
  0xb2   : > { %1474 = vmatpush2.msra.mxu1 %v805_v51  ;;  %1064 = vmatprep.mubr.f32.mxu0 %v6936_v48  ;;  %v7287_v41 = vsel %vm465_vm0, %v492_v26, %v10306_v38  ;;  %v10308_v51 = vrot.slane %v6959_v58, 1  ;;  %v10309_v26 = vrot.slane %v7260_v49, 1 }
  0xb3   : > { %10307 = vst [vmem:[#allocation28_spill] sm:$0xff] %v7287_v41  ;;  %1475 = vmatprep.subr.mxu1 %v10298_v16  ;;  %1065 = vmatmul.mubr.f32.gmra.mxu0 %v7271_v22 }
  0xb4   : > { %5997 = vmatprep.mubr.f32.mxu1 %v7279_v46  ;;  %1476 = vmatpush2.msra.mxu1 %v804_v10  ;;  %v7302_v63 = vsel %vm368_vm1, %v10308_v51, %v378_v53  ;;  %v7309_v38 = vsel %vm465_vm0, %v10309_v26, %v494_v43  ;;  %v496_v46 = vrot.slane %v7294_v21, 1  ;;  %v10311_v10 = vrot.slane %v7263_v33, 7  ;;  %v801_v26 = vld [vmem:[#allocation6 + $0x98] sm:$0xff] }
  0xb5   : > { %5998 = vmatmul.mubr.f32.gmra.mxu1 %v7287_v41  ;;  %1477 = vmatprep.subr.mxu1 %v10298_v16  ;;  %10310 = vst [vmem:[#allocation29_spill] sm:$0xff] %v7309_v38  ;;  %v800_v41 = vld [vmem:[#allocation6 + $0x90] sm:$0xff] }
  0xb6   : > { %1478 = vmatpush2.msra.mxu1 %v803_v35  ;;  %1069 = vmatprep.mubr.f32.mxu0 %v6959_v58  ;;  %v7317_v51 = vsel %vm465_vm0, %v494_v43, %v10311_v10  ;;  %v7326_v35 = vsel %vm368_vm1, %v378_v53, %v10313_v8  ;;  %v10314_v43 = vrot.slane %v7291_v32, 1  ;;  %v799_v53 = vld [vmem:[#allocation6 + $0x88] sm:$0xff] }
  0xb7   : > { %10312 = vst [vmem:[#allocation30_spill] sm:$0xff] %v7317_v51  ;;  %1479 = vmatprep.subr.mxu1 %v10298_v16  ;;  %1070 = vmatmul.mubr.f32.gmra.mxu0 %v7302_v63 }
  0xb8   : > { %6000 = vmatprep.mubr.f32.mxu1 %v7309_v38  ;;  %1480 = vmatpush2.msra.mxu1 %v802_v57  ;;  %v7334_v10 = vsel %vm465_vm0, %v10314_v43, %v496_v46  ;;  %v10316_v57 = vrot.slane %v7294_v21, 7  ;;  %v10318_v43 = vrot.slane %v6984_v6, 1 }
  0xb9   : > { %6001 = vmatmul.mubr.f32.gmra.mxu1 %v7317_v51  ;;  %1481 = vmatprep.subr.mxu1 %v10298_v16  ;;  %10315 = vst [vmem:[#allocation31_spill] sm:$0xff] %v7334_v10 }
  0xba   : > { %1482 = vmatpush2.msra.mxu1 %v801_v26  ;;  %1074 = vmatprep.mubr.f32.mxu0 %v6962_v59  ;;  %v7340_v8 = vsel %vm465_vm0, %v496_v46, %v10316_v57  ;;  %v7348_v51 = vsel %vm368_vm1, %v10318_v43, %v381_v60  ;;  %v798_v26 = vld [vmem:[#allocation6 + $0x80] sm:$0xff]  ;;  %v829_v46 = vld [vmem:[#allocation6 + $0x178] sm:$0xff]  ;;  %v384_v43 = vrot.slane %v7009_v17, 7 }
  0xbb   : > { %10317 = vst [vmem:[#allocation32_spill] sm:$0xff] %v7340_v8  ;;  %1483 = vmatprep.subr.mxu1 %v10298_v16  ;;  %1075 = vmatmul.mubr.f32.gmra.mxu0 %v7326_v35 }
  0xbc   : > { %6003 = vmatprep.mubr.f32.mxu1 %v7334_v10  ;;  %1484 = vmatpush2.msra.mxu1 %v800_v41  ;;  %v10319_v41 = vrot.slane %v6987_v7, 7  ;;  %v10321_v10 = vrot.slane %v7012_v18, 7 }
  0xbd   : > { %6004 = vmatmul.mubr.f32.gmra.mxu1 %v7340_v8  ;;  %1485 = vmatprep.subr.mxu1 %v10298_v16  ;;  %v1986_v8 = vld [vmem:[#allocation6 + $0x370] sm:$0xff] }
  0xbe   : > { %1486 = vmatpush2.msra.mxu1 %v799_v53  ;;  %1079 = vmatprep.mubr.f32.mxu0 %v6984_v6  ;;  %v7359_v57 = vsel %vm368_vm1, %v381_v60, %v10319_v41  ;;  %v828_v53 = vld [vmem:[#allocation6 + $0x170] sm:$0xff]  ;;  %v10320_v60 = vrot.slane %v7009_v17, 1  ;;  %v7381_v38 = vsel %vm368_vm1, %v384_v43, %v10321_v10  ;;  %v10322_v10 = vrot.slane %v7034_v30, 1 }
  0xbf   : > { %1487 = vmatprep.subr.mxu1 %v10298_v16  ;;  %1080 = vmatmul.mubr.f32.gmra.mxu0 %v7348_v51 }
  0xc0   : > { %1488 = vmatpush2.msra.mxu1 %v798_v26  ;;  %1489 = vmatprep.mubr.f32.mxu1 %v6911_v36  ;;  %v1987_v26 = vld [vmem:[#allocation6 + $0x378] sm:$0xff]  ;;  %v7371_v41 = vsel %vm368_vm1, %v10320_v60, %v384_v43  ;;  %v1985_v60 = vld [vmem:[#allocation6 + $0x368] sm:$0xff] }
  0xc1   : > { %1490 = vmatmul.mubr.f32.vlgmr.msra.gmra.mxu1 %v7180_v24  ;;  %1084 = vmatprep.mubr.f32.mxu0 %v6987_v7 }
  0xc2   : > { %1494 = vmatprep.mubr.f32.mxu1 %v6914_v37  ;;  %6006 = vmatprep.subr.mxu0 %v829_v46 }
  0xc3   : > { %1085 = vmatmul.mubr.f32.gmra.mxu0 %v7359_v57  ;;  %2020 = vmatprep.subr.mxu1 %v10298_v16 }
  0xc4   : > { %1089 = vmatprep.mubr.f32.mxu0 %v7009_v17  ;;  %6007 = vmatpush3.msra.mxu0 %v829_v46  ;;  %v387_v46 = vrot.slane %v7034_v30, 7 }
  0xc5   : > { %1495 = vmatmul.mubr.f32.gmra.mxu1 %v7210_v13  ;;  %6008 = vmatprep.subr.mxu0 %v828_v53 }
  0xc6   : > { %1499 = vmatprep.mubr.f32.mxu1 %v6900_v27  ;;  %2021 = vmatpush1.msra.mxu1 %v1987_v26  ;;  %v827_v27 = vld [vmem:[#allocation6 + $0x168] sm:$0xff]  ;;  %v1984_v26 = vld [vmem:[#allocation6 + $0x360] sm:$0xff]  ;;  %v7392_v43 = vsel %vm368_vm1, %v10322_v10, %v387_v46  ;;  %v10325_v10 = vrot.slane %v7062_v54, 7 }
  0xc7   : > { %1090 = vmatmul.mubr.f32.gmra.mxu0 %v7371_v41  ;;  %2022 = vmatprep.subr.mxu1 %v10298_v16 }
  0xc8   : > { %1094 = vmatprep.mubr.f32.mxu0 %v7012_v18  ;;  %2023 = vmatpush1.msra.mxu1 %v1986_v8  ;;  %v10323_v8 = vrot.slane %v7037_v31, 7 }
  0xc9   : > { %1500 = vmatmul.mubr.f32.gmra.mxu1 %v7120_v4  ;;  %2024 = vmatprep.subr.mxu1 %v10298_v16  ;;  %v1983_v4 = vld [vmem:[#allocation6 + $0x358] sm:$0xff] }
  0xca   : > { %1504 = vmatprep.mubr.f32.mxu1 %v6903_v28  ;;  %6009 = vmatpush3.msra.mxu0 %v828_v53  ;;  %v826_v28 = vld [vmem:[#allocation6 + $0x160] sm:$0xff]  ;;  %v7403_v53 = vsel %vm368_vm1, %v387_v46, %v10323_v8  ;;  %v393_v8 = vrot.slane %v7084_v15, 7 }
  0xcb   : > { %1095 = vmatmul.mubr.f32.gmra.mxu0 %v7381_v38  ;;  %2025 = vmatpush1.msra.mxu1 %v1985_v60  ;;  %v390_v60 = vrot.slane %v7059_v52, 7 }
  0xcc   : > { %1099 = vmatprep.mubr.f32.mxu0 %v7034_v30  ;;  %2026 = vmatprep.subr.mxu1 %v10298_v16 }
  0xcd   : > { %1505 = vmatmul.mubr.f32.gmra.mxu1 %v7149_v39  ;;  %6010 = vmatprep.subr.mxu0 %v827_v27  ;;  %v10324_v39 = vrot.slane %v7059_v52, 1 }
  0xce   : > { %1509 = vmatprep.mubr.f32.mxu1 %v6911_v36  ;;  %2027 = vmatpush1.msra.mxu1 %v1984_v26  ;;  %v1982_v36 = vld [vmem:[#allocation6 + $0x350] sm:$0xff]  ;;  %v1980_v26 = vld [vmem:[#allocation6 + $0x340] sm:$0xff] }
  0xcf   : > { %1100 = vmatmul.mubr.f32.gmra.mxu0 %v7392_v43  ;;  %2028 = vmatprep.subr.mxu1 %v10298_v16  ;;  %v7414_v46 = vsel %vm368_vm1, %v10324_v39, %v390_v60  ;;  %v1978_v39 = vld [vmem:[#allocation6 + $0x330] sm:$0xff] }
  0xd0   : > { %1104 = vmatprep.mubr.f32.mxu0 %v7037_v31  ;;  %6011 = vmatpush3.msra.mxu0 %v827_v27  ;;  %v1981_v27 = vld [vmem:[#allocation6 + $0x348] sm:$0xff] }
  0xd1   : > { %1510 = vmatmul.mubr.f32.gmra.mxu1 %v7180_v24  ;;  %6012 = vmatprep.subr.mxu0 %v826_v28 }
  0xd2   : > { %1514 = vmatprep.mubr.f32.mxu1 %v6914_v37  ;;  %2029 = vmatpush1.msra.mxu1 %v1983_v4  ;;  %v825_v37 = vld [vmem:[#allocation6 + $0x158] sm:$0xff]  ;;  %v7424_v4 = vsel %vm368_vm1, %v390_v60, %v10325_v10  ;;  %v10326_v60 = vrot.slane %v7084_v15, 1  ;;  %v10328_v10 = vrot.slane %v7110_v56, 1 }
  0xd3   : > { %1105 = vmatmul.mubr.f32.gmra.mxu0 %v7403_v53  ;;  %2030 = vmatprep.subr.mxu1 %v10298_v16 }
  0xd4   : > { %1109 = vmatprep.mubr.f32.mxu0 %v7059_v52  ;;  %2031 = vmatpush1.msra.mxu1 %v1982_v36  ;;  %v7436_v36 = vsel %vm368_vm1, %v10326_v60, %v393_v8  ;;  %v822_v60 = vld [vmem:[#allocation6 + $0x140] sm:$0xff] }
  0xd5   : > { %1515 = vmatmul.mubr.f32.gmra.mxu1 %v7210_v13  ;;  %2032 = vmatprep.subr.mxu1 %v10298_v16 }
  0xd6   : > { %1519 = vmatprep.mubr.f32.mxu1 %v6933_v47  ;;  %6013 = vmatpush3.msra.mxu0 %v826_v28  ;;  %v824_v47 = vld [vmem:[#allocation6 + $0x150] sm:$0xff]  ;;  %v1979_v28 = vld [vmem:[#allocation6 + $0x338] sm:$0xff] }
  0xd7   : > { %1110 = vmatmul.mubr.f32.gmra.mxu0 %v7414_v46  ;;  %2033 = vmatpush1.msra.mxu1 %v1981_v27 }
  0xd8   : > { %1114 = vmatprep.mubr.f32.mxu0 %v7062_v54  ;;  %2034 = vmatprep.subr.mxu1 %v10298_v16 }
  0xd9   : > { %1520 = vmatmul.mubr.f32.gmra.mxu1 %v7241_v12  ;;  %6014 = vmatprep.subr.mxu0 %v825_v37 }
  0xda   : > { %1524 = vmatprep.mubr.f32.mxu1 %v6936_v48  ;;  %2035 = vmatpush1.msra.mxu1 %v1980_v26  ;;  %v10327_v48 = vrot.slane %v7087_v19, 7  ;;  %v1977_v26 = vld [vmem:[#allocation6 + $0x328] sm:$0xff] }
  0xdb   : > { %1115 = vmatmul.mubr.f32.gmra.mxu0 %v7424_v4  ;;  %2036 = vmatprep.subr.mxu1 %v10298_v16 }
  0xdc   : > { %1119 = vmatprep.mubr.f32.mxu0 %v7084_v15  ;;  %6015 = vmatpush3.msra.mxu0 %v825_v37  ;;  %v7446_v27 = vsel %vm368_vm1, %v393_v8, %v10327_v48  ;;  %v396_v37 = vrot.slane %v7110_v56, 7  ;;  %v399_v48 = vrot.slane %v7138_v11, 7 }
  0xdd   : > { %1525 = vmatmul.mubr.f32.gmra.mxu1 %v7271_v22  ;;  %6016 = vmatprep.subr.mxu0 %v824_v47 }
  0xde   : > { %1529 = vmatprep.mubr.f32.mxu1 %v6959_v58  ;;  %2037 = vmatpush1.msra.mxu1 %v1979_v28  ;;  %v823_v58 = vld [vmem:[#allocation6 + $0x148] sm:$0xff]  ;;  %v7457_v8 = vsel %vm368_vm1, %v10328_v10, %v396_v37  ;;  %v1976_v28 = vld [vmem:[#allocation6 + $0x320] sm:$0xff]  ;;  %v10331_v10 = vrot.slane %v7141_v2, 7 }
  0xdf   : > { %1120 = vmatmul.mubr.f32.gmra.mxu0 %v7436_v36  ;;  %2038 = vmatprep.subr.mxu1 %v10298_v16 }
  0xe0   : > { %1124 = vmatprep.mubr.f32.mxu0 %v7087_v19  ;;  %2039 = vmatpush1.msra.mxu1 %v1978_v39 }
  0xe1   : > { %1530 = vmatmul.mubr.f32.gmra.mxu1 %v7302_v63  ;;  %2040 = vmatprep.subr.mxu1 %v10298_v16 }
  0xe2   : > { %1534 = vmatprep.mubr.f32.mxu1 %v6962_v59  ;;  %6017 = vmatpush3.msra.mxu0 %v824_v47  ;;  %v821_v59 = vld [vmem:[#allocation6 + $0x138] sm:$0xff]  ;;  %v10329_v47 = vrot.slane %v7113_v62, 7 }
  0xe3   : > { %1125 = vmatmul.mubr.f32.gmra.mxu0 %v7446_v27  ;;  %2041 = vmatpush1.msra.mxu1 %v1977_v26  ;;  %v1975_v26 = vld [vmem:[#allocation6 + $0x318] sm:$0xff] }
  0xe4   : > { %1129 = vmatprep.mubr.f32.mxu0 %v7110_v56  ;;  %6018 = vmatprep.subr.mxu0 %v823_v58  ;;  %v7467_v39 = vsel %vm368_vm1, %v396_v37, %v10329_v47  ;;  %v10330_v37 = vrot.slane %v7138_v11, 1  ;;  %v817_v47 = vld [vmem:[#allocation6 + $0x118] sm:$0xff] }
  0xe5   : > { %1535 = vmatmul.mubr.f32.gmra.mxu1 %v7326_v35  ;;  %2042 = vmatprep.subr.mxu1 %v10298_v16 }
  0xe6   : > { %1539 = vmatprep.mubr.f32.mxu1 %v6984_v6  ;;  %6019 = vmatpush3.msra.mxu0 %v823_v58  ;;  %v820_v6 = vld [vmem:[#allocation6 + $0x130] sm:$0xff]  ;;  %v7478_v58 = vsel %vm368_vm1, %v10330_v37, %v399_v48  ;;  %v10333_v37 = vrot.slane %v7172_v23, 7 }
  0xe7   : > { %1130 = vmatmul.mubr.f32.gmra.mxu0 %v7457_v8  ;;  %2043 = vmatpush1.msra.mxu1 %v1976_v28  ;;  %v7488_v28 = vsel %vm368_vm1, %v399_v48, %v10331_v10  ;;  %v10332_v48 = vrot.slane %v7169_v29, 1  ;;  %v405_v10 = vrot.slane %v7199_v5, 7 }
  0xe8   : > { %1134 = vmatprep.mubr.f32.mxu0 %v7113_v62  ;;  %6020 = vmatprep.subr.mxu0 %v822_v60 }
  0xe9   : > { %1540 = vmatmul.mubr.f32.gmra.mxu1 %v7348_v51  ;;  %6021 = vmatpush3.msra.mxu0 %v822_v60  ;;  %v402_v60 = vrot.slane %v7169_v29, 7 }
  0xea   : > { %1544 = vmatprep.mubr.f32.mxu1 %v6987_v7  ;;  %6022 = vmatprep.subr.mxu0 %v821_v59  ;;  %v819_v7 = vld [vmem:[#allocation6 + $0x128] sm:$0xff] }
  0xeb   : > { %1135 = vmatmul.mubr.f32.gmra.mxu0 %v7467_v39  ;;  %2044 = vmatprep.subr.mxu1 %v10298_v16 }
  0xec   : > { %1139 = vmatprep.mubr.f32.mxu0 %v7138_v11  ;;  %6023 = vmatpush3.msra.mxu0 %v821_v59  ;;  %v1974_v59 = vld [vmem:[#allocation6 + $0x310] sm:$0xff] }
  0xed   : > { %1545 = vmatmul.mubr.f32.gmra.mxu1 %v7359_v57  ;;  %6024 = vmatprep.subr.mxu0 %v820_v6 }
  0xee   : > { %1549 = vmatprep.mubr.f32.mxu1 %v7009_v17  ;;  %2045 = vmatpush1.msra.mxu1 %v1975_v26  ;;  %v818_v17 = vld [vmem:[#allocation6 + $0x120] sm:$0xff]  ;;  %v7498_v26 = vsel %vm368_vm1, %v10332_v48, %v402_v60 }
  0xef   : > { %1140 = vmatmul.mubr.f32.gmra.mxu0 %v7478_v58  ;;  %2046 = vmatprep.subr.mxu1 %v10298_v16 }
  0xf0   : > { %1144 = vmatprep.mubr.f32.mxu0 %v7141_v2  ;;  %6025 = vmatpush3.msra.mxu0 %v820_v6  ;;  %v1973_v6 = vld [vmem:[#allocation6 + $0x308] sm:$0xff] }
  0xf1   : > { %1550 = vmatmul.mubr.f32.gmra.mxu1 %v7371_v41  ;;  %6026 = vmatprep.subr.mxu0 %v819_v7 }
  0xf2   : > { %1554 = vmatprep.mubr.f32.mxu1 %v7012_v18  ;;  %6027 = vmatpush3.msra.mxu0 %v819_v7  ;;  %v816_v18 = vld [vmem:[#allocation6 + $0x110] sm:$0xff]  ;;  %v7508_v7 = vsel %vm368_vm1, %v402_v60, %v10333_v37 }
  0xf3   : > { %1145 = vmatmul.mubr.f32.gmra.mxu0 %v7488_v28  ;;  %2047 = vmatpush1.msra.mxu1 %v1974_v59  ;;  %v10334_v59 = vrot.slane %v7199_v5, 1  ;;  %v2002_v37 = vld [vmem:[#allocation6 + $0x3f0] sm:$0xff] }
  0xf4   : > { %1149 = vmatprep.mubr.f32.mxu0 %v7169_v29  ;;  %6028 = vmatprep.subr.mxu0 %v818_v17 }
  0xf5   : > { %1555 = vmatmul.mubr.f32.gmra.mxu1 %v7381_v38  ;;  %6029 = vmatpush3.msra.mxu0 %v818_v17  ;;  %v7519_v60 = vsel %vm368_vm1, %v10334_v59, %v405_v10  ;;  %v1972_v17 = vld [vmem:[#allocation6 + $0x300] sm:$0xff] }
  0xf6   : > { %1559 = vmatprep.mubr.f32.mxu1 %v7034_v30  ;;  %6030 = vmatprep.subr.mxu0 %v817_v47  ;;  %v815_v30 = vld [vmem:[#allocation6 + $0x108] sm:$0xff]  ;;  %10335 = vst [vmem:[#allocation33_spill] sm:$0xff] %v7519_v60  ;;  %v2000_v59 = vld [vmem:[#allocation6 + $0x3e0] sm:$0xff] }
  0xf7   : > { %1150 = vmatmul.mubr.f32.gmra.mxu0 %v7498_v26  ;;  %2048 = vmatprep.subr.mxu1 %v10298_v16 }
  0xf8   : > { %1154 = vmatprep.mubr.f32.mxu0 %v7172_v23  ;;  %6031 = vmatpush3.msra.mxu0 %v817_v47  ;;  %v814_v47 = vld [vmem:[#allocation6 + $0x100] sm:$0xff] }
  0xf9   : > { %1560 = vmatmul.mubr.f32.gmra.mxu1 %v7392_v43  ;;  %6032 = vmatprep.subr.mxu0 %v816_v18 }
  0xfa   : > { %1564 = vmatprep.mubr.f32.mxu1 %v7037_v31  ;;  %2049 = vmatpush1.msra.mxu1 %v1973_v6  ;;  %v10336_v31 = vrot.slane %v7202_v1, 7  ;;  %v2003_v6 = vld [vmem:[#allocation6 + $0x3f8] sm:$0xff] }
  0xfb   : > { %1155 = vmatmul.mubr.f32.gmra.mxu0 %v7508_v7  ;;  %2050 = vmatprep.subr.mxu1 %v10298_v16 }
  0xfc   : > { %1159 = vmatprep.mubr.f32.mxu0 %v7199_v5  ;;  %6033 = vmatpush3.msra.mxu0 %v816_v18  ;;  %v7528_v48 = vsel %vm368_vm1, %v405_v10, %v10336_v31  ;;  %v408_v18 = vrot.slane %v7230_v0, 7  ;;  %v10338_v10 = vrot.slane %v7230_v0, 1  ;;  %v411_v31 = vrot.slane %v7260_v49, 7 }
  0xfd   : > { %1565 = vmatmul.mubr.f32.gmra.mxu1 %v7403_v53  ;;  %6034 = vmatprep.subr.mxu0 %v815_v30  ;;  %10337 = vst [vmem:[#allocation34_spill] sm:$0xff] %v7528_v48 }
  0xfe   : > { %1569 = vmatprep.mubr.f32.mxu1 %v7059_v52  ;;  %6035 = vmatpush3.msra.mxu0 %v815_v30  ;;  %v7534_v52 = vld [vmem:[#allocation6 + $0x478] sm:$0xff]  ;;  %v7541_v30 = vsel %vm368_vm1, %v10338_v10, %v408_v18  ;;  %v1997_v10 = vld [vmem:[#allocation6 + $0x3c8] sm:$0xff] }
  0xff   : > { %1160 = vmatmul.mubr.f32.gmra.mxu0 %v7519_v60  ;;  %2051 = vmatpush1.msra.mxu1 %v1972_v17  ;;  %10339 = vst [vmem:[#allocation35_spill] sm:$0xff] %v7541_v30  ;;  %v10340_v17 = vrot.slane %v7233_v42, 7 }
 0x100   : > { %1164 = vmatprep.mubr.f32.mxu0 %v7202_v1  ;;  %6036 = vmatprep.subr.mxu0 %v814_v47 }
 0x101   : > { %1570 = vmatmul.mubr.f32.gmra.mxu1 %v7414_v46  ;;  %6037 = vmatpush3.msra.mxu0 %v814_v47  ;;  %v7553_v47 = vsel %vm368_vm1, %v408_v18, %v10340_v17  ;;  %v10342_v18 = vrot.slane %v7260_v49, 1  ;;  %v414_v17 = vrot.slane %v7291_v32, 7 }
 0x102   : > { %1574 = vmatprep.mubr.f32.mxu1 %v7062_v54  ;;  %2052 = vmatprep.subr.mxu1 %v10298_v16  ;;  %v2001_v54 = vld [vmem:[#allocation6 + $0x3e8] sm:$0xff]  ;;  %10341 = vst [vmem:[#allocation36_spill] sm:$0xff] %v7553_v47 }
 0x103   : > { %1165 = vmatmul.mubr.f32.gmra.mxu0 %v7528_v48  ;;  %2053 = vmatpush2.msra.mxu1 %v2003_v6  ;;  %v1998_v6 = vld [vmem:[#allocation6 + $0x3d0] sm:$0xff] }
 0x104   : > { %1169 = vmatprep.mubr.f32.mxu0 %v7230_v0  ;;  %2054 = vmatprep.subr.mxu1 %v10298_v16 }
 0x105   : > { %1575 = vmatmul.mubr.f32.gmra.mxu1 %v7424_v4  ;;  %6086 = vmatprep.subr.mxu0 %v7534_v52 }
 0x106   : > { %1579 = vmatprep.mubr.f32.mxu1 %v7084_v15  ;;  %2055 = vmatpush2.msra.mxu1 %v2002_v37  ;;  %v1999_v15 = vld [vmem:[#allocation6 + $0x3d8] sm:$0xff]  ;;  %v7565_v37 = vsel %vm368_vm1, %v10342_v18, %v411_v31  ;;  %v1993_v18 = vld [vmem:[#allocation6 + $0x3a8] sm:$0xff] }
 0x107   : > { %1170 = vmatmul.mubr.f32.gmra.mxu0 %v7541_v30  ;;  %2056 = vmatprep.subr.mxu1 %v10298_v16  ;;  %10343 = vst [vmem:[#allocation37_spill] sm:$0xff] %v7565_v37 }
 0x108   : > { %1174 = vmatprep.mubr.f32.mxu0 %v7233_v42  ;;  %2057 = vmatpush2.msra.mxu1 %v2001_v54  ;;  %v10344_v54 = vrot.slane %v7263_v33, 7 }
 0x109   : > { %1580 = vmatmul.mubr.f32.gmra.mxu1 %v7436_v36  ;;  %2058 = vmatprep.subr.mxu1 %v10298_v16 }
 0x10a   : > { %1584 = vmatprep.mubr.f32.mxu1 %v7087_v19  ;;  %2059 = vmatpush2.msra.mxu1 %v2000_v59  ;;  %v1996_v19 = vld [vmem:[#allocation6 + $0x3c0] sm:$0xff]  ;;  %v7576_v59 = vsel %vm368_vm1, %v411_v31, %v10344_v54  ;;  %v10346_v31 = vrot.slane %v7291_v32, 1  ;;  %v2018_v54 = vld [vmem:[#allocation6 + $0x470] sm:$0xff] }
 0x10b   : > { %1175 = vmatmul.mubr.f32.gmra.mxu0 %v7553_v47  ;;  %2060 = vmatprep.subr.mxu1 %v10298_v16  ;;  %10345 = vst [vmem:[#allocation38_spill] sm:$0xff] %v7576_v59 }
 0x10c   : > { %1179 = vmatprep.mubr.f32.mxu0 %v7260_v49  ;;  %2061 = vmatpush2.msra.mxu1 %v1999_v15  ;;  %v1994_v15 = vld [vmem:[#allocation6 + $0x3b0] sm:$0xff] }
 0x10d   : > { %1585 = vmatmul.mubr.f32.gmra.mxu1 %v7446_v27  ;;  %2062 = vmatprep.subr.mxu1 %v10298_v16 }
 0x10e   : > { %1589 = vmatprep.mubr.f32.mxu1 %v7110_v56  ;;  %2063 = vmatpush2.msra.mxu1 %v1998_v6  ;;  %v1995_v56 = vld [vmem:[#allocation6 + $0x3b8] sm:$0xff]  ;;  %v7588_v6 = vsel %vm368_vm1, %v10346_v31, %v414_v17 }
 0x10f   : > { %1180 = vmatmul.mubr.f32.gmra.mxu0 %v7565_v37  ;;  %2064 = vmatprep.subr.mxu1 %v10298_v16  ;;  %10347 = vst [vmem:[#allocation39_spill] sm:$0xff] %v7588_v6 }
 0x110   : > { %1184 = vmatprep.mubr.f32.mxu0 %v7263_v33  ;;  %2065 = vmatpush2.msra.mxu1 %v1997_v10 }
 0x111   : > { %1590 = vmatmul.mubr.f32.gmra.mxu1 %v7457_v8  ;;  %2066 = vmatprep.subr.mxu1 %v10298_v16 }
 0x112   : > { %1594 = vmatprep.mubr.f32.mxu1 %v7113_v62  ;;  %2067 = vmatpush2.msra.mxu1 %v1996_v19  ;;  %v1992_v62 = vld [vmem:[#allocation6 + $0x3a0] sm:$0xff]  ;;  %v1991_v19 = vld [vmem:[#allocation6 + $0x398] sm:$0xff] }
 0x113   : > { %1185 = vmatmul.mubr.f32.gmra.mxu0 %v7576_v59  ;;  %2068 = vmatprep.subr.mxu1 %v10298_v16 }
 0x114   : > { %1189 = vmatprep.mubr.f32.mxu0 %v7291_v32  ;;  %2069 = vmatpush2.msra.mxu1 %v1995_v56  ;;  %v10348_v32 = vrot.slane %v7294_v21, 7  ;;  %v2008_v56 = vld [vmem:[#allocation6 + $0x420] sm:$0xff] }
 0x115   : > { %1595 = vmatmul.mubr.f32.gmra.mxu1 %v7467_v39  ;;  %2070 = vmatprep.subr.mxu1 %v10298_v16 }
 0x116   : > { %1599 = vmatprep.mubr.f32.mxu1 %v7138_v11  ;;  %2071 = vmatpush2.msra.mxu1 %v1994_v15  ;;  %v7599_v10 = vsel %vm368_vm1, %v414_v17, %v10348_v32  ;;  %v1990_v11 = vld [vmem:[#allocation6 + $0x390] sm:$0xff]  ;;  %v2007_v15 = vld [vmem:[#allocation6 + $0x418] sm:$0xff] }
 0x117   : > { %1190 = vmatmul.mubr.f32.gmra.mxu0 %v7588_v6  ;;  %2072 = vmatprep.subr.mxu1 %v10298_v16  ;;  %10349 = vst [vmem:[#allocation40_spill] sm:$0xff] %v7599_v10  ;;  %v2010_v17 = vld [vmem:[#allocation6 + $0x430] sm:$0xff]  ;;  %v10365_v6 = vld [vmem:[#allocation28_spill] sm:$0xff] }
 0x118   : > { %1194 = vmatprep.mubr.f32.mxu0 %v7294_v21  ;;  %2073 = vmatpush2.msra.mxu1 %v1993_v18  ;;  %v1989_v21 = vld [vmem:[#allocation6 + $0x388] sm:$0xff]  ;;  %v2006_v18 = vld [vmem:[#allocation6 + $0x410] sm:$0xff] }
 0x119   : > { %1600 = vmatmul.mubr.f32.gmra.mxu1 %v7478_v58  ;;  %2074 = vmatprep.subr.mxu1 %v10298_v16  ;;  %v10352_v32 = vld [vmem:[#allocation15_spill] sm:$0xff] }
 0x11a   : > { %1604 = vmatprep.mubr.f32.mxu1 %v7141_v2  ;;  %2075 = vmatpush2.msra.mxu1 %v1992_v62  ;;  %v1988_v2 = vld [vmem:[#allocation6 + $0x380] sm:$0xff] }
 0x11b   : > { %1195 = vmatmul.mubr.f32.gmra.mxu0 %v7599_v10  ;;  %2076 = vmatprep.subr.mxu1 %v10298_v16  ;;  %v10364_v10 = vld [vmem:[#allocation27_spill] sm:$0xff] }
 0x11c   : > { %6038 = vmatprep.mubr.f32.mxu0 %v6944_v50  ;;  %2077 = vmatpush2.msra.mxu1 %v1991_v19  ;;  %v2005_v19 = vld [vmem:[#allocation6 + $0x408] sm:$0xff] }
 0x11d   : > { %1605 = vmatmul.mubr.f32.gmra.mxu1 %v7488_v28  ;;  %2078 = vmatprep.subr.mxu1 %v10298_v16 }
 0x11e   : > { %1609 = vmatprep.mubr.f32.mxu1 %v7169_v29  ;;  %2079 = vmatpush2.msra.mxu1 %v1990_v11  ;;  %v2017_v29 = vld [vmem:[#allocation6 + $0x468] sm:$0xff]  ;;  %v6483_v11 = vld [vmem:[%s6877_s13 + $0x10] sm:$0xff] }
 0x11f   : > { %6039 = vmatmul.mubr.f32.vlgmr.msra.gmra.mxu0 %v6953_v55  ;;  %2080 = vmatprep.subr.mxu1 %v10298_v16 }
 0x120   : > { %6041 = vmatprep.mubr.f32.mxu0 %v6921_v40  ;;  %2081 = vmatpush2.msra.mxu1 %v1989_v21  ;;  %v2016_v40 = vld [vmem:[#allocation6 + $0x460] sm:$0xff] }
 0x121   : > { %1610 = vmatmul.mubr.f32.gmra.mxu1 %v7498_v26  ;;  %2082 = vmatprep.subr.mxu1 %v10298_v16 }
 0x122   : > { %1614 = vmatprep.mubr.f32.mxu1 %v7172_v23  ;;  %2083 = vmatpush2.msra.mxu1 %v1988_v2  ;;  %v2014_v23 = vld [vmem:[#allocation6 + $0x450] sm:$0xff]  ;;  %v10353_v2 = vld [vmem:[#allocation16_spill] sm:$0xff] }
 0x123   : > { %6042 = vmatmul.mubr.f32.gmra.mxu0 %v6928_v44  ;;  %3489 = vmatprep.subr.mxu1 %v10298_v16  ;;  %v2015_v44 = vld [vmem:[#allocation6 + $0x458] sm:$0xff]  ;;  %v10363_v16 = vld [vmem:[#allocation26_spill] sm:$0xff] }
 0x124   : > { %6044 = vmatprep.mubr.f32.mxu0 %v6944_v50  ;;  %6087 = vmatpush3.msra.mxu0 %v7534_v52  ;;  %v2012_v52 = vld [vmem:[#allocation6 + $0x440] sm:$0xff] }
 0x125   : > { %1615 = vmatmul.mubr.f32.gmra.mxu1 %v7508_v7  ;;  %6088 = vmatprep.subr.mxu0 %v2018_v54 }
 0x126   : > { %1619 = vmatprep.mubr.f32.mxu1 %v7199_v5  ;;  %6089 = vmatpush3.msra.mxu0 %v2018_v54  ;;  %v2013_v5 = vld [vmem:[#allocation6 + $0x448] sm:$0xff]  ;;  %v10354_v54 = vld [vmem:[#allocation17_spill] sm:$0xff] }
 0x127   : > { %6045 = vmatmul.mubr.f32.gmra.mxu0 %v6953_v55  ;;  %6090 = vmatprep.subr.mxu0 %v2017_v29 }
 0x128   : > { %6047 = vmatprep.mubr.f32.mxu0 %v6969_v61  ;;  %6091 = vmatpush3.msra.mxu0 %v2017_v29 }
 0x129   : > { %1620 = vmatmul.mubr.f32.gmra.mxu1 %v7519_v60  ;;  %6092 = vmatprep.subr.mxu0 %v2016_v40 }
 0x12a   : > { %1624 = vmatprep.mubr.f32.mxu1 %v7202_v1  ;;  %6093 = vmatpush3.msra.mxu0 %v2016_v40  ;;  %v2011_v1 = vld [vmem:[#allocation6 + $0x438] sm:$0xff] }
 0x12b   : > { %6048 = vmatmul.mubr.f32.gmra.mxu0 %v6978_v3  ;;  %6094 = vmatprep.subr.mxu0 %v2015_v44  ;;  %v6484_v40 = vld [vmem:[%s6877_s13 + $0x18] sm:$0xff] }
 0x12c   : > { %6050 = vmatprep.mubr.f32.mxu0 %v6994_v9  ;;  %6095 = vmatpush3.msra.mxu0 %v2015_v44  ;;  %v10355_v44 = vld [vmem:[#allocation18_spill] sm:$0xff] }
 0x12d   : > { %1625 = vmatmul.mubr.f32.gmra.mxu1 %v7528_v48  ;;  %6096 = vmatprep.subr.mxu0 %v2014_v23 }
 0x12e   : > { %1629 = vmatprep.mubr.f32.mxu1 %v7230_v0  ;;  %6097 = vmatpush3.msra.mxu0 %v2014_v23  ;;  %v2009_v0 = vld [vmem:[#allocation6 + $0x428] sm:$0xff] }
 0x12f   : > { %6051 = vmatmul.mubr.f32.gmra.mxu0 %v7003_v14  ;;  %6098 = vmatprep.subr.mxu0 %v2013_v5 }
 0x130   : > { %6053 = vmatprep.mubr.f32.mxu0 %v7019_v20  ;;  %6099 = vmatpush3.msra.mxu0 %v2013_v5  ;;  %v10356_v5 = vld [vmem:[#allocation19_spill] sm:$0xff] }
 0x131   : > { %1630 = vmatmul.mubr.f32.gmra.mxu1 %v7541_v30  ;;  %6100 = vmatprep.subr.mxu0 %v2012_v52 }
 0x132   : > { %1634 = vmatprep.mubr.f32.mxu1 %v7233_v42  ;;  %6101 = vmatpush3.msra.mxu0 %v2012_v52  ;;  %v10350_v42 = vld [vmem:[#allocation13_spill] sm:$0xff] }
 0x133   : > { %6054 = vmatmul.mubr.f32.gmra.mxu0 %v7028_v25  ;;  %6102 = vmatprep.subr.mxu0 %v2011_v1 }
 0x134   : > { %6056 = vmatprep.mubr.f32.mxu0 %v7044_v34  ;;  %6103 = vmatpush3.msra.mxu0 %v2011_v1  ;;  %v6485_v1 = vld [vmem:[%s6877_s13 + $0x20] sm:$0xff] }
 0x135   : > { %1635 = vmatmul.mubr.f32.gmra.mxu1 %v7553_v47  ;;  %6104 = vmatprep.subr.mxu0 %v2010_v17  ;;  %v10367_v47 = vld [vmem:[#allocation30_spill] sm:$0xff] }
 0x136   : > { %1639 = vmatprep.mubr.f32.mxu1 %v7260_v49  ;;  %6105 = vmatpush3.msra.mxu0 %v2010_v17  ;;  %v10351_v49 = vld [vmem:[#allocation14_spill] sm:$0xff]  ;;  %v10357_v17 = vld [vmem:[#allocation20_spill] sm:$0xff] }
 0x137   : > { %6057 = vmatmul.mubr.f32.gmra.mxu0 %v7053_v45  ;;  %6106 = vmatprep.subr.mxu0 %v2009_v0 }
 0x138   : > { %6059 = vmatprep.mubr.f32.mxu0 %v10350_v42  ;;  %6107 = vmatpush3.msra.mxu0 %v2009_v0 }
 0x139   : > { %1640 = vmatmul.mubr.f32.gmra.mxu1 %v7565_v37  ;;  %v7641_v31 = vpop.f32.mrf.mxu1  ;;  %6108 = vmatprep.subr.mxu0 %v2008_v56  ;;  %v6490_v37 = vld [vmem:[%s6877_s13 + $0x48] sm:$0xff] }
 0x13a   : > { %1644 = vmatprep.mubr.f32.mxu1 %v7263_v33  ;;  %6109 = vmatpush3.msra.mxu0 %v2008_v56  ;;  %v2004_v33 = vld [vmem:[#allocation6 + $0x400] sm:$0xff]  ;;  %v6486_v56 = vld [vmem:[%s6877_s13 + $0x28] sm:$0xff] }
 0x13b   : > { %6060 = vmatmul.mubr.f32.gmra.mxu0 %v10351_v49  ;;  %v7645_v62 = vpop.f32.mrf.mxu1  ;;  %6110 = vmatprep.subr.mxu0 %v2007_v15 }
 0x13c   : > { %6062 = vmatprep.mubr.f32.mxu0 %v10352_v32  ;;  %6111 = vmatpush3.msra.mxu0 %v2007_v15 }
 0x13d   : > { %1645 = vmatmul.mubr.f32.gmra.mxu1 %v7576_v59  ;;  %6112 = vmatprep.subr.mxu0 %v2006_v18 }
 0x13e   : > { %2084 = vmatprep.mubr.f32.mxu1 %v6483_v11  ;;  %v7650_v21 = vpop.f32.mrf.mxu1  ;;  %6113 = vmatpush3.msra.mxu0 %v2006_v18  ;;  %v10359_v18 = vld [vmem:[#allocation22_spill] sm:$0xff]  ;;  %v6487_v11 = vld [vmem:[%s6877_s13 + $0x30] sm:$0xff] }
 0x13f   : > { %6063 = vmatmul.mubr.f32.gmra.mxu0 %v10353_v2  ;;  %6114 = vmatprep.subr.mxu0 %v2005_v19 }
 0x140   : > { %6065 = vmatprep.mubr.f32.mxu0 %v10354_v54  ;;  %v7654_v29 = vpop.f32.mrf.mxu1  ;;  %6115 = vmatpush3.msra.mxu0 %v2005_v19 }
 0x141   : > { %2085 = vmatmul.mubr.f32.vlgmr.msra.gmra.mxu1 %v7180_v24  ;;  %6116 = vmatprep.subr.mxu0 %v2004_v33  ;;  %v10358_v24 = vld [vmem:[#allocation21_spill] sm:$0xff] }
 0x142   : > { %2089 = vmatprep.mubr.f32.mxu1 %v6484_v40  ;;  %6117 = vmatpush3.msra.mxu0 %v2004_v33  ;;  %v10361_v33 = vld [vmem:[#allocation24_spill] sm:$0xff] }
 0x143   : > { %6066 = vmatmul.mubr.f32.gmra.mxu0 %v10355_v44  ;;  %v7659_v23 = vpop.f32.mrf.mxu1 }
 0x144   : > { %6068 = vmatprep.mubr.f32.mxu0 %v10356_v5 }
 0x145   : > { %2090 = vmatmul.mubr.f32.gmra.mxu1 %v7210_v13  ;;  %v7663_v52 = vpop.f32.mrf.mxu1  ;;  %v10360_v13 = vld [vmem:[#allocation23_spill] sm:$0xff] }
 0x146   : > { %2094 = vmatprep.mubr.f32.mxu1 %v6485_v1  ;;  %v6488_v1 = vld [vmem:[%s6877_s13 + $0x38] sm:$0xff] }
 0x147   : > { %6069 = vmatmul.mubr.f32.gmra.mxu0 %v10357_v17 }
 0x148   : > { %6071 = vmatprep.mubr.f32.mxu0 %v10358_v24  ;;  %v7668_v0 = vpop.f32.mrf.mxu1 }
 0x149   : > { %2095 = vmatmul.mubr.f32.gmra.mxu1 %v7241_v12  ;;  %v10362_v12 = vld [vmem:[#allocation25_spill] sm:$0xff] }
 0x14a   : > { %2099 = vmatprep.mubr.f32.mxu1 %v6486_v56  ;;  %v7672_v15 = vpop.f32.mrf.mxu1 }
 0x14b   : > { %6072 = vmatmul.mubr.f32.gmra.mxu0 %v10359_v18 }
 0x14c   : > { %6074 = vmatprep.mubr.f32.mxu0 %v10360_v13 }
 0x14d   : > { %2100 = vmatmul.mubr.f32.gmra.mxu1 %v7271_v22  ;;  %v7677_v19 = vpop.f32.mrf.mxu1 }
 0x14e   : > { %2104 = vmatprep.mubr.f32.mxu1 %v6487_v11  ;;  %v6489_v11 = vld [vmem:[%s6877_s13 + $0x40] sm:$0xff] }
 0x14f   : > { %6075 = vmatmul.mubr.f32.gmra.mxu0 %v10361_v33  ;;  %v7681_v40 = vpop.f32.mrf.mxu1 }
 0x150   : > { %6077 = vmatprep.mubr.f32.mxu0 %v10362_v12 }
 0x151   : > { %2105 = vmatmul.mubr.f32.gmra.mxu1 %v7302_v63  ;;  %v10366_v63 = vld [vmem:[#allocation29_spill] sm:$0xff] }
 0x152   : > { %2109 = vmatprep.mubr.f32.mxu1 %v6488_v1  ;;  %v7686_v56 = vpop.f32.mrf.mxu1 }
 0x153   : > { %6078 = vmatmul.mubr.f32.gmra.mxu0 %v10363_v16 }
 0x154   : > { %v7689_v22 = vpop.f32.mrf.mxu1  ;;  %6080 = vmatprep.mubr.f32.mxu0 %v10364_v10 }
 0x155   : > { %2110 = vmatmul.mubr.f32.gmra.mxu1 %v7326_v35 }
 0x156   : > { %2114 = vmatprep.mubr.f32.mxu1 %v6489_v11  ;;  %v6491_v11 = vld [vmem:[%s6877_s13 + $0x50] sm:$0xff] }
 0x157   : > { %6081 = vmatmul.mubr.f32.gmra.mxu0 %v10365_v6  ;;  %v7695_v59 = vpop.f32.mrf.mxu1 }
 0x158   : > { %6083 = vmatprep.mubr.f32.mxu0 %v10366_v63 }
 0x159   : > { %2115 = vmatmul.mubr.f32.gmra.mxu1 %v7348_v51  ;;  %v7699_v1 = vpop.f32.mrf.mxu1 }
 0x15a   : > { %2119 = vmatprep.mubr.f32.mxu1 %v6490_v37 }
 0x15b   : > { %6084 = vmatmul.mubr.f32.gmra.mxu0 %v10367_v47 }
 0x15c   : > { %v7703_v30 = vpop.f32.mrf.mxu1  ;;  %6118 = vmatprep.mubr.f32.mxu0 %v6944_v50 }
 0x15d   : > { %10368 = vst [vmem:[#allocation13_spill] sm:$0xff] %v7703_v30  ;;  %2120 = vmatmul.mubr.f32.gmra.mxu1 %v7359_v57  ;;  %v6492_v30 = vld [vmem:[%s6877_s13 + $0x58] sm:$0xff] }
 0x15e   : > { %v7707_v35 = vpop.f32.mrf.mxu1  ;;  %2124 = vmatprep.mubr.f32.mxu1 %v6491_v11 }
 0x15f   : > { %v1041_v48 = vpop.f32.mrf.mxu0  ;;  %6119 = vmatmul.mubr.f32.vlgmr.msra.gmra.mxu0 %v6953_v55 }
 0x160   : > { %v7712_v51 = vadd.f32 %v7645_v62, %v1041_v48  ;;  %6121 = vmatprep.mubr.f32.mxu0 %v6969_v61 }
 0x161   : > { %v7715_v37 = vpop.f32.mrf.mxu1  ;;  %2125 = vmatmul.mubr.f32.gmra.mxu1 %v7371_v41  ;;  %v1043_v50 = vpop.f32.mrf.mxu0  ;;  %v6493_v41 = vld [vmem:[%s6877_s13 + $0x60] sm:$0xff] }
 0x162   : > { %2129 = vmatprep.mubr.f32.mxu1 %v6492_v30 }
 0x163   : > { %v7719_v57 = vpop.f32.mrf.mxu1  ;;  %v1046_v60 = vpop.f32.mrf.mxu0  ;;  %6122 = vmatmul.mubr.f32.gmra.mxu0 %v6978_v3 }
 0x164   : > { %v7723_v55 = vadd.f32 %v7641_v31, %v1046_v60  ;;  %6124 = vmatprep.mubr.f32.mxu0 %v6994_v9 }
 0x165   : > { %v7726_v48 = vpop.f32.mrf.mxu1  ;;  %2130 = vmatmul.mubr.f32.gmra.mxu1 %v7381_v38  ;;  %v1048_v61 = vpop.f32.mrf.mxu0  ;;  %v6494_v38 = vld [vmem:[%s6877_s13 + $0x68] sm:$0xff] }
 0x166   : > { %2134 = vmatprep.mubr.f32.mxu1 %v6493_v41 }
 0x167   : > { %v7730_v62 = vpop.f32.mrf.mxu1  ;;  %v1051_v30 = vpop.f32.mrf.mxu0  ;;  %6125 = vmatmul.mubr.f32.gmra.mxu0 %v7003_v14 }
 0x168   : > { %v7734_v3 = vadd.f32 %v7654_v29, %v1051_v30  ;;  %6127 = vmatprep.mubr.f32.mxu0 %v7019_v20 }
 0x169   : > { %v7737_v60 = vpop.f32.mrf.mxu1  ;;  %2135 = vmatmul.mubr.f32.gmra.mxu1 %v7392_v43  ;;  %v1053_v9 = vpop.f32.mrf.mxu0  ;;  %v6495_v43 = vld [vmem:[%s6877_s13 + $0x70] sm:$0xff] }
 0x16a   : > { %2139 = vmatprep.mubr.f32.mxu1 %v6494_v38 }
 0x16b   : > { %v7741_v31 = vpop.f32.mrf.mxu1  ;;  %v1056_v11 = vpop.f32.mrf.mxu0  ;;  %6128 = vmatmul.mubr.f32.gmra.mxu0 %v7028_v25 }
 0x16c   : > { %v7745_v14 = vadd.f32 %v7650_v21, %v1056_v11  ;;  %6130 = vmatprep.mubr.f32.mxu0 %v7044_v34 }
 0x16d   : > { %v7748_v29 = vpop.f32.mrf.mxu1  ;;  %2140 = vmatmul.mubr.f32.gmra.mxu1 %v7403_v53  ;;  %v1058_v20 = vpop.f32.mrf.mxu0  ;;  %v6496_v53 = vld [vmem:[%s6877_s13 + $0x78] sm:$0xff] }
 0x16e   : > { %2144 = vmatprep.mubr.f32.mxu1 %v6495_v43 }
 0x16f   : > { %v7752_v50 = vpop.f32.mrf.mxu1  ;;  %v1061_v61 = vpop.f32.mrf.mxu0  ;;  %6131 = vmatmul.mubr.f32.gmra.mxu0 %v7053_v45 }
 0x170   : > { %v7756_v25 = vadd.f32 %v7663_v52, %v1061_v61  ;;  %6133 = vmatprep.mubr.f32.mxu0 %v10350_v42 }
 0x171   : > { %v7759_v21 = vpop.f32.mrf.mxu1  ;;  %2145 = vmatmul.mubr.f32.gmra.mxu1 %v7414_v46  ;;  %v1063_v34 = vpop.f32.mrf.mxu0  ;;  %v6497_v46 = vld [vmem:[%s6877_s13 + $0x80] sm:$0xff] }
 0x172   : > { %2149 = vmatprep.mubr.f32.mxu1 %v6496_v53  ;;  %v6500_v34 = vld [vmem:[%s6877_s13 + $0x98] sm:$0xff] }
 0x173   : > { %v7763_v41 = vpop.f32.mrf.mxu1  ;;  %v1066_v30 = vpop.f32.mrf.mxu0  ;;  %6134 = vmatmul.mubr.f32.gmra.mxu0 %v10351_v49 }
 0x174   : > { %v7767_v45 = vadd.f32 %v7659_v23, %v1066_v30  ;;  %6136 = vmatprep.mubr.f32.mxu0 %v10352_v32 }
 0x175   : > { %v7770_v52 = vpop.f32.mrf.mxu1  ;;  %2150 = vmatmul.mubr.f32.gmra.mxu1 %v7424_v4  ;;  %v1068_v42 = vpop.f32.mrf.mxu0  ;;  %v6498_v4 = vld [vmem:[%s6877_s13 + $0x88] sm:$0xff] }
 0x176   : > { %2154 = vmatprep.mubr.f32.mxu1 %v6497_v46 }
 0x177   : > { %v7774_v9 = vpop.f32.mrf.mxu1  ;;  %v1071_v38 = vpop.f32.mrf.mxu0  ;;  %6137 = vmatmul.mubr.f32.gmra.mxu0 %v10353_v2 }
 0x178   : > { %v7778_v49 = vadd.f32 %v7672_v15, %v1071_v38  ;;  %6139 = vmatprep.mubr.f32.mxu0 %v10354_v54 }
 0x179   : > { %v7781_v23 = vpop.f32.mrf.mxu1  ;;  %2155 = vmatmul.mubr.f32.gmra.mxu1 %v7436_v36  ;;  %v1073_v32 = vpop.f32.mrf.mxu0  ;;  %v6499_v36 = vld [vmem:[%s6877_s13 + $0x90] sm:$0xff] }
 0x17a   : > { %2159 = vmatprep.mubr.f32.mxu1 %v6498_v4 }
 0x17b   : > { %v7785_v11 = vpop.f32.mrf.mxu1  ;;  %v1076_v20 = vpop.f32.mrf.mxu0  ;;  %6140 = vmatmul.mubr.f32.gmra.mxu0 %v10355_v44 }
 0x17c   : > { %v7789_v2 = vadd.f32 %v7668_v0, %v1076_v20  ;;  %6142 = vmatprep.mubr.f32.mxu0 %v10356_v5 }
 0x17d   : > { %v7792_v15 = vpop.f32.mrf.mxu1  ;;  %2160 = vmatmul.mubr.f32.gmra.mxu1 %v7446_v27  ;;  %v1078_v54 = vpop.f32.mrf.mxu0 }
 0x17e   : > { %2164 = vmatprep.mubr.f32.mxu1 %v6499_v36 }
 0x17f   : > { %v7796_v43 = vpop.f32.mrf.mxu1  ;;  %v1081_v61 = vpop.f32.mrf.mxu0  ;;  %6143 = vmatmul.mubr.f32.gmra.mxu0 %v10357_v17 }
 0x180   : > { %v7800_v44 = vadd.f32 %v7681_v40, %v1081_v61  ;;  %6145 = vmatprep.mubr.f32.mxu0 %v10358_v24 }
 0x181   : > { %v1491_v0 = vpop.f32.mrf.mxu1  ;;  %2165 = vmatmul.mubr.f32.gmra.mxu1 %v7457_v8  ;;  %v1083_v5 = vpop.f32.mrf.mxu0 }
 0x182   : > { %v7805_v27 = vadd.f32 %v1491_v0, %v7712_v51  ;;  %2169 = vmatprep.mubr.f32.mxu1 %v6500_v34  ;;  %v6501_v51 = vld [vmem:[%s6877_s13 + $0xa0] sm:$0xff] }
 0x183   : > { %v1493_v53 = vpop.f32.mrf.mxu1  ;;  %v1086_v30 = vpop.f32.mrf.mxu0  ;;  %6146 = vmatmul.mubr.f32.gmra.mxu0 %v10359_v18 }
 0x184   : > { %v7810_v17 = vadd.f32 %v7677_v19, %v1086_v30  ;;  %6148 = vmatprep.mubr.f32.mxu0 %v10360_v13  ;;  %v10370_v53 = vld [vmem:[#allocation32_spill] sm:$0xff] }
 0x185   : > { %v1496_v24 = vpop.f32.mrf.mxu1  ;;  %2170 = vmatmul.mubr.f32.gmra.mxu1 %v7467_v39  ;;  %v1088_v8 = vpop.f32.mrf.mxu0 }
 0x186   : > { %v7815_v40 = vadd.f32 %v1496_v24, %v7723_v55  ;;  %2174 = vmatprep.mubr.f32.mxu1 %v6501_v51  ;;  %v6502_v55 = vld [vmem:[%s6877_s13 + $0xa8] sm:$0xff]  ;;  %v10371_v24 = vld [vmem:[#allocation33_spill] sm:$0xff] }
 0x187   : > { %v1498_v42 = vpop.f32.mrf.mxu1  ;;  %v1091_v46 = vpop.f32.mrf.mxu0  ;;  %6149 = vmatmul.mubr.f32.gmra.mxu0 %v10361_v33 }
 0x188   : > { %v7820_v18 = vadd.f32 %v7689_v22, %v1091_v46  ;;  %6151 = vmatprep.mubr.f32.mxu0 %v10362_v12  ;;  %v10372_v46 = vld [vmem:[#allocation13_spill] sm:$0xff] }
 0x189   : > { %v1501_v13 = vpop.f32.mrf.mxu1  ;;  %2175 = vmatmul.mubr.f32.gmra.mxu1 %v7478_v58  ;;  %v1093_v39 = vpop.f32.mrf.mxu0 }
 0x18a   : > { %v7825_v19 = vadd.f32 %v1501_v13, %v7734_v3  ;;  %2179 = vmatprep.mubr.f32.mxu1 %v6502_v55  ;;  %v6503_v3 = vld [vmem:[%s6877_s13 + $0xb0] sm:$0xff]  ;;  %v10373_v39 = vld [vmem:[#allocation34_spill] sm:$0xff] }
 0x18b   : > { %v1503_v38 = vpop.f32.mrf.mxu1  ;;  %v1096_v32 = vpop.f32.mrf.mxu0  ;;  %6152 = vmatmul.mubr.f32.gmra.mxu0 %v10363_v16 }
 0x18c   : > { %v7830_v33 = vadd.f32 %v7686_v56, %v1096_v32  ;;  %6154 = vmatprep.mubr.f32.mxu0 %v10364_v10  ;;  %v6507_v38 = vld [vmem:[%s6877_s13 + $0xd0] sm:$0xff] }
 0x18d   : > { %v1506_v12 = vpop.f32.mrf.mxu1  ;;  %2180 = vmatmul.mubr.f32.gmra.mxu1 %v7488_v28  ;;  %v1098_v58 = vpop.f32.mrf.mxu0 }
 0x18e   : > { %v7835_v22 = vadd.f32 %v1506_v12, %v7745_v14  ;;  %2184 = vmatprep.mubr.f32.mxu1 %v6503_v3  ;;  %v6504_v14 = vld [vmem:[%s6877_s13 + $0xb8] sm:$0xff] }
 0x18f   : > { %v1508_v4 = vpop.f32.mrf.mxu1  ;;  %v1101_v20 = vpop.f32.mrf.mxu0  ;;  %6155 = vmatmul.mubr.f32.gmra.mxu0 %v10365_v6 }
 0x190   : > { %v7840_v16 = vadd.f32 %v7699_v1, %v1101_v20  ;;  %6157 = vmatprep.mubr.f32.mxu0 %v10366_v63  ;;  %v10369_v1 = vld [vmem:[#allocation31_spill] sm:$0xff]  ;;  %v6508_v20 = vld [vmem:[%s6877_s13 + $0xd8] sm:$0xff] }
 0x191   : > { %v1511_v10 = vpop.f32.mrf.mxu1  ;;  %2185 = vmatmul.mubr.f32.gmra.mxu1 %v7498_v26  ;;  %v1103_v28 = vpop.f32.mrf.mxu0 }
 0x192   : > { %v7845_v56 = vadd.f32 %v1511_v10, %v7756_v25  ;;  %2189 = vmatprep.mubr.f32.mxu1 %v6504_v14  ;;  %v6505_v25 = vld [vmem:[%s6877_s13 + $0xc0] sm:$0xff]  ;;  %v10375_v14 = vld [vmem:[#allocation36_spill] sm:$0xff] }
 0x193   : > { %v1513_v54 = vpop.f32.mrf.mxu1  ;;  %v1106_v36 = vpop.f32.mrf.mxu0  ;;  %6158 = vmatmul.mubr.f32.gmra.mxu0 %v10367_v47 }
 0x194   : > { %v7850_v6 = vadd.f32 %v7695_v59, %v1106_v36  ;;  %6160 = vmatprep.mubr.f32.mxu0 %v10369_v1 }
 0x195   : > { %v1516_v61 = vpop.f32.mrf.mxu1  ;;  %2190 = vmatmul.mubr.f32.gmra.mxu1 %v7508_v7  ;;  %v1108_v26 = vpop.f32.mrf.mxu0 }
 0x196   : > { %v7855_v0 = vadd.f32 %v1516_v61, %v7767_v45  ;;  %2194 = vmatprep.mubr.f32.mxu1 %v6505_v25  ;;  %v6506_v45 = vld [vmem:[%s6877_s13 + $0xc8] sm:$0xff]  ;;  %v10376_v25 = vld [vmem:[#allocation37_spill] sm:$0xff] }
 0x197   : > { %v1518_v5 = vpop.f32.mrf.mxu1  ;;  %v1111_v34 = vpop.f32.mrf.mxu0  ;;  %6161 = vmatmul.mubr.f32.gmra.mxu0 %v10370_v53  ;;  %v6510_v53 = vld [vmem:[%s6877_s13 + $0xe8] sm:$0xff] }
 0x198   : > { %v7860_v30 = vadd.f32 %v7707_v35, %v1111_v34  ;;  %6163 = vmatprep.mubr.f32.mxu0 %v10366_v63 }
 0x199   : > { %v1521_v59 = vpop.f32.mrf.mxu1  ;;  %2195 = vmatmul.mubr.f32.gmra.mxu1 %v10371_v24  ;;  %v1113_v7 = vpop.f32.mrf.mxu0 }
 0x19a   : > { %v7865_v8 = vadd.f32 %v1521_v59, %v7778_v49  ;;  %2199 = vmatprep.mubr.f32.mxu1 %v6506_v45  ;;  %v10377_v7 = vld [vmem:[#allocation38_spill] sm:$0xff] }
 0x19b   : > { %v1523_v51 = vpop.f32.mrf.mxu1  ;;  %v1116_v42 = vpop.f32.mrf.mxu0  ;;  %6164 = vmatmul.mubr.f32.gmra.mxu0 %v10367_v47  ;;  %v10374_v47 = vld [vmem:[#allocation35_spill] sm:$0xff] }
 0x19c   : > { %v7870_v35 = vadd.f32 %v10372_v46, %v1116_v42 }
 0x19d   : > { %v1526_v13 = vpop.f32.mrf.mxu1  ;;  %2200 = vmatmul.mubr.f32.gmra.mxu1 %v10373_v39  ;;  %v1118_v63 = vpop.f32.mrf.mxu0  ;;  %v10378_v39 = vld [vmem:[#allocation39_spill] sm:$0xff] }
 0x19e   : > { %v7874_v55 = vadd.f32 %v1526_v13, %v7789_v2  ;;  %2204 = vmatprep.mubr.f32.mxu1 %v6507_v38  ;;  %v6512_v38 = vld [vmem:[%s6877_s13 + $0xf8] sm:$0xff] }
 0x19f   : > { %v1528_v49 = vpop.f32.mrf.mxu1  ;;  %v1121_v32 = vpop.f32.mrf.mxu0 }
 0x1a0   : > { %v7878_v12 = vadd.f32 %v7719_v57, %v1121_v32  ;;  %v6509_v57 = vld [vmem:[%s6877_s13 + $0xe0] sm:$0xff] }
 0x1a1   : > { %v1531_v58 = vpop.f32.mrf.mxu1  ;;  %2205 = vmatmul.mubr.f32.gmra.mxu1 %v10374_v47  ;;  %v1123_v3 = vpop.f32.mrf.mxu0  ;;  %v10379_v47 = vld [vmem:[#allocation40_spill] sm:$0xff] }
 0x1a2   : > { %v7882_v4 = vadd.f32 %v1531_v58, %v7800_v44  ;;  %2209 = vmatprep.mubr.f32.mxu1 %v6508_v20 }
 0x1a3   : > { %v1533_v2 = vpop.f32.mrf.mxu1  ;;  %v1126_v10 = vpop.f32.mrf.mxu0 }
 0x1a5   : > { %v1536_v28 = vpop.f32.mrf.mxu1  ;;  %2210 = vmatmul.mubr.f32.gmra.mxu1 %v10375_v14  ;;  %v1128_v54 = vpop.f32.mrf.mxu0 }
 0x1a6   : > { %v7887_v36 = vadd.f32 %v1536_v28, %v7810_v17  ;;  %2214 = vmatprep.mubr.f32.mxu1 %v6509_v57 }
 0x1a7   : > { %v1538_v1 = vpop.f32.mrf.mxu1  ;;  %v1131_v61 = vpop.f32.mrf.mxu0 }
 0x1a8   : > { %v1357_v44 = vadd.f32 %v7730_v62, %v1131_v61  ;;  %v6511_v62 = vld [vmem:[%s6877_s13 + $0xf0] sm:$0xff] }
 0x1a9   : > { %v1541_v26 = vpop.f32.mrf.mxu1  ;;  %2215 = vmatmul.mubr.f32.gmra.mxu1 %v10376_v25  ;;  %v1133_v5 = vpop.f32.mrf.mxu0 }
 0x1aa   : > { %v7893_v34 = vadd.f32 %v1541_v26, %v7820_v18  ;;  %2219 = vmatprep.mubr.f32.mxu1 %v6510_v53 }
 0x1ab   : > { %v1543_v59 = vpop.f32.mrf.mxu1  ;;  %v1136_v17 = vpop.f32.mrf.mxu0 }
 0x1ad   : > { %v1546_v24 = vpop.f32.mrf.mxu1  ;;  %2220 = vmatmul.mubr.f32.gmra.mxu1 %v10377_v7  ;;  %v1138_v45 = vpop.f32.mrf.mxu0 }
 0x1ae   : > { %v7898_v51 = vadd.f32 %v1546_v24, %v7830_v33  ;;  %2224 = vmatprep.mubr.f32.mxu1 %v6511_v62 }
 0x1af   : > { %v1548_v42 = vpop.f32.mrf.mxu1  ;;  %v1141_v46 = vpop.f32.mrf.mxu0 }
 0x1b1   : > { %v1551_v13 = vpop.f32.mrf.mxu1  ;;  %2225 = vmatmul.mubr.f32.gmra.mxu1 %v10378_v39  ;;  %v1143_v18 = vpop.f32.mrf.mxu0 }
 0x1b2   : > { %v7903_v63 = vadd.f32 %v1551_v13, %v7840_v16  ;;  %2229 = vmatprep.mubr.f32.mxu1 %v6512_v38 }
 0x1b3   : > { %v1553_v49 = vpop.f32.mrf.mxu1  ;;  %v1146_v32 = vpop.f32.mrf.mxu0 }
 0x1b5   : > { %v1556_v58 = vpop.f32.mrf.mxu1  ;;  %2230 = vmatmul.mubr.f32.gmra.mxu1 %v10379_v47  ;;  %v1148_v33 = vpop.f32.mrf.mxu0  ;;  %v1362_v47 = vadd.f32 %v7726_v48, %v1136_v17 }
 0x1b6   : > { %v7908_v3 = vadd.f32 %v1556_v58, %v7850_v6  ;;  %2234 = vmatprep.mubr.f32.mxu1 %v6509_v57 }
 0x1b7   : > { %v1558_v20 = vpop.f32.mrf.mxu1  ;;  %v1151_v2 = vpop.f32.mrf.mxu0 }
 0x1b9   : > { %v1561_v28 = vpop.f32.mrf.mxu1  ;;  %2235 = vmatmul.mubr.f32.gmra.mxu1 %v10376_v25  ;;  %v1153_v14 = vpop.f32.mrf.mxu0 }
 0x1ba   : > { %v7912_v16 = vadd.f32 %v1561_v28, %v7860_v30  ;;  %2239 = vmatprep.mubr.f32.mxu1 %v6510_v53  ;;  %v1352_v53 = vadd.f32 %v7715_v37, %v1126_v10  ;;  %v1367_v10 = vadd.f32 %v7741_v31, %v1141_v46 }
 0x1bb   : > { %v1563_v54 = vpop.f32.mrf.mxu1  ;;  %v1156_v1 = vpop.f32.mrf.mxu0 }
 0x1bd   : > { %v1566_v61 = vpop.f32.mrf.mxu1  ;;  %2240 = vmatmul.mubr.f32.gmra.mxu1 %v10377_v7  ;;  %v1158_v26 = vpop.f32.mrf.mxu0 }
 0x1be   : > { %v7916_v6 = vadd.f32 %v1566_v61, %v7870_v35 }
 0x1bf   : > { %v1568_v57 = vpop.f32.mrf.mxu1  ;;  %v1161_v5 = vpop.f32.mrf.mxu0 }
 0x1c1   : > { %v1571_v59 = vpop.f32.mrf.mxu1  ;;  %v1163_v24 = vpop.f32.mrf.mxu0 }
 0x1c2   : > { %v7919_v25 = vadd.f32 %v1571_v59, %v7878_v12 }
 0x1c3   : > { %v1573_v45 = vpop.f32.mrf.mxu1  ;;  %v1166_v30 = vpop.f32.mrf.mxu0 }
 0x1c5   : > { %v1576_v62 = vpop.f32.mrf.mxu1  ;;  %v1168_v42 = vpop.f32.mrf.mxu0 }
 0x1c6   : > { %v7922_v13 = vadd.f32 %v1576_v62, %v1352_v53  ;;  %v1377_v53 = vadd.f32 %v7752_v50, %v1151_v2 }
 0x1c7   : > { %v1578_v7 = vpop.f32.mrf.mxu1  ;;  %v1171_v39 = vpop.f32.mrf.mxu0 }
 0x1c9   : > { %v1581_v18 = vpop.f32.mrf.mxu1  ;;  %v1173_v35 = vpop.f32.mrf.mxu0 }
 0x1ca   : > { %v7924_v38 = vadd.f32 %v1581_v18, %v1357_v44  ;;  %v1372_v44 = vadd.f32 %v7737_v60, %v1146_v32  ;;  %v1382_v18 = vadd.f32 %v7748_v29, %v1156_v1  ;;  %v1392_v29 = vadd.f32 %v7759_v21, %v1166_v30 }
 0x1cb   : > { %v1583_v49 = vpop.f32.mrf.mxu1  ;;  %v1176_v58 = vpop.f32.mrf.mxu0 }
 0x1cc   : > { %v1402_v30 = vadd.f32 %v7770_v52, %v1176_v58 }
 0x1cd   : > { %v1586_v12 = vpop.f32.mrf.mxu1  ;;  %v1178_v33 = vpop.f32.mrf.mxu0 }
 0x1ce   : > { %v7927_v20 = vadd.f32 %v1586_v12, %v1362_v47  ;;  %v1387_v12 = vadd.f32 %v7763_v41, %v1161_v5  ;;  %v1397_v5 = vadd.f32 %v7774_v9, %v1171_v39 }
 0x1cf   : > { %v1588_v28 = vpop.f32.mrf.mxu1  ;;  %v1181_v37 = vpop.f32.mrf.mxu0 }
 0x1d1   : > { %v1591_v14 = vpop.f32.mrf.mxu1  ;;  %v1183_v54 = vpop.f32.mrf.mxu0 }
 0x1d2   : > { %v7930_v61 = vadd.f32 %v1591_v14, %v1367_v10 }
 0x1d3   : > { %v1593_v26 = vpop.f32.mrf.mxu1  ;;  %v1186_v57 = vpop.f32.mrf.mxu0 }
 0x1d5   : > { %v1596_v59 = vpop.f32.mrf.mxu1  ;;  %v1188_v24 = vpop.f32.mrf.mxu0 }
 0x1d6   : > { %v7933_v45 = vadd.f32 %v1596_v59, %v1372_v44 }
 0x1d7   : > { %v1598_v48 = vpop.f32.mrf.mxu1  ;;  %v1191_v17 = vpop.f32.mrf.mxu0 }
 0x1d9   : > { %v1601_v62 = vpop.f32.mrf.mxu1  ;;  %v1193_v42 = vpop.f32.mrf.mxu0 }
 0x1da   : > { %v7936_v7 = vadd.f32 %v1601_v62, %v1377_v53 }
 0x1db   : > { %v1603_v31 = vpop.f32.mrf.mxu1  ;;  %v1196_v46 = vpop.f32.mrf.mxu0 }
 0x1dc   : > { %10380 = vst [vmem:[#allocation14_spill] sm:$0xff] %v7936_v7 }
 0x1dd   : > { %v1606_v35 = vpop.f32.mrf.mxu1  ;;  %v1198_v49 = vpop.f32.mrf.mxu0 }
 0x1de   : > { %v7939_v47 = vadd.f32 %v1606_v35, %v1382_v18 }
 0x1df   : > { %v1608_v60 = vpop.f32.mrf.mxu1  ;;  %v6040_v32 = vpop.f32.mrf.mxu0 }
 0x1e0   : > { %v7943_v33 = vadd.f32 %v6040_v32, %v7815_v40 }
 0x1e1   : > { %v1611_v50 = vpop.f32.mrf.mxu1  ;;  %v7945_v2 = vpop.f32.mrf.mxu0 }
 0x1e2   : > { %v7947_v28 = vadd.f32 %v1611_v50, %v1387_v12 }
 0x1e3   : > { %v1613_v10 = vpop.f32.mrf.mxu1  ;;  %v6043_v14 = vpop.f32.mrf.mxu0 }
 0x1e4   : > { %v7951_v1 = vadd.f32 %v6043_v14, %v7835_v22 }
 0x1e5   : > { %v1616_v54 = vpop.f32.mrf.mxu1  ;;  %v7953_v26 = vpop.f32.mrf.mxu0 }
 0x1e6   : > { %v7955_v44 = vadd.f32 %v1616_v54, %v1392_v29 }
 0x1e7   : > { %v1618_v41 = vpop.f32.mrf.mxu1  ;;  %v6046_v40 = vpop.f32.mrf.mxu0 }
 0x1e8   : > { %v7959_v59 = vadd.f32 %v6046_v40, %v7855_v0  ;;  %v1407_v0 = vadd.f32 %v7785_v11, %v1181_v37 }
 0x1e9   : > { %v1621_v24 = vpop.f32.mrf.mxu1  ;;  %v7961_v48 = vpop.f32.mrf.mxu0 }
 0x1ea   : > { %v7963_v53 = vadd.f32 %v1621_v24, %v1397_v5 }
 0x1eb   : > { %v1623_v21 = vpop.f32.mrf.mxu1  ;;  %v6049_v22 = vpop.f32.mrf.mxu0 }
 0x1ec   : > { %v7967_v62 = vadd.f32 %v6049_v22, %v7874_v55  ;;  %v1412_v55 = vadd.f32 %v7781_v23, %v1186_v57 }
 0x1ed   : > { %v1626_v42 = vpop.f32.mrf.mxu1  ;;  %v7969_v31 = vpop.f32.mrf.mxu0 }
 0x1ee   : > { %v1627_v18 = vadd.f32 %v1626_v42, %v1402_v30 }
 0x1ef   : > { %v1628_v9 = vpop.f32.mrf.mxu1  ;;  %v6052_v39 = vpop.f32.mrf.mxu0 }
 0x1f0   : > { %v7973_v35 = vadd.f32 %v6052_v39, %v7887_v36  ;;  %v1417_v36 = vadd.f32 %v7796_v43, %v1191_v17 }
 0x1f1   : > { %v1631_v49 = vpop.f32.mrf.mxu1  ;;  %v7975_v60 = vpop.f32.mrf.mxu0 }
 0x1f2   : > { %v7977_v32 = vadd.f32 %v1631_v49, %v1407_v0 }
 0x1f3   : > { %v1633_v52 = vpop.f32.mrf.mxu1  ;;  %v6055_v58 = vpop.f32.mrf.mxu0 }
 0x1f4   : > { %v7981_v12 = vadd.f32 %v6055_v58, %v7898_v51  ;;  %v1422_v51 = vadd.f32 %v7792_v15, %v1196_v46 }
 0x1f5   : > { %v1636_v50 = vpop.f32.mrf.mxu1  ;;  %v7983_v10 = vpop.f32.mrf.mxu0 }
 0x1f6   : > { %v1637_v14 = vadd.f32 %v1636_v50, %v1412_v55 }
 0x1f7   : > { %v1638_v11 = vpop.f32.mrf.mxu1  ;;  %v6058_v37 = vpop.f32.mrf.mxu0 }
 0x1f8   : > { %v7987_v29 = vadd.f32 %v6058_v37, %v7908_v3 }
 0x1f9   : > { %v1641_v54 = vpop.f32.mrf.mxu1  ;;  %v7989_v41 = vpop.f32.mrf.mxu0 }
 0x1fa   : > { %v7991_v40 = vadd.f32 %v1641_v54, %v1417_v36 }
 0x1fb   : > { %v1643_v23 = vpop.f32.mrf.mxu1  ;;  %v6061_v57 = vpop.f32.mrf.mxu0 }
 0x1fc   : > { %v7995_v5 = vadd.f32 %v6061_v57, %v7916_v6 }
 0x1fd   : > { %v1646_v24 = vpop.f32.mrf.mxu1  ;;  %v7997_v21 = vpop.f32.mrf.mxu0 }
 0x1fe   : > { %v1647_v22 = vadd.f32 %v1646_v24, %v1422_v51 }
 0x1ff   : > { %v1648_v43 = vpop.f32.mrf.mxu1  ;;  %v6064_v17 = vpop.f32.mrf.mxu0 }
 0x200   : > { %v8000_v3 = vadd.f32 %v6064_v17, %v7922_v13 }
 0x201   : > { %v2086_v30 = vpop.f32.mrf.mxu1  ;;  %v8002_v42 = vpop.f32.mrf.mxu0 }
 0x203   : > { %v2088_v9 = vpop.f32.mrf.mxu1  ;;  %v6067_v39 = vpop.f32.mrf.mxu0 }
 0x204   : > { %v8005_v0 = vadd.f32 %v6067_v39, %v7927_v20 }
 0x205   : > { %v2091_v15 = vpop.f32.mrf.mxu1  ;;  %v8007_v6 = vpop.f32.mrf.mxu0 }
 0x207   : > { %v2093_v46 = vpop.f32.mrf.mxu1  ;;  %v6070_v49 = vpop.f32.mrf.mxu0 }
 0x208   : > { %v8010_v52 = vadd.f32 %v6070_v49, %v7933_v45 }
 0x209   : > { %v2096_v58 = vpop.f32.mrf.mxu1  ;;  %v8012_v55 = vpop.f32.mrf.mxu0 }
 0x20a   : > { %10381 = vst [vmem:[#allocation15_spill] sm:$0xff] %v8010_v52 }
 0x20b   : > { %v2098_v13 = vpop.f32.mrf.mxu1  ;;  %v6073_v50 = vpop.f32.mrf.mxu0 }
 0x20c   : > { %v8015_v11 = vadd.f32 %v6073_v50, %v7939_v47 }
 0x20d   : > { %v2101_v37 = vpop.f32.mrf.mxu1  ;;  %v8017_v36 = vpop.f32.mrf.mxu0 }
 0x20e   : > { %10382 = vst [vmem:[#allocation16_spill] sm:$0xff] %v8015_v11  ;;  %10383 = vst [vmem:[#allocation17_spill] sm:$0xff] %v8017_v36 }
 0x20f   : > { %v2103_v20 = vpop.f32.mrf.mxu1  ;;  %v6076_v54 = vpop.f32.mrf.mxu0 }
 0x210   : > { %v8020_v23 = vadd.f32 %v6076_v54, %v7955_v44 }
 0x211   : > { %v2106_v57 = vpop.f32.mrf.mxu1  ;;  %v8022_v51 = vpop.f32.mrf.mxu0 }
 0x212   : > { %10384 = vst [vmem:[#allocation18_spill] sm:$0xff] %v8020_v23  ;;  %10385 = vst [vmem:[#allocation19_spill] sm:$0xff] %v8022_v51  ;;  %v10168_v23 = vmov 1.0  }
 0x213   : > { %v2108_v45 = vpop.f32.mrf.mxu1  ;;  %v6079_v24 = vpop.f32.mrf.mxu0  ;;  %2605 = vmatprep.mubr.f32.mxu0 %v10168_v23 }
 0x214   : > { %v8024_v43 = vadd.f32 %v6079_v24, %v1627_v18 }
 0x215   : > { %v2111_v17 = vpop.f32.mrf.mxu1  ;;  %v8026_v9 = vpop.f32.mrf.mxu0 }
 0x217   : > { %v2113_v47 = vpop.f32.mrf.mxu1  ;;  %v6082_v39 = vpop.f32.mrf.mxu0 }
 0x218   : > { %v8028_v46 = vadd.f32 %v6082_v39, %v1637_v14  ;;  %v1717_v47 = vadd.f32 %v7945_v2, %v7805_v27 }
 0x219   : > { %v2116_v49 = vpop.f32.mrf.mxu1  ;;  %v8030_v13 = vpop.f32.mrf.mxu0 }
 0x21b   : > { %v2118_v50 = vpop.f32.mrf.mxu1  ;;  %v6085_v44 = vpop.f32.mrf.mxu0 }
 0x21c   : > { %v8032_v20 = vadd.f32 %v6085_v44, %v1647_v22 }
 0x21d   : > { %v2121_v54 = vpop.f32.mrf.mxu1  ;;  %v8034_v52 = vpop.f32.mrf.mxu0 }
 0x21f   : > { %v2123_v45 = vpop.f32.mrf.mxu1  ;;  %v6120_v18 = vpop.f32.mrf.mxu0 }
 0x220   : > { %v2317_v24 = vadd.f32 %v6120_v18, %v2091_v15  ;;  %v1727_v15 = vadd.f32 %v7953_v26, %v7825_v19 }
 0x221   : > { %v2126_v11 = vpop.f32.mrf.mxu1  ;;  %v2311_v36 = vpop.f32.mrf.mxu0 }
 0x222   : > { %v8039_v14 = vadd.f32 %v2317_v24, %v7943_v33  ;;  %v2312_v39 = vadd.f32 %v2311_v36, %v2086_v30 }
 0x223   : > { %v2128_v7 = vpop.f32.mrf.mxu1  ;;  %v6123_v50 = vpop.f32.mrf.mxu0 }
 0x224   : > { %v8042_v22 = vadd.f32 %v2312_v39, %v1717_v47  ;;  %v2327_v44 = vadd.f32 %v6123_v50, %v2101_v37  ;;  %v1737_v47 = vadd.f32 %v7961_v48, %v7845_v56 }
 0x225   : > { %v2131_v45 = vpop.f32.mrf.mxu1  ;;  %v2321_v51 = vpop.f32.mrf.mxu0 }
 0x226   : > { %v8047_v18 = vadd.f32 %v2327_v44, %v7951_v1  ;;  %v2322_v27 = vadd.f32 %v2321_v51, %v2096_v58  ;;  %v1747_v44 = vadd.f32 %v7969_v31, %v7865_v8 }
 0x227   : > { %v2133_v33 = vpop.f32.mrf.mxu1  ;;  %v6126_v2 = vpop.f32.mrf.mxu0 }
 0x228   : > { %v8049_v30 = vadd.f32 %v2322_v27, %v1727_v15  ;;  %v2337_v7 = vadd.f32 %v6126_v2, %v2111_v17  ;;  %v1757_v2 = vadd.f32 %v7975_v60, %v7882_v4 }
 0x229   : > { %v2136_v36 = vpop.f32.mrf.mxu1  ;;  %v2331_v24 = vpop.f32.mrf.mxu0 }
 0x22a   : > { %v8054_v37 = vadd.f32 %v2337_v7, %v7959_v59  ;;  %v2332_v39 = vadd.f32 %v2331_v24, %v2106_v57 }
 0x22b   : > { %v2138_v50 = vpop.f32.mrf.mxu1  ;;  %v6129_v19 = vpop.f32.mrf.mxu0 }
 0x22c   : > { %v8056_v26 = vadd.f32 %v2332_v39, %v1737_v47  ;;  %v2347_v1 = vadd.f32 %v6129_v19, %v2121_v54  ;;  %v1767_v39 = vadd.f32 %v7983_v10, %v7893_v34 }
 0x22d   : > { %v2141_v58 = vpop.f32.mrf.mxu1  ;;  %v2341_v51 = vpop.f32.mrf.mxu0 }
 0x22e   : > { %v8061_v17 = vadd.f32 %v2347_v1, %v7967_v62  ;;  %v2342_v15 = vadd.f32 %v2341_v51, %v2116_v49  ;;  %v1777_v51 = vadd.f32 %v7989_v41, %v7903_v63 }
 0x22f   : > { %v2143_v27 = vpop.f32.mrf.mxu1  ;;  %v6132_v56 = vpop.f32.mrf.mxu0 }
 0x230   : > { %v8063_v48 = vadd.f32 %v2342_v15, %v1747_v44  ;;  %v2357_v59 = vadd.f32 %v6132_v56, %v2131_v45  ;;  %v1787_v27 = vadd.f32 %v7997_v21, %v7912_v16  ;;  %v3456_v16 = vld [vmem:[#allocation8 + $0x1f8] sm:$0xff]  ;;  %v3455_v21 = vld [vmem:[#allocation8 + $0x1f0] sm:$0xff] }
 0x231   : > { %v2146_v57 = vpop.f32.mrf.mxu1  ;;  %v2351_v33 = vpop.f32.mrf.mxu0  ;;  %3490 = vmatpush1.msra.mxu1 %v3456_v16 }
 0x232   : > { %v8068_v54 = vadd.f32 %v2357_v59, %v7973_v35  ;;  %v2352_v7 = vadd.f32 %v2351_v33, %v2126_v11 }
 0x233   : > { %v2148_v24 = vpop.f32.mrf.mxu1  ;;  %v6135_v8 = vpop.f32.mrf.mxu0 }
 0x234   : > { %v8070_v31 = vadd.f32 %v2352_v7, %v1757_v2  ;;  %v2367_v62 = vadd.f32 %v6135_v8, %v2141_v58 }
 0x235   : > { %v2151_v49 = vpop.f32.mrf.mxu1  ;;  %v2361_v47 = vpop.f32.mrf.mxu0 }
 0x236   : > { %v8075_v45 = vadd.f32 %v2367_v62, %v7981_v12  ;;  %v2362_v50 = vadd.f32 %v2361_v47, %v2136_v36 }
 0x237   : > { %v2153_v19 = vpop.f32.mrf.mxu1  ;;  %v6138_v4 = vpop.f32.mrf.mxu0 }
 0x238   : > { %v8077_v60 = vadd.f32 %v2362_v50, %v1767_v39  ;;  %v2377_v35 = vadd.f32 %v6138_v4, %v2151_v49  ;;  %v10386_v50 = vmov 0.0  }
 0x239   : > { %v2156_v11 = vpop.f32.mrf.mxu1  ;;  %v2371_v1 = vpop.f32.mrf.mxu0  ;;  %3491 = vmatprep.subr.mxu1 %v10386_v50 }
 0x23a   : > { %v8082_v58 = vadd.f32 %v2377_v35, %v7987_v29  ;;  %v2372_v44 = vadd.f32 %v2371_v1, %v2146_v57  ;;  %v1797_v57 = vadd.f32 %v8002_v42, %v7919_v25  ;;  %3492 = vmatpush1.msra.mxu1 %v3455_v21  ;;  %v3453_v25 = vld [vmem:[#allocation8 + $0x1e0] sm:$0xff] }
 0x23b   : > { %v2158_v15 = vpop.f32.mrf.mxu1  ;;  %v6141_v34 = vpop.f32.mrf.mxu0  ;;  %3493 = vmatprep.subr.mxu1 %v10386_v50 }
 0x23c   : > { %v8084_v10 = vadd.f32 %v2372_v44, %v1777_v51  ;;  %v3452_v51 = vld [vmem:[#allocation8 + $0x1d8] sm:$0xff] }
 0x23d   : > { %v2161_v12 = vpop.f32.mrf.mxu1  ;;  %v2381_v36 = vpop.f32.mrf.mxu0 }
 0x23e   : > { %v2387_v56 = vadd.f32 %v6141_v34, %v2161_v12  ;;  %v2382_v59 = vadd.f32 %v2381_v36, %v2156_v11  ;;  %v1807_v11 = vadd.f32 %v8007_v6, %v7924_v38 }
 0x23f   : > { %v2163_v33 = vpop.f32.mrf.mxu1  ;;  %v6144_v2 = vpop.f32.mrf.mxu0 }
 0x240   : > { %v8089_v7 = vadd.f32 %v2387_v56, %v7995_v5  ;;  %v8091_v63 = vadd.f32 %v2382_v59, %v1787_v27  ;;  %v3454_v5 = vld [vmem:[#allocation8 + $0x1e8] sm:$0xff]  ;;  %v1817_v33 = vadd.f32 %v8012_v55, %v7930_v61 }
 0x241   : > { %v2166_v29 = vpop.f32.mrf.mxu1  ;;  %v2391_v41 = vpop.f32.mrf.mxu0  ;;  %3494 = vmatpush1.msra.mxu1 %v3454_v5  ;;  %v3450_v27 = vld [vmem:[#allocation8 + $0x1c8] sm:$0xff] }
 0x242   : > { %v2392_v24 = vadd.f32 %v2391_v41, %v2166_v29  ;;  %3495 = vmatprep.subr.mxu1 %v10386_v50 }
 0x243   : > { %v2168_v8 = vpop.f32.mrf.mxu1  ;;  %v6147_v62 = vpop.f32.mrf.mxu0  ;;  %3496 = vmatpush1.msra.mxu1 %v3453_v25 }
 0x244   : > { %v8095_v49 = vadd.f32 %v2392_v24, %v1797_v57  ;;  %3497 = vmatprep.subr.mxu1 %v10386_v50 }
 0x245   : > { %v2171_v47 = vpop.f32.mrf.mxu1  ;;  %v2401_v4 = vpop.f32.mrf.mxu0  ;;  %3498 = vmatpush1.msra.mxu1 %v3452_v51 }
 0x246   : > { %v2397_v39 = vadd.f32 %v6144_v2, %v2171_v47  ;;  %3499 = vmatprep.subr.mxu1 %v10386_v50 }
 0x247   : > { %v2173_v19 = vpop.f32.mrf.mxu1  ;;  %v8105_v15 = vpop.f32.mrf.mxu0 }
 0x248   : > { %v8099_v35 = vadd.f32 %v2397_v39, %v8000_v3  ;;  %v3451_v3 = vld [vmem:[#allocation8 + $0x1d0] sm:$0xff] }
 0x249   : > { %v2176_v42 = vpop.f32.mrf.mxu1  ;;  %v2411_v6 = vpop.f32.mrf.mxu0  ;;  %3500 = vmatpush1.msra.mxu1 %v3451_v3 }
 0x24a   : > { %v2402_v1 = vadd.f32 %v2401_v4, %v2176_v42  ;;  %3501 = vmatprep.subr.mxu1 %v10386_v50 }
 0x24b   : > { %v2178_v44 = vpop.f32.mrf.mxu1  ;;  %3502 = vmatpush1.msra.mxu1 %v3450_v27 }
 0x24c   : > { %v8107_v34 = vadd.f32 %v2402_v1, %v1807_v11  ;;  %3503 = vmatprep.subr.mxu1 %v10386_v50 }
 0x24d   : > { %v2181_v12 = vpop.f32.mrf.mxu1 }
 0x24e   : > { %v2407_v36 = vadd.f32 %v6147_v62, %v2181_v12  ;;  %v6153_v62 = vpop.f32.mrf.mxu0 }
 0x24f   : > { %v2183_v38 = vpop.f32.mrf.mxu1 }
 0x250   : > { %v8112_v56 = vadd.f32 %v2407_v36, %v8005_v0  ;;  %v8124_v47 = vpop.f32.mrf.mxu0 }
 0x251   : > { %v2186_v59 = vpop.f32.mrf.mxu1 }
 0x252   : > { %v2412_v2 = vadd.f32 %v2411_v6, %v2186_v59  ;;  %v6156_v5 = vpop.f32.mrf.mxu0 }
 0x253   : > { %v2188_v29 = vpop.f32.mrf.mxu1 }
 0x254   : > { %v8118_v41 = vadd.f32 %v2412_v2, %v1817_v33  ;;  %v2431_v19 = vpop.f32.mrf.mxu0 }
 0x255   : > { %v8120_v57 = vpop.f32.mrf.mxu1 }
 0x256   : > { %v6159_v25 = vpop.f32.mrf.mxu0 }
 0x257   : > { %v2193_v24 = vpop.f32.mrf.mxu1 }
 0x258   : > { %v2441_v1 = vpop.f32.mrf.mxu0 }
 0x259   : > { %v8122_v8 = vpop.f32.mrf.mxu1 }
 0x25a   : > { %v6162_v3 = vpop.f32.mrf.mxu0 }
 0x25b   : > { %v2198_v0 = vpop.f32.mrf.mxu1 }
 0x25c   : > { %v2451_v36 = vpop.f32.mrf.mxu0 }
 0x25d   : > { %v2201_v16 = vpop.f32.mrf.mxu1 }
 0x25e   : > { %v6165_v6 = vpop.f32.mrf.mxu0 }
 0x25f   : > { %v2203_v21 = vpop.f32.mrf.mxu1 }
 0x260   : > { %v2461_v2 = vpop.f32.mrf.mxu0  ;;  %v1867_v21 = vadd.f32 %v8034_v52, %v7991_v40 }
 0x261   : > { %v2206_v39 = vpop.f32.mrf.mxu1 }
 0x263   : > { %v2208_v61 = vpop.f32.mrf.mxu1 }
 0x265   : > { %v2211_v55 = vpop.f32.mrf.mxu1 }
 0x267   : > { %v2213_v4 = vpop.f32.mrf.mxu1 }
 0x269   : > { %v2216_v42 = vpop.f32.mrf.mxu1 }
 0x26b   : > { %v2218_v11 = vpop.f32.mrf.mxu1 }
 0x26d   : > { %v2221_v51 = vpop.f32.mrf.mxu1 }
 0x26f   : > { %v2223_v44 = vpop.f32.mrf.mxu1 }
 0x271   : > { %v2226_v12 = vpop.f32.mrf.mxu1 }
 0x272   : > { %v2452_v23 = vadd.f32 %v2451_v36, %v2226_v12  ;;  %v2417_v36 = vadd.f32 %v8105_v15, %v8120_v57  ;;  %v10392_v57 = vld [vmem:[#allocation15_spill] sm:$0xff] }
 0x273   : > { %v2228_v27 = vpop.f32.mrf.mxu1 }
 0x274   : > { %v8132_v27 = vld [vmem:[%s10087_s2] ss:$0 sm:$0xff] }
 0x275   : > { %v2231_v38 = vpop.f32.mrf.mxu1  ;;  %v8142_v52 = vadd.f32 %v8132_v27, %v8089_v7  ;;  %v8217_v15 = vadd.f32 %v8132_v27, %v8070_v31 }
 0x276   : > { %v2457_v61 = vadd.f32 %v6162_v3, %v2231_v38  ;;  %v2442_v3 = vadd.f32 %v2441_v1, %v2216_v42  ;;  %v10391_v38 = vld [vmem:[#allocation16_spill] sm:$0xff] }
 0x277   : > { %v2233_v59 = vpop.f32.mrf.mxu1 }
 0x278   : > { %v1857_v59 = vadd.f32 %v8030_v13, %v7977_v32  ;;  %v8150_v32 = vadd.f32 %v8132_v27, %v8091_v63  ;;  %v2437_v13 = vadd.f32 %v6156_v5, %v2211_v55  ;;  %v2432_v63 = vadd.f32 %v2431_v19, %v2206_v39  ;;  %v10388_v55 = vld [vmem:[#allocation18_spill] sm:$0xff] }
 0x279   : > { %v2236_v33 = vpop.f32.mrf.mxu1  ;;  %v8183_v19 = vadd.f32 %v8132_v27, %v8075_v45  ;;  %v10390_v45 = vld [vmem:[#allocation17_spill] sm:$0xff] }
 0x27a   : > { %v2462_v24 = vadd.f32 %v2461_v2, %v2236_v33  ;;  %v2447_v33 = vadd.f32 %v6159_v25, %v2221_v51  ;;  %v2499_v2 = vadd.f32 %v2457_v61, %v8028_v46  ;;  %v1847_v46 = vadd.f32 %v8026_v9, %v7963_v53  ;;  %v10387_v9 = vld [vmem:[#allocation19_spill] sm:$0xff] }
 0x27b   : > { %v2238_v29 = vpop.f32.mrf.mxu1  ;;  %v1837_v5 = vadd.f32 %v10387_v9, %v7947_v28  ;;  %v2495_v42 = vadd.f32 %v2437_v13, %v10388_v55  ;;  %v2619_v9 = vmul.f32 %v8217_v15, %v8217_v15 }
 0x27c   : > { %v2500_v44 = vadd.f32 %v2462_v24, %v1867_v21  ;;  %v2497_v7 = vadd.f32 %v2447_v33, %v8024_v43  ;;  %v2496_v25 = vadd.f32 %v2442_v3, %v1847_v46  ;;  %v8171_v43 = vadd.f32 %v8132_v27, %v8084_v10 }
 0x27d   : > { %v2241_v0 = vpop.f32.mrf.mxu1  ;;  %v2422_v10 = vadd.f32 %v8124_v47, %v8122_v8  ;;  %v2494_v1 = vadd.f32 %v2432_v63, %v1837_v5  ;;  %v8204_v47 = vadd.f32 %v8132_v27, %v2495_v42  ;;  %v2491_v24 = vadd.f32 %v2417_v36, %v10392_v57 }
 0x27e   : > { %v2467_v4 = vadd.f32 %v6165_v6, %v2241_v0  ;;  %v8146_v12 = vadd.f32 %v8132_v27, %v2500_v44  ;;  %v8179_v39 = vadd.f32 %v8132_v27, %v2497_v7  ;;  %v8190_v28 = vadd.f32 %v8132_v27, %v2496_v25 }
 0x27f   : > { %v2243_v11 = vpop.f32.mrf.mxu1  ;;  %v8208_v6 = vadd.f32 %v8132_v27, %v8068_v54  ;;  %v8213_v29 = vadd.f32 %v8132_v27, %v2494_v1  ;;  %v8227_v0 = vadd.f32 %v8132_v27, %v8061_v17  ;;  %v8236_v21 = vadd.f32 %v8132_v27, %v8063_v48 }
 0x280   : > { %v2501_v50 = vadd.f32 %v2467_v4, %v8032_v20  ;;  %v2498_v20 = vadd.f32 %v2452_v23, %v1857_v59  ;;  %v8158_v23 = vadd.f32 %v8132_v27, %v2499_v2  ;;  %v8241_v61 = vadd.f32 %v8132_v27, %v2491_v24 }
 0x281   : > { %v8245_v17 = vadd.f32 %v8132_v27, %v8054_v37  ;;  %v8251_v4 = vadd.f32 %v8132_v27, %v8118_v41  ;;  %v8255_v48 = vadd.f32 %v8132_v27, %v8056_v26  ;;  %v8261_v37 = vadd.f32 %v8132_v27, %v8112_v56 }
 0x282   : > { %v8138_v40 = vadd.f32 %v8132_v27, %v2501_v50  ;;  %v8162_v50 = vadd.f32 %v8132_v27, %v8082_v58  ;;  %v8167_v53 = vadd.f32 %v8132_v27, %v2498_v20  ;;  %v2427_v58 = vadd.f32 %v6153_v62, %v2201_v16  ;;  %v10389_v16 = vld [vmem:[#allocation14_spill] sm:$0xff] }
 0x283   : > { %v8194_v62 = vadd.f32 %v8132_v27, %v8077_v60  ;;  %v1827_v51 = vadd.f32 %v10390_v45, %v10389_v16  ;;  %v8265_v11 = vadd.f32 %v8132_v27, %v8047_v18  ;;  %v8271_v26 = vadd.f32 %v8132_v27, %v8107_v34 }
 0x284   : > { %5642 = vmatprep.subr.mxu0 %v8138_v40  ;;  %v2493_v8 = vadd.f32 %v2427_v58, %v10391_v38  ;;  %v8275_v41 = vadd.f32 %v8132_v27, %v8049_v30  ;;  %v8281_v18 = vadd.f32 %v8132_v27, %v8099_v35  ;;  %v8285_v56 = vadd.f32 %v8132_v27, %v8039_v14 }
 0x285   : > { %5643 = vmatpush3.msra.mxu0 %v8142_v52  ;;  %v2492_v60 = vadd.f32 %v2422_v10, %v1827_v51  ;;  %v8291_v30 = vadd.f32 %v8132_v27, %v8095_v49  ;;  %v8295_v34 = vadd.f32 %v8132_v27, %v8042_v22  ;;  %v2642_v14 = vmul.f32 %v8138_v40, %v8138_v40 }
 0x286   : > { %5644 = vmatprep.subr.mxu0 %v8146_v12  ;;  %v8223_v54 = vadd.f32 %v8132_v27, %v2493_v8  ;;  %v2626_v35 = vmul.f32 %v8142_v52, %v8142_v52  ;;  %v10393_v44 = vmov 1.0   ;;  %v2641_v49 = vmul.f32 %v8146_v12, %v8146_v12 }
 0x287   : > { %5645 = vmatpush3.msra.mxu0 %v8150_v32  ;;  %v8232_v31 = vadd.f32 %v8132_v27, %v2492_v60  ;;  %v2625_v22 = vmul.f32 %v8150_v32, %v8150_v32  ;;  %v2640_v27 = vmul.f32 %v8158_v23, %v8158_v23  ;;  %v2624_v59 = vmul.f32 %v8162_v50, %v8162_v50 }
 0x288   : > { %5646 = vmatprep.subr.mxu0 %v8158_v23  ;;  %v2639_v33 = vmul.f32 %v8167_v53, %v8167_v53  ;;  %v2623_v2 = vmul.f32 %v8171_v43, %v8171_v43  ;;  %v2638_v3 = vmul.f32 %v8179_v39, %v8179_v39  ;;  %v2622_v20 = vmul.f32 %v8183_v19, %v8183_v19 }
 0x289   : > { %5647 = vmatpush3.msra.mxu0 %v8162_v50  ;;  %v2637_v46 = vmul.f32 %v8190_v28, %v8190_v28  ;;  %v2621_v13 = vmul.f32 %v8194_v62, %v8194_v62  ;;  %v2636_v7 = vmul.f32 %v8204_v47, %v8204_v47  ;;  %v2620_v63 = vmul.f32 %v8208_v6, %v8208_v6 }
 0x28a   : > { %5648 = vmatprep.subr.mxu0 %v8167_v53  ;;  %v2635_v25 = vmul.f32 %v8213_v29, %v8213_v29  ;;  %v2634_v5 = vmul.f32 %v8223_v54, %v8223_v54  ;;  %v2618_v58 = vmul.f32 %v8227_v0, %v8227_v0  ;;  %v2633_v55 = vmul.f32 %v8232_v31, %v8232_v31 }
 0x28b   : > { %5649 = vmatpush3.msra.mxu0 %v8171_v43  ;;  %v2617_v42 = vmul.f32 %v8236_v21, %v8236_v21  ;;  %v2632_v10 = vmul.f32 %v8241_v61, %v8241_v61  ;;  %v2616_v1 = vmul.f32 %v8245_v17, %v8245_v17  ;;  %v2631_v16 = vmul.f32 %v8251_v4, %v8251_v4 }
 0x28c   : > { %5650 = vmatprep.subr.mxu0 %v8179_v39  ;;  %v2615_v45 = vmul.f32 %v8255_v48, %v8255_v48  ;;  %v2630_v51 = vmul.f32 %v8261_v37, %v8261_v37  ;;  %v2614_v36 = vmul.f32 %v8265_v11, %v8265_v11  ;;  %v2629_v38 = vmul.f32 %v8271_v26, %v8271_v26 }
 0x28d   : > { %5651 = vmatpush3.msra.mxu0 %v8183_v19  ;;  %v2613_v8 = vmul.f32 %v8275_v41, %v8275_v41  ;;  %v2628_v60 = vmul.f32 %v8281_v18, %v8281_v18  ;;  %v2612_v57 = vmul.f32 %v8285_v56, %v8285_v56  ;;  %v2627_v24 = vmul.f32 %v8291_v30, %v8291_v30 }
 0x28e   : > { %5652 = vmatprep.subr.mxu0 %v8190_v28 }
 0x28f   : > { %5653 = vmatpush3.msra.mxu0 %v8194_v62 }
 0x290   : > { %5654 = vmatprep.subr.mxu0 %v8204_v47 }
 0x291   : > { %5655 = vmatpush3.msra.mxu0 %v8208_v6 }
 0x292   : > { %5656 = vmatprep.subr.mxu0 %v8213_v29 }
 0x293   : > { %5657 = vmatpush3.msra.mxu0 %v8217_v15 }
 0x294   : > { %5658 = vmatprep.subr.mxu0 %v8223_v54 }
 0x295   : > { %5659 = vmatpush3.msra.mxu0 %v8227_v0 }
 0x296   : > { %5660 = vmatprep.subr.mxu0 %v8232_v31 }
 0x297   : > { %5661 = vmatpush3.msra.mxu0 %v8236_v21 }
 0x298   : > { %5662 = vmatprep.subr.mxu0 %v8241_v61 }
 0x299   : > { %5663 = vmatpush3.msra.mxu0 %v8245_v17 }
 0x29a   : > { %5664 = vmatprep.subr.mxu0 %v8251_v4 }
 0x29b   : > { %5665 = vmatpush3.msra.mxu0 %v8255_v48 }
 0x29c   : > { %5666 = vmatprep.subr.mxu0 %v8261_v37 }
 0x29d   : > { %5667 = vmatpush3.msra.mxu0 %v8265_v11 }
 0x29e   : > { %5668 = vmatprep.subr.mxu0 %v8271_v26 }
 0x29f   : > { %5669 = vmatpush3.msra.mxu0 %v8275_v41 }
 0x2a0   : > { %5670 = vmatprep.subr.mxu0 %v8281_v18 }
 0x2a1   : > { %5671 = vmatpush3.msra.mxu0 %v8285_v56 }
 0x2a2   : > { %5672 = vmatprep.subr.mxu0 %v8291_v30 }
 0x2a3   : > { %5673 = vmatpush3.msra.mxu0 %v8295_v34 }
 0x2a4   : > { %2606 = vmatmul.mubr.f32.vlgmr.msra.gmra.mxu0 %v10393_v44  ;;  %5677 = vmatprep.subr.mxu0 %v2642_v14  ;;  %v2611_v14 = vmul.f32 %v8295_v34, %v8295_v34 }
 0x2a5   : > { %5678 = vmatpush3.msra.mxu0 %v2626_v35  ;;  %2707 = vmatprep.mubr.f32.mxu0 %v10393_v44  ;;  %v3449_v35 = vld [vmem:[#allocation8 + $0x1c0] sm:$0xff] }
 0x2a6   : > { %5679 = vmatprep.subr.mxu0 %v2641_v49  ;;  %3504 = vmatpush1.msra.mxu1 %v3449_v35  ;;  %v10394_v49 = vmov 0.0   ;;  %v3478_v35 = vld [vmem:[#allocation8 + $0x2a8] sm:$0xff] }
 0x2a7   : > { %5680 = vmatpush3.msra.mxu0 %v2625_v22  ;;  %3505 = vmatprep.subr.mxu1 %v10394_v49  ;;  %v3448_v22 = vld [vmem:[#allocation8 + $0x1b8] sm:$0xff] }
 0x2a8   : > { %5681 = vmatprep.subr.mxu0 %v2640_v27  ;;  %v3447_v27 = vld [vmem:[#allocation8 + $0x1b0] sm:$0xff]  ;;  %3506 = vmatpush1.msra.mxu1 %v3448_v22  ;;  %v3461_v22 = vld [vmem:[#allocation8 + $0x220] sm:$0xff] }
 0x2a9   : > { %5682 = vmatpush3.msra.mxu0 %v2624_v59  ;;  %3507 = vmatprep.subr.mxu1 %v10394_v49  ;;  %v3446_v59 = vld [vmem:[#allocation8 + $0x1a8] sm:$0xff] }
 0x2aa   : > { %5683 = vmatprep.subr.mxu0 %v2639_v33  ;;  %3508 = vmatpush1.msra.mxu1 %v3447_v27  ;;  %v3445_v33 = vld [vmem:[#allocation8 + $0x1a0] sm:$0xff] }
 0x2ab   : > { %5684 = vmatpush3.msra.mxu0 %v2623_v2  ;;  %3509 = vmatprep.subr.mxu1 %v10394_v49  ;;  %v3444_v2 = vld [vmem:[#allocation8 + $0x198] sm:$0xff]  ;;  %v3477_v27 = vld [vmem:[#allocation8 + $0x2a0] sm:$0xff] }
 0x2ac   : > { %5685 = vmatprep.subr.mxu0 %v2638_v3  ;;  %3510 = vmatpush1.msra.mxu1 %v3446_v59  ;;  %v3443_v3 = vld [vmem:[#allocation8 + $0x190] sm:$0xff]  ;;  %v3460_v59 = vld [vmem:[#allocation8 + $0x218] sm:$0xff] }
 0x2ad   : > { %5686 = vmatpush3.msra.mxu0 %v2622_v20  ;;  %3511 = vmatprep.subr.mxu1 %v10394_v49  ;;  %v3442_v20 = vld [vmem:[#allocation8 + $0x188] sm:$0xff] }
 0x2ae   : > { %5687 = vmatprep.subr.mxu0 %v2637_v46  ;;  %3512 = vmatpush1.msra.mxu1 %v3445_v33  ;;  %v3441_v46 = vld [vmem:[#allocation8 + $0x180] sm:$0xff]  ;;  %v3476_v33 = vld [vmem:[#allocation8 + $0x298] sm:$0xff] }
 0x2af   : > { %5688 = vmatpush3.msra.mxu0 %v2621_v13  ;;  %3513 = vmatprep.subr.mxu1 %v10394_v49  ;;  %v3472_v13 = vld [vmem:[#allocation8 + $0x278] sm:$0xff] }
 0x2b0   : > { %5689 = vmatprep.subr.mxu0 %v2636_v7  ;;  %3514 = vmatpush1.msra.mxu1 %v3444_v2  ;;  %v3488_v7 = vld [vmem:[#allocation8 + $0x2f8] sm:$0xff]  ;;  %v3459_v2 = vld [vmem:[#allocation8 + $0x210] sm:$0xff] }
 0x2b1   : > { %5690 = vmatpush3.msra.mxu0 %v2620_v63  ;;  %3515 = vmatprep.subr.mxu1 %v10394_v49  ;;  %v3471_v63 = vld [vmem:[#allocation8 + $0x270] sm:$0xff] }
 0x2b2   : > { %5691 = vmatprep.subr.mxu0 %v2635_v25  ;;  %3516 = vmatpush1.msra.mxu1 %v3443_v3  ;;  %v3487_v25 = vld [vmem:[#allocation8 + $0x2f0] sm:$0xff] }
 0x2b3   : > { %5692 = vmatpush3.msra.mxu0 %v2619_v9  ;;  %3517 = vmatprep.subr.mxu1 %v10394_v49  ;;  %v3470_v9 = vld [vmem:[#allocation8 + $0x268] sm:$0xff]  ;;  %v3475_v3 = vld [vmem:[#allocation8 + $0x290] sm:$0xff] }
 0x2b4   : > { %5693 = vmatprep.subr.mxu0 %v2634_v5  ;;  %3518 = vmatpush1.msra.mxu1 %v3442_v20  ;;  %v3486_v5 = vld [vmem:[#allocation8 + $0x2e8] sm:$0xff] }
 0x2b5   : > { %5694 = vmatpush3.msra.mxu0 %v2618_v58  ;;  %3519 = vmatprep.subr.mxu1 %v10394_v49  ;;  %v3469_v58 = vld [vmem:[#allocation8 + $0x260] sm:$0xff]  ;;  %v3458_v20 = vld [vmem:[#allocation8 + $0x208] sm:$0xff] }
 0x2b6   : > { %5695 = vmatprep.subr.mxu0 %v2633_v55  ;;  %3520 = vmatpush1.msra.mxu1 %v3441_v46  ;;  %v3485_v55 = vld [vmem:[#allocation8 + $0x2e0] sm:$0xff]  ;;  %v3474_v46 = vld [vmem:[#allocation8 + $0x288] sm:$0xff] }
 0x2b7   : > { %5696 = vmatpush3.msra.mxu0 %v2617_v42  ;;  %3521 = vmatprep.subr.mxu1 %v10394_v49  ;;  %v3468_v42 = vld [vmem:[#allocation8 + $0x258] sm:$0xff] }
 0x2b8   : > { %5697 = vmatprep.subr.mxu0 %v2632_v10  ;;  %3522 = vmatpush2.msra.mxu1 %v3472_v13  ;;  %v3484_v10 = vld [vmem:[#allocation8 + $0x2d8] sm:$0xff]  ;;  %v3457_v13 = vld [vmem:[#allocation8 + $0x200] sm:$0xff] }
 0x2b9   : > { %5698 = vmatpush3.msra.mxu0 %v2616_v1  ;;  %3523 = vmatprep.subr.mxu1 %v10394_v49  ;;  %v3467_v1 = vld [vmem:[#allocation8 + $0x250] sm:$0xff] }
 0x2ba   : > { %5699 = vmatprep.subr.mxu0 %v2631_v16  ;;  %3524 = vmatpush2.msra.mxu1 %v3471_v63  ;;  %v3483_v16 = vld [vmem:[#allocation8 + $0x2d0] sm:$0xff]  ;;  %v8392_v63 = vld [vmem:[#allocation8 + $0x178] sm:$0xff] }
 0x2bb   : > { %5700 = vmatpush3.msra.mxu0 %v2615_v45  ;;  %3525 = vmatprep.subr.mxu1 %v10394_v49  ;;  %v3466_v45 = vld [vmem:[#allocation8 + $0x248] sm:$0xff] }
 0x2bc   : > { %5701 = vmatprep.subr.mxu0 %v2630_v51  ;;  %3526 = vmatpush2.msra.mxu1 %v3470_v9  ;;  %v3482_v51 = vld [vmem:[#allocation8 + $0x2c8] sm:$0xff] }
 0x2bd   : > { %5702 = vmatpush3.msra.mxu0 %v2614_v36  ;;  %3527 = vmatprep.subr.mxu1 %v10394_v49  ;;  %v3465_v36 = vld [vmem:[#allocation8 + $0x240] sm:$0xff] }
 0x2be   : > { %5703 = vmatprep.subr.mxu0 %v2629_v38  ;;  %3528 = vmatpush2.msra.mxu1 %v3469_v58  ;;  %v3481_v38 = vld [vmem:[#allocation8 + $0x2c0] sm:$0xff] }
 0x2bf   : > { %5704 = vmatpush3.msra.mxu0 %v2613_v8  ;;  %3529 = vmatprep.subr.mxu1 %v10394_v49  ;;  %v3464_v8 = vld [vmem:[#allocation8 + $0x238] sm:$0xff] }
 0x2c0   : > { %5705 = vmatprep.subr.mxu0 %v2628_v60  ;;  %3530 = vmatpush2.msra.mxu1 %v3468_v42  ;;  %v3480_v60 = vld [vmem:[#allocation8 + $0x2b8] sm:$0xff] }
 0x2c1   : > { %5706 = vmatpush3.msra.mxu0 %v2612_v57  ;;  %3531 = vmatprep.subr.mxu1 %v10394_v49  ;;  %v3463_v57 = vld [vmem:[#allocation8 + $0x230] sm:$0xff] }
 0x2c2   : > { %5707 = vmatprep.subr.mxu0 %v2627_v24  ;;  %3532 = vmatpush2.msra.mxu1 %v3467_v1  ;;  %v3479_v24 = vld [vmem:[#allocation8 + $0x2b0] sm:$0xff] }
 0x2c3   : > { %5708 = vmatpush3.msra.mxu0 %v2611_v14  ;;  %3533 = vmatprep.subr.mxu1 %v10394_v49  ;;  %v3462_v14 = vld [vmem:[#allocation8 + $0x228] sm:$0xff] }
 0x2c4   : > { %2708 = vmatmul.mubr.f32.vlgmr.msra.gmra.mxu0 %v10393_v44  ;;  %6166 = vmatprep.subr.mxu0 %v3488_v7 }
 0x2c5   : > { %6167 = vmatpush3.msra.mxu0 %v3488_v7  ;;  %3534 = vmatpush2.msra.mxu1 %v3466_v45  ;;  %v3473_v7 = vld [vmem:[#allocation8 + $0x280] sm:$0xff] }
 0x2c6   : > { %6168 = vmatprep.subr.mxu0 %v3487_v25  ;;  %3535 = vmatprep.subr.mxu1 %v10394_v49 }
 0x2c7   : > { %6169 = vmatpush3.msra.mxu0 %v3487_v25  ;;  %3536 = vmatpush2.msra.mxu1 %v3465_v36 }
 0x2c8   : > { %6170 = vmatprep.subr.mxu0 %v3486_v5  ;;  %3537 = vmatprep.subr.mxu1 %v10394_v49 }
 0x2c9   : > { %6171 = vmatpush3.msra.mxu0 %v3486_v5  ;;  %3538 = vmatpush2.msra.mxu1 %v3464_v8 }
 0x2ca   : > { %6172 = vmatprep.subr.mxu0 %v3485_v55  ;;  %3539 = vmatprep.subr.mxu1 %v10394_v49 }
 0x2cb   : > { %6173 = vmatpush3.msra.mxu0 %v3485_v55  ;;  %3540 = vmatpush2.msra.mxu1 %v3463_v57 }
 0x2cc   : > { %6174 = vmatprep.subr.mxu0 %v3484_v10  ;;  %3541 = vmatprep.subr.mxu1 %v10394_v49 }
 0x2cd   : > { %6175 = vmatpush3.msra.mxu0 %v3484_v10  ;;  %3542 = vmatpush2.msra.mxu1 %v3462_v14 }
 0x2ce   : > { %6176 = vmatprep.subr.mxu0 %v3483_v16  ;;  %3543 = vmatprep.subr.mxu1 %v10394_v49 }
 0x2cf   : > { %6177 = vmatpush3.msra.mxu0 %v3483_v16  ;;  %3544 = vmatpush2.msra.mxu1 %v3461_v22 }
 0x2d0   : > { %6178 = vmatprep.subr.mxu0 %v3482_v51  ;;  %3545 = vmatprep.subr.mxu1 %v10394_v49 }
 0x2d1   : > { %6179 = vmatpush3.msra.mxu0 %v3482_v51  ;;  %3546 = vmatpush2.msra.mxu1 %v3460_v59 }
 0x2d2   : > { %6180 = vmatprep.subr.mxu0 %v3481_v38  ;;  %3547 = vmatprep.subr.mxu1 %v10394_v49 }
 0x2d3   : > { %6181 = vmatpush3.msra.mxu0 %v3481_v38  ;;  %3548 = vmatpush2.msra.mxu1 %v3459_v2  ;;  %v2718_v38 = vlaneseq }
 0x2d4   : > { %6182 = vmatprep.subr.mxu0 %v3480_v60  ;;  %3549 = vmatprep.subr.mxu1 %v10394_v49 }
 0x2d5   : > { %6183 = vmatpush3.msra.mxu0 %v3480_v60  ;;  %3550 = vmatpush2.msra.mxu1 %v3458_v20  ;;  %v2719_v8 = vshrl.u32 %v2718_v38, 7  ;;  %v3311_v38 = vld [vmem:[#allocation8 + $0x78] sm:$0xff] }
 0x2d6   : > { %6184 = vmatprep.subr.mxu0 %v3479_v24  ;;  %3551 = vmatprep.subr.mxu1 %v10394_v49 }
 0x2d7   : > { %6185 = vmatpush3.msra.mxu0 %v3479_v24  ;;  %3552 = vmatpush2.msra.mxu1 %v3457_v13  ;;  %v8395_v60 = vsub.s32 0, %v2719_v8 }
 0x2d8   : > { %6186 = vmatprep.subr.mxu0 %v3478_v35  ;;  %6246 = vmatprep.subr.mxu1 %v8392_v63 }
 0x2d9   : > { %6187 = vmatpush3.msra.mxu0 %v3478_v35  ;;  %10395 = vst [vmem:[#allocation20_spill] sm:$0xff] %v8395_v60 }
 0x2da   : > { %6188 = vmatprep.subr.mxu0 %v3477_v27 }
 0x2db   : > { %6189 = vmatpush3.msra.mxu0 %v3477_v27 }
 0x2dc   : > { %6190 = vmatprep.subr.mxu0 %v3476_v33 }
 0x2dd   : > { %6191 = vmatpush3.msra.mxu0 %v3476_v33 }
 0x2de   : > { %6192 = vmatprep.subr.mxu0 %v3475_v3 }
 0x2df   : > { %6193 = vmatpush3.msra.mxu0 %v3475_v3 }
 0x2e0   : > { %6194 = vmatprep.subr.mxu0 %v3474_v46 }
 0x2e1   : > { %6195 = vmatpush3.msra.mxu0 %v3474_v46 }
 0x2e2   : > { %6196 = vmatprep.subr.mxu0 %v3473_v7 }
 0x2e3   : > { %6197 = vmatpush3.msra.mxu0 %v3473_v7 }
 0x2e4   : > { %3939 = vmatprep.subr.mxu0 %v10394_v49 }
 0x364   : > { %v5674_v25 = vpop.f32.mrf.mxu0 }
 0x366   : > { %v5675_v9 = vpop.f32.mrf.mxu0 }
 0x367   : > { %v5676_v5 = vadd.f32 %v5675_v9, %v5674_v25 }
 0x369   : > { %v2713_v55 = vmul.f32 0.00390625, %v5676_v5 }
 0x36b   : > { %v2715_v1 = vmul.f32 %v2713_v55, %v2713_v55  ;;  %v8398_v24 = vrot.slane %v2713_v55, %v8395_v60 }
 0x36d   : > { %v2723_v35 = vsub.f32 %v8285_v56, %v8398_v24  ;;  %v2724_v27 = vsub.f32 %v8275_v41, %v8398_v24  ;;  %v2725_v59 = vsub.f32 %v8265_v11, %v8398_v24  ;;  %v2726_v3 = vsub.f32 %v8255_v48, %v8398_v24 }
 0x36e   : > { %v2727_v20 = vsub.f32 %v8245_v17, %v8398_v24  ;;  %v2722_v56 = vsub.f32 %v8295_v34, %v8398_v24  ;;  %v2728_v5 = vsub.f32 %v8236_v21, %v8398_v24  ;;  %v2729_v34 = vsub.f32 %v8227_v0, %v8398_v24 }
 0x36f   : > { %v2730_v8 = vsub.f32 %v8217_v15, %v8398_v24 }
 0x384   : > { %v5709_v58 = vpop.f32.mrf.mxu0 }
 0x386   : > { %v5710_v42 = vpop.f32.mrf.mxu0 }
 0x387   : > { %v5711_v10 = vadd.f32 %v5710_v42, %v5709_v58 }
 0x389   : > { %v2714_v16 = vmul.f32 0.00390625, %v5711_v10 }
 0x38b   : > { %v2716_v45 = vsub.f32 %v2714_v16, %v2715_v1 }
 0x38d   : > { %v2717_v51 = vmax.f32 %v2716_v45, 0.0 }
 0x38f   : > { %v2754_v36 = vadd.f32 1e-05, %v2717_v51 }
 0x391   : > { %6479 = vrsqrt.f32 %v2754_v36 }
 0x39e   : > { %v6480_v57 = vpop.eup %6479 }
 0x39f   : > { %v8401_v14 = vrot.slane %v6480_v57, %v8395_v60  ;;  %v2731_v57 = vsub.f32 %v8208_v6, %v8398_v24 }
 0x3a1   : > { %v2761_v22 = vmul.f32 %v8401_v14, %v2723_v35  ;;  %v2762_v33 = vmul.f32 %v8401_v14, %v2724_v27  ;;  %v2763_v2 = vmul.f32 %v8401_v14, %v2725_v59  ;;  %v2764_v41 = vmul.f32 %v8401_v14, %v2726_v3  ;;  %v3310_v27 = vld [vmem:[#allocation8 + $0x70] sm:$0xff] }
 0x3a2   : > { %v2765_v13 = vmul.f32 %v8401_v14, %v2727_v20  ;;  %v2760_v25 = vmul.f32 %v8401_v14, %v2722_v56  ;;  %v2766_v45 = vmul.f32 %v8401_v14, %v2728_v5  ;;  %v2767_v21 = vmul.f32 %v8401_v14, %v2729_v34 }
 0x3a3   : > { %v8416_v46 = vmax.f32 %v2761_v22, 0.0  ;;  %v8422_v11 = vmax.f32 %v2762_v33, 0.0  ;;  %v8424_v7 = vmax.f32 %v2763_v2, 0.0  ;;  %v8435_v58 = vmax.f32 %v2764_v41, 0.0 }
 0x3a4   : > { %v8429_v17 = vmax.f32 %v2760_v25, 0.0  ;;  %v8437_v55 = vmax.f32 %v2765_v13, 0.0  ;;  %v2768_v6 = vmul.f32 %v8401_v14, %v2730_v8  ;;  %v2769_v33 = vmul.f32 %v8401_v14, %v2731_v57 }
 0x3a5   : > { %v2984_v48 = vrot.slane %v8416_v46, 1  ;;  %v2889_v9 = vrot.slane %v8416_v46, 7  ;;  %v2841_v1 = vrot.slane %v8422_v11, 1  ;;  %v2986_v16 = vrot.slane %v8424_v7, 1 }
 0x3a6   : > { %3553 = vmatprep.mubr.f32.mxu1 %v8429_v17  ;;  %v2840_v42 = vrot.slane %v8429_v17, 1  ;;  %v2888_v10 = vrot.slane %v8429_v17, 7  ;;  %v2892_v35 = vrot.slane %v8424_v7, 7  ;;  %v2842_v59 = vrot.slane %v8435_v58, 1 }
 0x3a7   : > { %v8447_v0 = vsel %vm465_vm0, %v2984_v48, %v2889_v9  ;;  %v8465_v22 = vsel %vm465_vm0, %v2841_v1, %v2986_v16  ;;  %v2988_v15 = vrot.slane %v8437_v55, 1  ;;  %v8471_v2 = vmax.f32 %v2766_v45, 0.0 }
 0x3a8   : > { %v8450_v51 = vsel %vm368_vm1, %v2840_v42, %v2888_v10  ;;  %v8453_v36 = vsel %vm465_vm0, %v2840_v42, %v2984_v48  ;;  %v8473_v3 = vmax.f32 %v2767_v21, 0.0  ;;  %v2732_v20 = vsub.f32 %v8194_v62, %v8398_v24  ;;  %v8494_v48 = vld [vmem:[#allocation8 + $0x170] sm:$0xff] }
 0x3a9   : > { %3554 = vmatmul.mubr.f32.vlgmr.msra.gmra.mxu1 %v8450_v51  ;;  %6198 = vmatprep.mubr.f32.mxu0 %v8453_v36  ;;  %10396 = vst [vmem:[#allocation21_spill] sm:$0xff] %v8471_v2  ;;  %v2733_v56 = vsub.f32 %v8183_v19, %v8398_v24  ;;  %v8482_v41 = vsel %vm368_vm1, %v2888_v10, %v2889_v9  ;;  %v2891_v13 = vrot.slane %v8422_v11, 7  ;;  %v3309_v19 = vld [vmem:[#allocation8 + $0x68] sm:$0xff]  ;;  %v8506_v34 = vmax.f32 %v2768_v6, 0.0  ;;  %v3308_v10 = vld [vmem:[#allocation8 + $0x60] sm:$0xff] }
 0x3aa   : > { %3558 = vmatprep.mubr.f32.mxu1 %v8416_v46  ;;  %6199 = vmatmul.mubr.f32.vlgmr.msra.gmra.mxu0 %v8447_v0  ;;  %10397 = vst [vmem:[#allocation22_spill] sm:$0xff] %v8473_v3  ;;  %v2734_v25 = vsub.f32 %v8171_v43, %v8398_v24  ;;  %v8492_v62 = vsel %vm465_vm0, %v2986_v16, %v2892_v35  ;;  %v8508_v42 = vmax.f32 %v2769_v33, 0.0  ;;  %v10171_v16 = vrot.slane %v8471_v2, 1 }
 0x3ab   : > { %6201 = vmatprep.mubr.f32.mxu0 %v8465_v22  ;;  %3940 = vmatpush1.msra.mxu0 %v3311_v38  ;;  %v2770_v9 = vmul.f32 %v8401_v14, %v2732_v20  ;;  %v2771_v5 = vmul.f32 %v8401_v14, %v2733_v56  ;;  %v8503_v43 = vsel %vm465_vm0, %v2842_v59, %v2988_v15  ;;  %v2990_v45 = vrot.slane %v8473_v3, 1  ;;  %v3306_v56 = vld [vmem:[#allocation8 + $0x50] sm:$0xff] }
 0x3ac   : > { %3941 = vmatprep.subr.mxu0 %v10394_v49  ;;  %6247 = vmatpush3.msra.mxu1 %v8392_v63  ;;  %10398 = vst [vmem:[#allocation23_spill] sm:$0xff] %v8503_v43  ;;  %v10174_v63 = vrot.slane %v8437_v55, 7  ;;  %10399 = vst [vmem:[#allocation24_spill] sm:$0xff] %v8506_v34  ;;  %v2735_v21 = vsub.f32 %v8162_v50, %v8398_v24  ;;  %v8517_v38 = vsel %vm368_vm1, %v2841_v1, %v2891_v13 }
 0x3ad   : > { %3559 = vmatmul.mubr.f32.gmra.mxu1 %v8482_v41  ;;  %3942 = vmatpush1.msra.mxu0 %v3310_v27  ;;  %10400 = vst [vmem:[#allocation25_spill] sm:$0xff] %v8508_v42  ;;  %v2736_v8 = vsub.f32 %v8150_v32, %v8398_v24  ;;  %v2772_v57 = vmul.f32 %v8401_v14, %v2734_v25  ;;  %v3307_v27 = vld [vmem:[#allocation8 + $0x58] sm:$0xff]  ;;  %v8526_v33 = vmax.f32 %v2770_v9, 0.0  ;;  %v10173_v32 = vrot.slane %v8473_v3, 7 }
 0x3ae   : > { %3563 = vmatprep.mubr.f32.mxu1 %v8422_v11  ;;  %6202 = vmatmul.mubr.f32.gmra.mxu0 %v8492_v62  ;;  %v2773_v6 = vmul.f32 %v8401_v14, %v2735_v21  ;;  %v8532_v50 = vsel %vm465_vm0, %v2988_v15, %v10174_v63  ;;  %v8535_v1 = vmax.f32 %v2771_v5, 0.0  ;;  %v8542_v20 = vsel %vm465_vm0, %v10171_v16, %v2990_v45  ;;  %v3303_v63 = vld [vmem:[#allocation8 + $0x38] sm:$0xff] }
 0x3af   : > { %3943 = vmatprep.subr.mxu0 %v10394_v49  ;;  %6204 = vmatprep.mubr.f32.mxu0 %v8503_v43  ;;  %10401 = vst [vmem:[#allocation26_spill] sm:$0xff] %v8526_v33  ;;  %10402 = vst [vmem:[#allocation27_spill] sm:$0xff] %v8532_v50  ;;  %v10172_v25 = vrot.slane %v8506_v34, 1  ;;  %v2737_v15 = vsub.f32 %v8142_v52, %v8398_v24  ;;  %v8552_v9 = vsel %vm368_vm1, %v2891_v13, %v2892_v35  ;;  %v3305_v52 = vld [vmem:[#allocation8 + $0x48] sm:$0xff] }
 0x3b0   : > { %3944 = vmatpush1.msra.mxu0 %v3309_v19  ;;  %6248 = vmatprep.subr.mxu1 %v8494_v48  ;;  %10403 = vst [vmem:[#allocation28_spill] sm:$0xff] %v8535_v1  ;;  %10404 = vst [vmem:[#allocation29_spill] sm:$0xff] %v8542_v20  ;;  %v2992_v19 = vrot.slane %v8508_v42, 1  ;;  %v2894_v5 = vrot.slane %v8435_v58, 7  ;;  %v2774_v21 = vmul.f32 %v8401_v14, %v2736_v8  ;;  %v8570_v13 = vmax.f32 %v2773_v6, 0.0 }
 0x3b1   : > { %3945 = vmatprep.subr.mxu0 %v10394_v49  ;;  %3564 = vmatmul.mubr.f32.gmra.mxu1 %v8517_v38  ;;  %v2775_v16 = vmul.f32 %v8401_v14, %v2737_v15  ;;  %v8567_v35 = vsel %vm465_vm0, %v2990_v45, %v10173_v32  ;;  %v2994_v15 = vrot.slane %v8535_v1, 1  ;;  %v2739_v45 = vsub.f32 %v8281_v18, %v8398_v24 }
 0x3b2   : > { %3946 = vmatpush1.msra.mxu0 %v3308_v10  ;;  %3568 = vmatprep.mubr.f32.mxu1 %v8424_v7  ;;  %v2738_v10 = vsub.f32 %v8291_v30, %v8398_v24  ;;  %10405 = vst [vmem:[#allocation30_spill] sm:$0xff] %v8567_v35  ;;  %v10177_v30 = vrot.slane %v8508_v42, 7  ;;  %v8577_v8 = vsel %vm465_vm0, %v10172_v25, %v2992_v19  ;;  %v2996_v60 = vrot.slane %v8570_v13, 1 }
 0x3b3   : > { %6205 = vmatmul.mubr.f32.gmra.mxu0 %v8532_v50  ;;  %3947 = vmatprep.subr.mxu0 %v10394_v49  ;;  %10406 = vst [vmem:[#allocation31_spill] sm:$0xff] %v8577_v8  ;;  %v8587_v6 = vsel %vm368_vm1, %v2842_v59, %v2894_v5  ;;  %v2740_v25 = vsub.f32 %v8271_v26, %v8398_v24  ;;  %v2897_v26 = vrot.slane %v8471_v2, 7 }
 0x3b4   : > { %6207 = vmatprep.mubr.f32.mxu0 %v8542_v20  ;;  %3948 = vmatpush1.msra.mxu0 %v3307_v27  ;;  %v8561_v27 = vmax.f32 %v2772_v57, 0.0  ;;  %v3304_v57 = vld [vmem:[#allocation8 + $0x40] sm:$0xff]  ;;  %v2776_v32 = vmul.f32 %v8401_v14, %v2738_v10  ;;  %v2777_v18 = vmul.f32 %v8401_v14, %v2739_v45  ;;  %v8601_v59 = vsel %vm465_vm0, %v2992_v19, %v10177_v30 }
 0x3b5   : > { %3949 = vmatprep.subr.mxu0 %v10394_v49  ;;  %3569 = vmatmul.mubr.f32.gmra.mxu1 %v8552_v9  ;;  %10407 = vst [vmem:[#allocation32_spill] sm:$0xff] %v8601_v59  ;;  %v8604_v10 = vmax.f32 %v2775_v16, 0.0  ;;  %v2741_v19 = vsub.f32 %v8261_v37, %v8398_v24  ;;  %v10410_v16 = vrot.slane %v8437_v55, 7  ;;  %v2778_v45 = vmul.f32 %v8401_v14, %v2740_v25  ;;  %v3301_v37 = vld [vmem:[#allocation8 + $0x28] sm:$0xff] }
 0x3b6   : > { %3950 = vmatpush1.msra.mxu0 %v3306_v56  ;;  %3573 = vmatprep.mubr.f32.mxu1 %v8435_v58  ;;  %v8595_v56 = vmax.f32 %v2774_v21, 0.0  ;;  %v8639_v25 = vmax.f32 %v2777_v18, 0.0  ;;  %v10416_v18 = vrot.slane %v8471_v2, 1 }
 0x3b7   : > { %6208 = vmatmul.mubr.f32.gmra.mxu0 %v8567_v35  ;;  %3951 = vmatprep.subr.mxu0 %v10394_v49  ;;  %v8621_v30 = vsel %vm368_vm1, %v2894_v5, %v10410_v16  ;;  %v2779_v44 = vmul.f32 %v8401_v14, %v2741_v19  ;;  %v10412_v5 = vrot.slane %v8535_v1, 7  ;;  %v10414_v19 = vrot.slane %v8561_v27, 1 }
 0x3b8   : > { %6210 = vmatprep.mubr.f32.mxu0 %v8577_v8  ;;  %3952 = vmatpush1.msra.mxu0 %v3305_v52  ;;  %v10408_v52 = vrot.slane %v8526_v33, 1  ;;  %10411 = vst [vmem:[#allocation13_spill] sm:$0xff] %v8621_v30  ;;  %v3000_v8 = vrot.slane %v8639_v25, 1 }
 0x3b9   : > { %3953 = vmatprep.subr.mxu0 %v10394_v49  ;;  %3574 = vmatmul.mubr.f32.gmra.mxu1 %v8587_v6  ;;  %v8636_v16 = vsel %vm465_vm0, %v2994_v15, %v10412_v5  ;;  %v8656_v5 = vsel %vm368_vm1, %v10416_v18, %v2897_v26 }
 0x3ba   : > { %3954 = vmatpush1.msra.mxu0 %v3304_v57  ;;  %3578 = vmatprep.mubr.f32.mxu1 %v8437_v55  ;;  %v8611_v21 = vsel %vm465_vm0, %v10408_v52, %v2994_v15  ;;  %v3302_v57 = vld [vmem:[#allocation8 + $0x30] sm:$0xff]  ;;  %v2742_v52 = vsub.f32 %v8251_v4, %v8398_v24  ;;  %10413 = vst [vmem:[#allocation34_spill] sm:$0xff] %v8636_v16 }
 0x3bb   : > { %6211 = vmatmul.mubr.f32.gmra.mxu0 %v8601_v59  ;;  %3955 = vmatprep.subr.mxu0 %v10394_v49  ;;  %10409 = vst [vmem:[#allocation33_spill] sm:$0xff] %v8611_v21  ;;  %v2998_v59 = vrot.slane %v8604_v10, 1  ;;  %v2743_v15 = vsub.f32 %v8241_v61, %v8398_v24 }
 0x3bc   : > { %6213 = vmatprep.mubr.f32.mxu0 %v8611_v21  ;;  %3956 = vmatpush1.msra.mxu0 %v3303_v63  ;;  %v8630_v63 = vmax.f32 %v2776_v32, 0.0  ;;  %v8646_v32 = vsel %vm465_vm0, %v10414_v19, %v2996_v60  ;;  %v2744_v19 = vsub.f32 %v8232_v31, %v8398_v24  ;;  %v2780_v4 = vmul.f32 %v8401_v14, %v2742_v52  ;;  %v3299_v21 = vld [vmem:[#allocation8 + $0x18] sm:$0xff] }
 0x3bd   : > { %3957 = vmatprep.subr.mxu0 %v10394_v49  ;;  %3579 = vmatmul.mubr.f32.gmra.mxu1 %v8621_v30  ;;  %10415 = vst [vmem:[#allocation35_spill] sm:$0xff] %v8646_v32  ;;  %v2781_v61 = vmul.f32 %v8401_v14, %v2743_v15  ;;  %v8673_v52 = vmax.f32 %v2779_v44, 0.0  ;;  %v10420_v15 = vrot.slane %v8595_v56, 1  ;;  %v10422_v44 = vrot.slane %v8473_v3, 7 }
 0x3be   : > { %3958 = vmatpush1.msra.mxu0 %v3302_v57  ;;  %3583 = vmatprep.mubr.f32.mxu1 %v8471_v2  ;;  %v3300_v57 = vld [vmem:[#allocation8 + $0x20] sm:$0xff]  ;;  %v2900_v31 = vrot.slane %v8506_v34, 7 }
 0x3bf   : > { %6214 = vmatmul.mubr.f32.gmra.mxu0 %v8636_v16  ;;  %3959 = vmatprep.subr.mxu0 %v10394_v49  ;;  %v8664_v16 = vmax.f32 %v2778_v45, 0.0  ;;  %10419 = vst [vmem:[#allocation37_spill] sm:$0xff] %v8673_v52  ;;  %v8680_v45 = vsel %vm465_vm0, %v10420_v15, %v2998_v59  ;;  %v2782_v15 = vmul.f32 %v8401_v14, %v2744_v19  ;;  %v8706_v19 = vmax.f32 %v2781_v61, 0.0 }
 0x3c0   : > { %6216 = vmatprep.mubr.f32.mxu0 %v8646_v32  ;;  %3960 = vmatpush1.msra.mxu0 %v3301_v37  ;;  %v10417_v37 = vrot.slane %v8570_v13, 7  ;;  %10421 = vst [vmem:[#allocation38_spill] sm:$0xff] %v8680_v45  ;;  %v3297_v32 = vld [vmem:[#allocation8 + $0x8] sm:$0xff]  ;;  %v3002_v35 = vrot.slane %v8673_v52, 1 }
 0x3c1   : > { %3961 = vmatprep.subr.mxu0 %v10394_v49  ;;  %3584 = vmatmul.mubr.f32.gmra.mxu1 %v8656_v5  ;;  %10426 = vst [vmem:[#allocation19_spill] sm:$0xff] %v8706_v19  ;;  %v3004_v20 = vrot.slane %v8706_v19, 1 }
 0x3c2   : > { %3962 = vmatpush1.msra.mxu0 %v3300_v57  ;;  %3588 = vmatprep.mubr.f32.mxu1 %v8473_v3  ;;  %v8670_v18 = vsel %vm465_vm0, %v2996_v60, %v10417_v37  ;;  %v3298_v57 = vld [vmem:[#allocation8 + $0x10] sm:$0xff]  ;;  %v2745_v60 = vsub.f32 %v8223_v54, %v8398_v24  ;;  %v8690_v37 = vsel %vm368_vm1, %v2897_v26, %v10422_v44  ;;  %v8697_v54 = vmax.f32 %v2780_v4, 0.0 }
 0x3c3   : > { %10418 = vst [vmem:[#allocation36_spill] sm:$0xff] %v8670_v18  ;;  %6217 = vmatmul.mubr.f32.gmra.mxu0 %v8670_v18  ;;  %3963 = vmatprep.subr.mxu0 %v10394_v49  ;;  %v8729_v44 = vmax.f32 %v2782_v15, 0.0 }
 0x3c4   : > { %6219 = vmatprep.mubr.f32.mxu0 %v8680_v45  ;;  %3964 = vmatpush1.msra.mxu0 %v3299_v21  ;;  %v2783_v18 = vmul.f32 %v8401_v14, %v2745_v60  ;;  %10423 = vst [vmem:[#allocation39_spill] sm:$0xff] %v8697_v54  ;;  %v10424_v21 = vrot.slane %v8604_v10, 7  ;;  %v10427_v60 = vrot.slane %v8630_v63, 1  ;;  %v2747_v45 = vsub.f32 %v8204_v47, %v8398_v24 }
 0x3c5   : > { %3965 = vmatprep.subr.mxu0 %v10394_v49  ;;  %3589 = vmatmul.mubr.f32.gmra.mxu1 %v8690_v37  ;;  %10430 = vst [vmem:[#allocation14_spill] sm:$0xff] %v8729_v44  ;;  %v10434_v47 = vrot.slane %v8664_v16, 1 }
 0x3c6   : > { %3966 = vmatpush1.msra.mxu0 %v3298_v57  ;;  %3593 = vmatprep.mubr.f32.mxu1 %v8506_v34  ;;  %v8703_v26 = vsel %vm465_vm0, %v2998_v59, %v10424_v21  ;;  %v8713_v4 = vsel %vm465_vm0, %v10427_v60, %v3000_v8  ;;  %v3296_v57 = vld [vmem:[#allocation8] sm:$0xff]  ;;  %v10429_v59 = vrot.slane %v8506_v34, 1  ;;  %v2746_v21 = vsub.f32 %v8213_v29, %v8398_v24  ;;  %v3327_v60 = vld [vmem:[#allocation8 + $0xf8] sm:$0xff] }
 0x3c7   : > { %10425 = vst [vmem:[#allocation40_spill] sm:$0xff] %v8703_v26  ;;  %6220 = vmatmul.mubr.f32.gmra.mxu0 %v8703_v26  ;;  %3967 = vmatprep.subr.mxu0 %v10394_v49  ;;  %10428 = vst [vmem:[#allocation18_spill] sm:$0xff] %v8713_v4  ;;  %v8745_v15 = vsel %vm465_vm0, %v10434_v47, %v3002_v35  ;;  %v10209_v26 = vrot.slane %v8697_v54, 1  ;;  %v2903_v47 = vrot.slane %v8526_v33, 7 }
 0x3c8   : > { %6222 = vmatprep.mubr.f32.mxu0 %v8713_v4  ;;  %3968 = vmatpush1.msra.mxu0 %v3297_v32  ;;  %v8721_v61 = vsel %vm368_vm1, %v10429_v59, %v2900_v31  ;;  %v10431_v32 = vrot.slane %v8639_v25, 7  ;;  %v8738_v4 = vmax.f32 %v2783_v18, 0.0  ;;  %10435 = vst [vmem:[#allocation15_spill] sm:$0xff] %v8745_v15  ;;  %v10436_v18 = vrot.slane %v8508_v42, 7 }
 0x3c9   : > { %3969 = vmatprep.subr.mxu0 %v10394_v49  ;;  %3594 = vmatmul.mubr.f32.gmra.mxu1 %v8721_v61 }
 0x3ca   : > { %3970 = vmatpush1.msra.mxu0 %v3296_v57  ;;  %3598 = vmatprep.mubr.f32.mxu1 %v8508_v42  ;;  %v8735_v59 = vsel %vm465_vm0, %v3000_v8, %v10431_v32  ;;  %10433 = vst [vmem:[#allocation16_spill] sm:$0xff] %v8738_v4  ;;  %v3326_v57 = vld [vmem:[#allocation8 + $0xf0] sm:$0xff]  ;;  %v2784_v8 = vmul.f32 %v8401_v14, %v2746_v21  ;;  %v3325_v21 = vld [vmem:[#allocation8 + $0xe8] sm:$0xff]  ;;  %v3006_v50 = vrot.slane %v8738_v4, 1 }
 0x3cb   : > { %10432 = vst [vmem:[#allocation17_spill] sm:$0xff] %v8735_v59  ;;  %6223 = vmatmul.mubr.f32.gmra.mxu0 %v8735_v59  ;;  %3971 = vmatprep.subr.mxu0 %v10394_v49  ;;  %v2785_v32 = vmul.f32 %v8401_v14, %v2747_v45  ;;  %v8755_v29 = vsel %vm368_vm1, %v2900_v31, %v10436_v18 }
 0x3cc   : > { %6225 = vmatprep.mubr.f32.mxu0 %v8745_v15  ;;  %3972 = vmatpush2.msra.mxu0 %v3327_v60  ;;  %v2748_v59 = vsub.f32 %v8190_v28, %v8398_v24  ;;  %v2749_v45 = vsub.f32 %v8179_v39, %v8398_v24  ;;  %v10437_v60 = vrot.slane %v8673_v52, 7  ;;  %v8777_v39 = vsel %vm465_vm0, %v10209_v26, %v3004_v20 }
 0x3cd   : > { %3973 = vmatprep.subr.mxu0 %v10394_v49  ;;  %3599 = vmatmul.mubr.f32.gmra.mxu1 %v8755_v29  ;;  %10439 = vst [vmem:[#allocation42_spill] sm:$0xff] %v8777_v39  ;;  %v10212_v15 = vrot.slane %v8729_v44, 1  ;;  %v8784_v18 = vmax.f32 %v2785_v32, 0.0  ;;  %v2750_v26 = vsub.f32 %v8167_v53, %v8398_v24 }
 0x3ce   : > { %3974 = vmatpush2.msra.mxu0 %v3326_v57  ;;  %3603 = vmatprep.mubr.f32.mxu1 %v8526_v33  ;;  %v8768_v31 = vsel %vm465_vm0, %v3002_v35, %v10437_v60  ;;  %v2786_v28 = vmul.f32 %v8401_v14, %v2748_v59  ;;  %v3324_v57 = vld [vmem:[#allocation8 + $0xe0] sm:$0xff]  ;;  %v2787_v35 = vmul.f32 %v8401_v14, %v2749_v45  ;;  %v8782_v60 = vmax.f32 %v2784_v8, 0.0 }
 0x3cf   : > { %10438 = vst [vmem:[#allocation41_spill] sm:$0xff] %v8768_v31  ;;  %6226 = vmatmul.mubr.f32.gmra.mxu0 %v8768_v31  ;;  %3975 = vmatprep.subr.mxu0 %v10394_v49  ;;  %10441 = vst [vmem:[#allocation44_spill] sm:$0xff] %v8784_v18  ;;  %v10442_v59 = vrot.slane %v8526_v33, 1  ;;  %v10443_v8 = vrot.slane %v8706_v19, 7  ;;  %v2751_v45 = vsub.f32 %v8158_v23, %v8398_v24  ;;  %v10448_v23 = vrot.slane %v8535_v1, 7 }
 0x3d0   : > { %10440 = vst [vmem:[#allocation43_spill] sm:$0xff] %v8782_v60  ;;  %6228 = vmatprep.mubr.f32.mxu0 %v8777_v39  ;;  %3976 = vmatpush2.msra.mxu0 %v3325_v21  ;;  %v3323_v21 = vld [vmem:[#allocation8 + $0xd8] sm:$0xff]  ;;  %v8811_v53 = vsel %vm465_vm0, %v10212_v15, %v3006_v50  ;;  %v3341_v15 = vld [vmem:[#allocation8 + $0x168] sm:$0xff]  ;;  %v2788_v39 = vmul.f32 %v8401_v14, %v2750_v26  ;;  %v10449_v26 = vrot.slane %v8738_v4, 7 }
 0x3d1   : > { %v8790_v31 = vsel %vm368_vm1, %v10442_v59, %v2903_v47  ;;  %3977 = vmatprep.subr.mxu0 %v10394_v49  ;;  %6249 = vmatpush3.msra.mxu1 %v8494_v48  ;;  %v8800_v32 = vsel %vm465_vm0, %v3004_v20, %v10443_v8  ;;  %v8804_v59 = vmax.f32 %v2786_v28, 0.0  ;;  %10446 = vst [vmem:[#allocation47_spill] sm:$0xff] %v8811_v53  ;;  %v3322_v28 = vld [vmem:[#allocation8 + $0xd0] sm:$0xff]  ;;  %v2906_v48 = vrot.slane %v8561_v27, 7 }
 0x3d2   : > { %3604 = vmatmul.mubr.f32.gmra.mxu1 %v8790_v31  ;;  %3978 = vmatpush2.msra.mxu0 %v3324_v57  ;;  %10444 = vst [vmem:[#allocation45_spill] sm:$0xff] %v8800_v32  ;;  %v8814_v57 = vmax.f32 %v2787_v35, 0.0  ;;  %v8821_v20 = vsel %vm368_vm1, %v2903_v47, %v10448_v23  ;;  %v2789_v35 = vmul.f32 %v8401_v14, %v2751_v45  ;;  %v3321_v47 = vld [vmem:[#allocation8 + $0xc8] sm:$0xff] }
 0x3d3   : > { %10445 = vst [vmem:[#allocation46_spill] sm:$0xff] %v8804_v59  ;;  %3608 = vmatprep.mubr.f32.mxu1 %v8535_v1  ;;  %6229 = vmatmul.mubr.f32.gmra.mxu0 %v8800_v32  ;;  %v3008_v32 = vrot.slane %v8784_v18, 1  ;;  %v2753_v23 = vsub.f32 %v8138_v40, %v8398_v24  ;;  %v3320_v40 = vld [vmem:[#allocation8 + $0xc0] sm:$0xff] }
 0x3d4   : > { %10447 = vst [vmem:[#allocation48_spill] sm:$0xff] %v8814_v57  ;;  %3979 = vmatprep.subr.mxu0 %v10394_v49  ;;  %6231 = vmatprep.mubr.f32.mxu0 %v8811_v53  ;;  %v2752_v53 = vsub.f32 %v8146_v12, %v8398_v24  ;;  %v10451_v12 = vrot.slane %v8782_v60, 1  ;;  %v10221_v24 = vrot.slane %v8804_v59, 1  ;;  %v8854_v45 = vmax.f32 %v2789_v35, 0.0  ;;  %v3319_v35 = vld [vmem:[#allocation8 + $0xb8] sm:$0xff] }
 0x3d5   : > { %3980 = vmatpush2.msra.mxu0 %v3323_v21  ;;  %v8838_v21 = vsel %vm465_vm0, %v3006_v50, %v10449_v26  ;;  %6250 = vmatprep.subr.mxu1 %v3341_v15  ;;  %v3010_v50 = vrot.slane %v8814_v57, 1  ;;  %v8852_v26 = vmax.f32 %v2788_v39, 0.0 }
 0x3d6   : > { %3609 = vmatmul.mubr.f32.gmra.mxu1 %v8821_v20  ;;  %3981 = vmatprep.subr.mxu0 %v10394_v49  ;;  %10450 = vst [vmem:[#allocation49_spill] sm:$0xff] %v8838_v21  ;;  %v2790_v8 = vmul.f32 %v8401_v14, %v2752_v53  ;;  %v8847_v43 = vsel %vm465_vm0, %v10451_v12, %v3008_v32  ;;  %10454 = vst [vmem:[#allocation52_spill] sm:$0xff] %v8854_v45  ;;  %v10455_v53 = vrot.slane %v8561_v27, 1  ;;  %v3317_v12 = vld [vmem:[#allocation8 + $0xa8] sm:$0xff] }
 0x3d7   : > { %3613 = vmatprep.mubr.f32.mxu1 %v8561_v27  ;;  %3982 = vmatpush2.msra.mxu0 %v3322_v28  ;;  %10452 = vst [vmem:[#allocation50_spill] sm:$0xff] %v8847_v43  ;;  %v2791_v28 = vmul.f32 %v8401_v14, %v2753_v23  ;;  %10453 = vst [vmem:[#allocation51_spill] sm:$0xff] %v8852_v26  ;;  %v10456_v14 = vrot.slane %v8784_v18, 7 }
 0x3d8   : > { %6232 = vmatmul.mubr.f32.gmra.mxu0 %v8838_v21  ;;  %3983 = vmatprep.subr.mxu0 %v10394_v49  ;;  %v8860_v21 = vsel %vm368_vm1, %v10455_v53, %v2906_v48  ;;  %v8869_v23 = vmax.f32 %v2790_v8, 0.0  ;;  %v10230_v53 = vrot.slane %v8854_v45, 7 }
 0x3d9   : > { %6234 = vmatprep.mubr.f32.mxu0 %v8847_v43  ;;  %3984 = vmatpush2.msra.mxu0 %v3321_v47  ;;  %v8867_v39 = vsel %vm465_vm0, %v3008_v32, %v10456_v14  ;;  %v8876_v47 = vsel %vm465_vm0, %v10221_v24, %v3010_v50  ;;  %v10461_v32 = vrot.slane %v8570_v13, 7  ;;  %v3012_v14 = vrot.slane %v8854_v45, 1  ;;  %v3340_v24 = vld [vmem:[#allocation8 + $0x160] sm:$0xff] }
 0x3da   : > { %3985 = vmatprep.subr.mxu0 %v10394_v49  ;;  %3614 = vmatmul.mubr.f32.gmra.mxu1 %v8860_v21  ;;  %10457 = vst [vmem:[#allocation53_spill] sm:$0xff] %v8867_v39  ;;  %10458 = vst [vmem:[#allocation54_spill] sm:$0xff] %v8869_v23 }
 0x3db   : > { %3986 = vmatpush2.msra.mxu0 %v3320_v40  ;;  %6251 = vmatpush3.msra.mxu1 %v3341_v15  ;;  %10459 = vst [vmem:[#allocation55_spill] sm:$0xff] %v8876_v47  ;;  %v8879_v15 = vmax.f32 %v2791_v28, 0.0  ;;  %v8886_v8 = vsel %vm368_vm1, %v2906_v48, %v10461_v32  ;;  %v3318_v40 = vld [vmem:[#allocation8 + $0xb0] sm:$0xff]  ;;  %v2909_v28 = vrot.slane %v8595_v56, 7  ;;  %v10462_v48 = vrot.slane %v8814_v57, 7 }
 0x3dc   : > { %3618 = vmatprep.mubr.f32.mxu1 %v8570_v13  ;;  %6235 = vmatmul.mubr.f32.gmra.mxu0 %v8867_v39  ;;  %v3316_v39 = vld [vmem:[#allocation8 + $0xa0] sm:$0xff] }
 0x3dd   : > { %10460 = vst [vmem:[#allocation56_spill] sm:$0xff] %v8879_v15  ;;  %3987 = vmatprep.subr.mxu0 %v10394_v49  ;;  %6237 = vmatprep.mubr.f32.mxu0 %v8876_v47  ;;  %v8897_v32 = vsel %vm465_vm0, %v3010_v50, %v10462_v48  ;;  %v3014_v43 = vrot.slane %v8879_v15, 1  ;;  %v10466_v50 = vrot.slane %v8595_v56, 1 }
 0x3de   : > { %3988 = vmatpush2.msra.mxu0 %v3319_v35  ;;  %3619 = vmatmul.mubr.f32.gmra.mxu1 %v8886_v8  ;;  %10463 = vst [vmem:[#allocation57_spill] sm:$0xff] %v8897_v32  ;;  %v10464_v35 = vrot.slane %v8852_v26, 1 }
 0x3df   : > { %3989 = vmatprep.subr.mxu0 %v10394_v49  ;;  %3623 = vmatprep.mubr.f32.mxu1 %v8595_v56  ;;  %v8913_v48 = vsel %vm368_vm1, %v10466_v50, %v2909_v28 }
 0x3e0   : > { %3990 = vmatpush2.msra.mxu0 %v3318_v40  ;;  %6252 = vmatprep.subr.mxu1 %v3340_v24  ;;  %v8905_v47 = vsel %vm465_vm0, %v10464_v35, %v3012_v14  ;;  %v8920_v35 = vsel %vm465_vm0, %v3012_v14, %v10230_v53  ;;  %v3315_v40 = vld [vmem:[#allocation8 + $0x98] sm:$0xff]  ;;  %v3314_v14 = vld [vmem:[#allocation8 + $0x90] sm:$0xff] }
 0x3e1   : > { %6238 = vmatmul.mubr.f32.gmra.mxu0 %v8897_v32  ;;  %3991 = vmatprep.subr.mxu0 %v10394_v49  ;;  %10465 = vst [vmem:[#allocation58_spill] sm:$0xff] %v8905_v47  ;;  %10467 = vst [vmem:[#allocation59_spill] sm:$0xff] %v8920_v35  ;;  %v3339_v53 = vld [vmem:[#allocation8 + $0x158] sm:$0xff] }
 0x3e2   : > { %6240 = vmatprep.mubr.f32.mxu0 %v8905_v47  ;;  %3992 = vmatpush2.msra.mxu0 %v3317_v12  ;;  %v10468_v12 = vrot.slane %v8869_v23, 1  ;;  %v10234_v47 = vrot.slane %v8879_v15, 7 }
 0x3e3   : > { %3993 = vmatprep.subr.mxu0 %v10394_v49  ;;  %3624 = vmatmul.mubr.f32.gmra.mxu1 %v8913_v48 }
 0x3e4   : > { %3994 = vmatpush2.msra.mxu0 %v3316_v39  ;;  %6253 = vmatpush3.msra.mxu1 %v3340_v24  ;;  %v8927_v50 = vsel %vm465_vm0, %v10468_v12, %v3014_v43  ;;  %v10470_v24 = vrot.slane %v8604_v10, 7  ;;  %v3313_v12 = vld [vmem:[#allocation8 + $0x88] sm:$0xff] }
 0x3e5   : > { %3628 = vmatprep.mubr.f32.mxu1 %v8604_v10  ;;  %6241 = vmatmul.mubr.f32.gmra.mxu0 %v8920_v35  ;;  %10469 = vst [vmem:[#allocation60_spill] sm:$0xff] %v8927_v50  ;;  %v2912_v35 = vrot.slane %v8630_v63, 7 }
 0x3e6   : > { %3995 = vmatprep.subr.mxu0 %v10394_v49  ;;  %6243 = vmatprep.mubr.f32.mxu0 %v8927_v50  ;;  %v8935_v39 = vsel %vm368_vm1, %v2909_v28, %v10470_v24  ;;  %v8944_v50 = vsel %vm465_vm0, %v3014_v43, %v10234_v47  ;;  %v3312_v28 = vld [vmem:[#allocation8 + $0x80] sm:$0xff]  ;;  %v3338_v43 = vld [vmem:[#allocation8 + $0x150] sm:$0xff]  ;;  %v2915_v47 = vrot.slane %v8664_v16, 7 }
 0x3e7   : > { %3996 = vmatpush2.msra.mxu0 %v3315_v40  ;;  %3629 = vmatmul.mubr.f32.gmra.mxu1 %v8935_v39  ;;  %10471 = vst [vmem:[#allocation61_spill] sm:$0xff] %v8944_v50  ;;  %v10472_v40 = vrot.slane %v8630_v63, 1 }
 0x3e8   : > { %3997 = vmatprep.subr.mxu0 %v10394_v49  ;;  %3633 = vmatprep.mubr.f32.mxu1 %v8630_v63 }
 0x3e9   : > { %3998 = vmatpush2.msra.mxu0 %v3314_v14  ;;  %6254 = vmatprep.subr.mxu1 %v3339_v53  ;;  %v8952_v24 = vsel %vm368_vm1, %v10472_v40, %v2912_v35  ;;  %v8956_v14 = vld [vmem:[#allocation8 + $0x478] sm:$0xff] }
 0x3ea   : > { %6244 = vmatmul.mubr.f32.gmra.mxu0 %v8944_v50  ;;  %3999 = vmatprep.subr.mxu0 %v10394_v49  ;;  %v3337_v50 = vld [vmem:[#allocation8 + $0x148] sm:$0xff] }
 0x3eb   : > { %4000 = vmatpush2.msra.mxu0 %v3313_v12  ;;  %4003 = vmatprep.mubr.f32.mxu0 %v8422_v11  ;;  %v10473_v12 = vrot.slane %v8639_v25, 7 }
 0x3ec   : > { %4001 = vmatprep.subr.mxu0 %v10394_v49  ;;  %3634 = vmatmul.mubr.f32.gmra.mxu1 %v8952_v24 }
 0x3ed   : > { %4002 = vmatpush2.msra.mxu0 %v3312_v28  ;;  %6255 = vmatpush3.msra.mxu1 %v3339_v53  ;;  %v8964_v40 = vsel %vm368_vm1, %v2912_v35, %v10473_v12  ;;  %v3336_v53 = vld [vmem:[#allocation8 + $0x140] sm:$0xff]  ;;  %v10474_v35 = vrot.slane %v8664_v16, 1  ;;  %v3335_v12 = vld [vmem:[#allocation8 + $0x138] sm:$0xff] }
 0x3ee   : > { %3638 = vmatprep.mubr.f32.mxu1 %v8639_v25  ;;  %4004 = vmatmul.mubr.f32.vlgmr.msra.gmra.mxu0 %v8517_v38 }
 0x3ef   : > { %4008 = vmatprep.mubr.f32.mxu0 %v8424_v7  ;;  %6256 = vmatprep.subr.mxu1 %v3338_v43  ;;  %v8975_v28 = vsel %vm368_vm1, %v10474_v35, %v2915_v47  ;;  %v3333_v35 = vld [vmem:[#allocation8 + $0x128] sm:$0xff] }
 0x3f0   : > { %3639 = vmatmul.mubr.f32.gmra.mxu1 %v8964_v40  ;;  %6326 = vmatprep.subr.mxu0 %v8956_v14 }
 0x3f1   : > { %3643 = vmatprep.mubr.f32.mxu1 %v8664_v16  ;;  %6257 = vmatpush3.msra.mxu1 %v3338_v43  ;;  %v3334_v43 = vld [vmem:[#allocation8 + $0x130] sm:$0xff] }
 0x3f2   : > { %4009 = vmatmul.mubr.f32.gmra.mxu0 %v8552_v9  ;;  %6258 = vmatprep.subr.mxu1 %v3337_v50 }
 0x3f3   : > { %4013 = vmatprep.mubr.f32.mxu0 %v8429_v17  ;;  %6259 = vmatpush3.msra.mxu1 %v3337_v50  ;;  %v10475_v17 = vrot.slane %v8673_v52, 7  ;;  %v2918_v50 = vrot.slane %v8697_v54, 7 }
 0x3f4   : > { %3644 = vmatmul.mubr.f32.gmra.mxu1 %v8975_v28  ;;  %6260 = vmatprep.subr.mxu1 %v3336_v53 }
 0x3f5   : > { %3648 = vmatprep.mubr.f32.mxu1 %v8673_v52  ;;  %6261 = vmatpush3.msra.mxu1 %v3336_v53  ;;  %v8984_v32 = vsel %vm368_vm1, %v2915_v47, %v10475_v17  ;;  %v3332_v53 = vld [vmem:[#allocation8 + $0x120] sm:$0xff]  ;;  %v3331_v47 = vld [vmem:[#allocation8 + $0x118] sm:$0xff]  ;;  %v2921_v17 = vrot.slane %v8729_v44, 7 }
 0x3f6   : > { %4014 = vmatmul.mubr.f32.gmra.mxu0 %v8450_v51  ;;  %6262 = vmatprep.subr.mxu1 %v3335_v12  ;;  %10476 = vst [vmem:[#allocation62_spill] sm:$0xff] %v8984_v32 }
 0x3f7   : > { %4018 = vmatprep.mubr.f32.mxu0 %v8416_v46  ;;  %6263 = vmatpush3.msra.mxu1 %v3335_v12  ;;  %v10477_v46 = vrot.slane %v8697_v54, 1  ;;  %v3330_v12 = vld [vmem:[#allocation8 + $0x110] sm:$0xff] }
 0x3f8   : > { %3649 = vmatmul.mubr.f32.gmra.mxu1 %v8984_v32  ;;  %6264 = vmatprep.subr.mxu1 %v3334_v43 }
 0x3f9   : > { %3653 = vmatprep.mubr.f32.mxu1 %v8697_v54  ;;  %6265 = vmatpush3.msra.mxu1 %v3334_v43  ;;  %v8994_v51 = vsel %vm368_vm1, %v10477_v46, %v2918_v50  ;;  %v10481_v46 = vrot.slane %v8729_v44, 1 }
 0x3fa   : > { %4019 = vmatmul.mubr.f32.gmra.mxu0 %v8482_v41  ;;  %6266 = vmatprep.subr.mxu1 %v3333_v35  ;;  %10478 = vst [vmem:[#allocation63_spill] sm:$0xff] %v8994_v51  ;;  %v10479_v41 = vrot.slane %v8706_v19, 7 }
 0x3fb   : > { %4023 = vmatprep.mubr.f32.mxu0 %v8422_v11  ;;  %6267 = vmatpush3.msra.mxu1 %v3333_v35  ;;  %v3329_v35 = vld [vmem:[#allocation8 + $0x108] sm:$0xff] }
 0x3fc   : > { %3654 = vmatmul.mubr.f32.gmra.mxu1 %v8994_v51  ;;  %6268 = vmatprep.subr.mxu1 %v3332_v53  ;;  %v9003_v43 = vsel %vm368_vm1, %v2918_v50, %v10479_v41  ;;  %v9013_v50 = vsel %vm368_vm1, %v10481_v46, %v2921_v17  ;;  %v4531_v46 = vld [vmem:[#allocation8 + $0x468] sm:$0xff] }
 0x3fd   : > { %3658 = vmatprep.mubr.f32.mxu1 %v8706_v19  ;;  %6269 = vmatpush3.msra.mxu1 %v3332_v53  ;;  %10480 = vst [vmem:[#allocation64_spill] sm:$0xff] %v9003_v43  ;;  %v3328_v53 = vld [vmem:[#allocation8 + $0x100] sm:$0xff]  ;;  %10482 = vst [vmem:[#allocation65_spill] sm:$0xff] %v9013_v50 }
 0x3fe   : > { %4024 = vmatmul.mubr.f32.gmra.mxu0 %v8517_v38  ;;  %6270 = vmatprep.subr.mxu1 %v3331_v47 }
 0x3ff   : > { %4028 = vmatprep.mubr.f32.mxu0 %v8424_v7  ;;  %6271 = vmatpush3.msra.mxu1 %v3331_v47  ;;  %v4532_v47 = vld [vmem:[#allocation8 + $0x470] sm:$0xff] }
 0x400   : > { %3659 = vmatmul.mubr.f32.gmra.mxu1 %v9003_v43  ;;  %6272 = vmatprep.subr.mxu1 %v3330_v12 }
 0x401   : > { %3663 = vmatprep.mubr.f32.mxu1 %v8729_v44  ;;  %6273 = vmatpush3.msra.mxu1 %v3330_v12  ;;  %v10483_v12 = vrot.slane %v8738_v4, 7 }
 0x402   : > { %4029 = vmatmul.mubr.f32.gmra.mxu0 %v8552_v9  ;;  %6274 = vmatprep.subr.mxu1 %v3329_v35 }
 0x403   : > { %4033 = vmatprep.mubr.f32.mxu0 %v8435_v58  ;;  %6275 = vmatpush3.msra.mxu1 %v3329_v35  ;;  %v9023_v41 = vsel %vm368_vm1, %v2921_v17, %v10483_v12  ;;  %v2924_v35 = vrot.slane %v8782_v60, 7  ;;  %v10485_v17 = vrot.slane %v8782_v60, 1 }
 0x404   : > { %3664 = vmatmul.mubr.f32.gmra.mxu1 %v9013_v50  ;;  %6276 = vmatprep.subr.mxu1 %v3328_v53  ;;  %10484 = vst [vmem:[#allocation66_spill] sm:$0xff] %v9023_v41 }
 0x405   : > { %3668 = vmatprep.mubr.f32.mxu1 %v8738_v4  ;;  %6277 = vmatpush3.msra.mxu1 %v3328_v53  ;;  %v4530_v53 = vld [vmem:[#allocation8 + $0x460] sm:$0xff]  ;;  %v9034_v12 = vsel %vm368_vm1, %v10485_v17, %v2924_v35  ;;  %v4527_v17 = vld [vmem:[#allocation8 + $0x448] sm:$0xff] }
 0x406   : > { %4034 = vmatmul.mubr.f32.gmra.mxu0 %v8587_v6  ;;  %4534 = vmatprep.subr.mxu1 %v10394_v49  ;;  %10486 = vst [vmem:[#allocation67_spill] sm:$0xff] %v9034_v12 }
 0x407   : > { %4038 = vmatprep.mubr.f32.mxu0 %v8437_v55  ;;  %6327 = vmatpush3.msra.mxu0 %v8956_v14  ;;  %v4529_v14 = vld [vmem:[#allocation8 + $0x458] sm:$0xff] }
 0x408   : > { %3669 = vmatmul.mubr.f32.gmra.mxu1 %v9023_v41  ;;  %6328 = vmatprep.subr.mxu0 %v4532_v47 }
 0x409   : > { %3673 = vmatprep.mubr.f32.mxu1 %v8782_v60  ;;  %6329 = vmatpush3.msra.mxu0 %v4532_v47  ;;  %v4528_v47 = vld [vmem:[#allocation8 + $0x450] sm:$0xff] }
 0x40a   : > { %4039 = vmatmul.mubr.f32.gmra.mxu0 %v8621_v30  ;;  %6330 = vmatprep.subr.mxu0 %v4531_v46 }
 0x40b   : > { %4043 = vmatprep.mubr.f32.mxu0 %v8471_v2  ;;  %6331 = vmatpush3.msra.mxu0 %v4531_v46  ;;  %v10487_v2 = vrot.slane %v8784_v18, 7  ;;  %v2927_v46 = vrot.slane %v8804_v59, 7 }
 0x40c   : > { %3674 = vmatmul.mubr.f32.gmra.mxu1 %v9034_v12  ;;  %6332 = vmatprep.subr.mxu0 %v4530_v53 }
 0x40d   : > { %3678 = vmatprep.mubr.f32.mxu1 %v8784_v18  ;;  %6333 = vmatpush3.msra.mxu0 %v4530_v53  ;;  %v9043_v30 = vsel %vm368_vm1, %v2924_v35, %v10487_v2  ;;  %v4526_v53 = vld [vmem:[#allocation8 + $0x440] sm:$0xff]  ;;  %v4525_v35 = vld [vmem:[#allocation8 + $0x438] sm:$0xff] }
 0x40e   : > { %4044 = vmatmul.mubr.f32.gmra.mxu0 %v8656_v5  ;;  %6334 = vmatprep.subr.mxu0 %v4529_v14  ;;  %10488 = vst [vmem:[#allocation68_spill] sm:$0xff] %v9043_v30 }
 0x40f   : > { %4048 = vmatprep.mubr.f32.mxu0 %v8473_v3  ;;  %6335 = vmatpush3.msra.mxu0 %v4529_v14  ;;  %v10489_v3 = vrot.slane %v8804_v59, 1  ;;  %v4524_v14 = vld [vmem:[#allocation8 + $0x430] sm:$0xff] }
 0x410   : > { %3679 = vmatmul.mubr.f32.gmra.mxu1 %v9043_v30  ;;  %6336 = vmatprep.subr.mxu0 %v4528_v47 }
 0x411   : > { %3683 = vmatprep.mubr.f32.mxu1 %v8804_v59  ;;  %6337 = vmatpush3.msra.mxu0 %v4528_v47  ;;  %v9053_v2 = vsel %vm368_vm1, %v10489_v3, %v2927_v46  ;;  %v10491_v47 = vrot.slane %v8814_v57, 7  ;;  %v2930_v3 = vrot.slane %v8852_v26, 7 }
 0x412   : > { %4049 = vmatmul.mubr.f32.gmra.mxu0 %v8690_v37  ;;  %6338 = vmatprep.subr.mxu0 %v4527_v17  ;;  %10490 = vst [vmem:[#allocation69_spill] sm:$0xff] %v9053_v2 }
 0x413   : > { %4053 = vmatprep.mubr.f32.mxu0 %v8506_v34  ;;  %6339 = vmatpush3.msra.mxu0 %v4527_v17  ;;  %v9062_v34 = vsel %vm368_vm1, %v2927_v46, %v10491_v47  ;;  %v4523_v17 = vld [vmem:[#allocation8 + $0x428] sm:$0xff]  ;;  %v10495_v47 = vrot.slane %v8854_v45, 7 }
 0x414   : > { %3684 = vmatmul.mubr.f32.gmra.mxu1 %v9053_v2  ;;  %6340 = vmatprep.subr.mxu0 %v4526_v53  ;;  %10492 = vst [vmem:[#allocation70_spill] sm:$0xff] %v9062_v34 }
 0x415   : > { %3688 = vmatprep.mubr.f32.mxu1 %v8814_v57  ;;  %6341 = vmatpush3.msra.mxu0 %v4526_v53  ;;  %v4522_v53 = vld [vmem:[#allocation8 + $0x420] sm:$0xff] }
 0x416   : > { %4054 = vmatmul.mubr.f32.gmra.mxu0 %v8721_v61  ;;  %6342 = vmatprep.subr.mxu0 %v4525_v35 }
 0x417   : > { %4058 = vmatprep.mubr.f32.mxu0 %v8508_v42  ;;  %6343 = vmatpush3.msra.mxu0 %v4525_v35  ;;  %v10493_v42 = vrot.slane %v8852_v26, 1  ;;  %v4521_v35 = vld [vmem:[#allocation8 + $0x418] sm:$0xff] }
 0x418   : > { %3689 = vmatmul.mubr.f32.gmra.mxu1 %v9062_v34  ;;  %6344 = vmatprep.subr.mxu0 %v4524_v14 }
 0x419   : > { %3693 = vmatprep.mubr.f32.mxu1 %v8852_v26  ;;  %6345 = vmatpush3.msra.mxu0 %v4524_v14  ;;  %v9072_v46 = vsel %vm368_vm1, %v10493_v42, %v2930_v3  ;;  %v4520_v14 = vld [vmem:[#allocation8 + $0x410] sm:$0xff]  ;;  %v2933_v42 = vrot.slane %v8869_v23, 7 }
 0x41a   : > { %4059 = vmatmul.mubr.f32.gmra.mxu0 %v8755_v29  ;;  %6346 = vmatprep.subr.mxu0 %v4523_v17  ;;  %10494 = vst [vmem:[#allocation71_spill] sm:$0xff] %v9072_v46 }
 0x41b   : > { %4063 = vmatprep.mubr.f32.mxu0 %v8526_v33  ;;  %6347 = vmatpush3.msra.mxu0 %v4523_v17  ;;  %v9081_v33 = vsel %vm368_vm1, %v2930_v3, %v10495_v47  ;;  %v4519_v17 = vld [vmem:[#allocation8 + $0x408] sm:$0xff]  ;;  %v4500_v47 = vld [vmem:[#allocation8 + $0x370] sm:$0xff] }
 0x41c   : > { %3694 = vmatmul.mubr.f32.gmra.mxu1 %v9072_v46  ;;  %6348 = vmatprep.subr.mxu0 %v4522_v53  ;;  %10496 = vst [vmem:[#allocation72_spill] sm:$0xff] %v9081_v33 }
 0x41d   : > { %3698 = vmatprep.mubr.f32.mxu1 %v8854_v45  ;;  %6349 = vmatpush3.msra.mxu0 %v4522_v53  ;;  %v4518_v53 = vld [vmem:[#allocation8 + $0x400] sm:$0xff] }
 0x41e   : > { %4064 = vmatmul.mubr.f32.gmra.mxu0 %v8790_v31  ;;  %6350 = vmatprep.subr.mxu0 %v4521_v35 }
 0x41f   : > { %4068 = vmatprep.mubr.f32.mxu0 %v8535_v1  ;;  %6351 = vmatpush3.msra.mxu0 %v4521_v35  ;;  %v10497_v1 = vrot.slane %v8869_v23, 1  ;;  %v10499_v35 = vrot.slane %v8879_v15, 7 }
 0x420   : > { %3699 = vmatmul.mubr.f32.gmra.mxu1 %v9081_v33  ;;  %6352 = vmatprep.subr.mxu0 %v4520_v14 }
 0x421   : > { %3703 = vmatprep.mubr.f32.mxu1 %v8869_v23  ;;  %6353 = vmatpush3.msra.mxu0 %v4520_v14  ;;  %v9091_v3 = vsel %vm368_vm1, %v10497_v1, %v2933_v42  ;;  %v9100_v14 = vsel %vm368_vm1, %v2933_v42, %v10499_v35  ;;  %v4501_v1 = vld [vmem:[#allocation8 + $0x378] sm:$0xff]  ;;  %v4499_v42 = vld [vmem:[#allocation8 + $0x368] sm:$0xff] }
 0x422   : > { %4069 = vmatmul.mubr.f32.gmra.mxu0 %v8821_v20  ;;  %6354 = vmatprep.subr.mxu0 %v4519_v17  ;;  %10498 = vst [vmem:[#allocation73_spill] sm:$0xff] %v9091_v3  ;;  %10500 = vst [vmem:[#allocation74_spill] sm:$0xff] %v9100_v14  ;;  %v4495_v35 = vld [vmem:[#allocation8 + $0x348] sm:$0xff] }
 0x423   : > { %4073 = vmatprep.mubr.f32.mxu0 %v8561_v27  ;;  %6355 = vmatpush3.msra.mxu0 %v4519_v17  ;;  %v4498_v17 = vld [vmem:[#allocation8 + $0x360] sm:$0xff]  ;;  %v10508_v23 = vld [vmem:[#allocation34_spill] sm:$0xff] }
 0x424   : > { %3704 = vmatmul.mubr.f32.gmra.mxu1 %v9091_v3  ;;  %6356 = vmatprep.subr.mxu0 %v4518_v53  ;;  %v10507_v3 = vld [vmem:[#allocation33_spill] sm:$0xff] }
 0x425   : > { %3708 = vmatprep.mubr.f32.mxu1 %v8879_v15  ;;  %6357 = vmatpush3.msra.mxu0 %v4518_v53  ;;  %v4496_v53 = vld [vmem:[#allocation8 + $0x350] sm:$0xff]  ;;  %v10506_v15 = vld [vmem:[#allocation32_spill] sm:$0xff] }
 0x426   : > { %4074 = vmatmul.mubr.f32.gmra.mxu0 %v8860_v21 }
 0x427   : > { %4078 = vmatprep.mubr.f32.mxu0 %v8570_v13 }
 0x428   : > { %3709 = vmatmul.mubr.f32.gmra.mxu1 %v9100_v14  ;;  %v10505_v14 = vld [vmem:[#allocation31_spill] sm:$0xff] }
 0x429   : > { %6278 = vmatprep.mubr.f32.mxu1 %v8465_v22 }
 0x42a   : > { %4079 = vmatmul.mubr.f32.gmra.mxu0 %v8886_v8 }
 0x42b   : > { %4083 = vmatprep.mubr.f32.mxu0 %v8595_v56 }
 0x42c   : > { %6279 = vmatmul.mubr.f32.vlgmr.msra.gmra.mxu1 %v8492_v62 }
 0x42d   : > { %6281 = vmatprep.mubr.f32.mxu1 %v8453_v36  ;;  %4535 = vmatpush1.msra.mxu1 %v4501_v1  ;;  %v4497_v36 = vld [vmem:[#allocation8 + $0x358] sm:$0xff]  ;;  %v10502_v1 = vld [vmem:[#allocation27_spill] sm:$0xff] }
 0x42e   : > { %4084 = vmatmul.mubr.f32.gmra.mxu0 %v8913_v48  ;;  %4536 = vmatprep.subr.mxu1 %v10394_v49 }
 0x42f   : > { %4088 = vmatprep.mubr.f32.mxu0 %v8604_v10  ;;  %4537 = vmatpush1.msra.mxu1 %v4500_v47  ;;  %v4494_v47 = vld [vmem:[#allocation8 + $0x340] sm:$0xff] }
 0x430   : > { %6282 = vmatmul.mubr.f32.gmra.mxu1 %v8447_v0  ;;  %4538 = vmatprep.subr.mxu1 %v10394_v49  ;;  %v10501_v0 = vld [vmem:[#allocation23_spill] sm:$0xff] }
 0x431   : > { %6284 = vmatprep.mubr.f32.mxu1 %v8465_v22  ;;  %4539 = vmatpush1.msra.mxu1 %v4499_v42  ;;  %v10503_v42 = vld [vmem:[#allocation29_spill] sm:$0xff] }
 0x432   : > { %4089 = vmatmul.mubr.f32.gmra.mxu0 %v8935_v39  ;;  %4540 = vmatprep.subr.mxu1 %v10394_v49 }
 0x433   : > { %4093 = vmatprep.mubr.f32.mxu0 %v8630_v63  ;;  %4541 = vmatpush1.msra.mxu1 %v4498_v17  ;;  %v4493_v17 = vld [vmem:[#allocation8 + $0x338] sm:$0xff] }
 0x434   : > { %6285 = vmatmul.mubr.f32.gmra.mxu1 %v8492_v62  ;;  %4542 = vmatprep.subr.mxu1 %v10394_v49 }
 0x435   : > { %6287 = vmatprep.mubr.f32.mxu1 %v10501_v0  ;;  %4543 = vmatpush1.msra.mxu1 %v4497_v36  ;;  %v10504_v36 = vld [vmem:[#allocation30_spill] sm:$0xff] }
 0x436   : > { %4094 = vmatmul.mubr.f32.gmra.mxu0 %v8952_v24  ;;  %4544 = vmatprep.subr.mxu1 %v10394_v49 }
 0x437   : > { %4098 = vmatprep.mubr.f32.mxu0 %v8639_v25  ;;  %4545 = vmatpush1.msra.mxu1 %v4496_v53  ;;  %v4492_v53 = vld [vmem:[#allocation8 + $0x330] sm:$0xff] }
 0x438   : > { %6288 = vmatmul.mubr.f32.gmra.mxu1 %v10502_v1  ;;  %4546 = vmatprep.subr.mxu1 %v10394_v49 }
 0x439   : > { %6290 = vmatprep.mubr.f32.mxu1 %v10503_v42  ;;  %4547 = vmatpush1.msra.mxu1 %v4495_v35  ;;  %v4491_v35 = vld [vmem:[#allocation8 + $0x328] sm:$0xff] }
 0x43a   : > { %4099 = vmatmul.mubr.f32.gmra.mxu0 %v8964_v40  ;;  %4548 = vmatprep.subr.mxu1 %v10394_v49 }
 0x43b   : > { %4103 = vmatprep.mubr.f32.mxu0 %v8664_v16  ;;  %4549 = vmatpush1.msra.mxu1 %v4494_v47  ;;  %v4490_v47 = vld [vmem:[#allocation8 + $0x320] sm:$0xff] }
 0x43c   : > { %6291 = vmatmul.mubr.f32.gmra.mxu1 %v10504_v36  ;;  %4550 = vmatprep.subr.mxu1 %v10394_v49 }
 0x43d   : > { %6293 = vmatprep.mubr.f32.mxu1 %v10505_v14  ;;  %4551 = vmatpush1.msra.mxu1 %v4493_v17  ;;  %v4489_v17 = vld [vmem:[#allocation8 + $0x318] sm:$0xff] }
 0x43e   : > { %4104 = vmatmul.mubr.f32.gmra.mxu0 %v8975_v28  ;;  %4552 = vmatprep.subr.mxu1 %v10394_v49 }
 0x43f   : > { %4108 = vmatprep.mubr.f32.mxu0 %v8673_v52  ;;  %4553 = vmatpush1.msra.mxu1 %v4492_v53  ;;  %v4488_v53 = vld [vmem:[#allocation8 + $0x310] sm:$0xff] }
 0x440   : > { %6294 = vmatmul.mubr.f32.gmra.mxu1 %v10506_v15  ;;  %4554 = vmatprep.subr.mxu1 %v10394_v49  ;;  %v10509_v52 = vld [vmem:[#allocation35_spill] sm:$0xff] }
 0x441   : > { %6296 = vmatprep.mubr.f32.mxu1 %v10507_v3  ;;  %4555 = vmatpush1.msra.mxu1 %v4491_v35  ;;  %v4487_v35 = vld [vmem:[#allocation8 + $0x308] sm:$0xff] }
 0x442   : > { %4109 = vmatmul.mubr.f32.gmra.mxu0 %v8984_v32  ;;  %4556 = vmatprep.subr.mxu1 %v10394_v49  ;;  %v10510_v32 = vld [vmem:[#allocation36_spill] sm:$0xff] }
 0x443   : > { %4113 = vmatprep.mubr.f32.mxu0 %v8697_v54  ;;  %4557 = vmatpush1.msra.mxu1 %v4490_v47  ;;  %v4486_v47 = vld [vmem:[#allocation8 + $0x300] sm:$0xff]  ;;  %v10511_v54 = vld [vmem:[#allocation38_spill] sm:$0xff] }
 0x444   : > { %6297 = vmatmul.mubr.f32.gmra.mxu1 %v10508_v23  ;;  %4558 = vmatprep.subr.mxu1 %v10394_v49 }
 0x445   : > { %6299 = vmatprep.mubr.f32.mxu1 %v10509_v52  ;;  %4559 = vmatpush1.msra.mxu1 %v4489_v17  ;;  %v4517_v17 = vld [vmem:[#allocation8 + $0x3f8] sm:$0xff] }
 0x446   : > { %4114 = vmatmul.mubr.f32.gmra.mxu0 %v8994_v51  ;;  %4560 = vmatprep.subr.mxu1 %v10394_v49  ;;  %v10512_v51 = vld [vmem:[#allocation40_spill] sm:$0xff] }
 0x447   : > { %4118 = vmatprep.mubr.f32.mxu0 %v8706_v19  ;;  %4561 = vmatpush1.msra.mxu1 %v4488_v53  ;;  %v4516_v53 = vld [vmem:[#allocation8 + $0x3f0] sm:$0xff]  ;;  %v10513_v19 = vld [vmem:[#allocation18_spill] sm:$0xff] }
 0x448   : > { %6300 = vmatmul.mubr.f32.gmra.mxu1 %v10510_v32  ;;  %4562 = vmatprep.subr.mxu1 %v10394_v49 }
 0x449   : > { %6302 = vmatprep.mubr.f32.mxu1 %v10511_v54  ;;  %4563 = vmatpush1.msra.mxu1 %v4487_v35  ;;  %v4515_v35 = vld [vmem:[#allocation8 + $0x3e8] sm:$0xff] }
 0x44a   : > { %4119 = vmatmul.mubr.f32.gmra.mxu0 %v9003_v43  ;;  %4564 = vmatprep.subr.mxu1 %v10394_v49  ;;  %v10514_v43 = vld [vmem:[#allocation17_spill] sm:$0xff] }
 0x44b   : > { %4123 = vmatprep.mubr.f32.mxu0 %v8729_v44  ;;  %4565 = vmatpush1.msra.mxu1 %v4486_v47  ;;  %v4514_v47 = vld [vmem:[#allocation8 + $0x3e0] sm:$0xff]  ;;  %v10515_v44 = vld [vmem:[#allocation15_spill] sm:$0xff] }
 0x44c   : > { %6303 = vmatmul.mubr.f32.gmra.mxu1 %v10512_v51  ;;  %4566 = vmatprep.subr.mxu1 %v10394_v49 }
 0x44d   : > { %6305 = vmatprep.mubr.f32.mxu1 %v10513_v19  ;;  %4567 = vmatpush2.msra.mxu1 %v4517_v17  ;;  %v4513_v17 = vld [vmem:[#allocation8 + $0x3d8] sm:$0xff] }
 0x44e   : > { %4124 = vmatmul.mubr.f32.gmra.mxu0 %v9013_v50  ;;  %4568 = vmatprep.subr.mxu1 %v10394_v49  ;;  %v10516_v50 = vld [vmem:[#allocation41_spill] sm:$0xff] }
 0x44f   : > { %4128 = vmatprep.mubr.f32.mxu0 %v8738_v4  ;;  %4569 = vmatpush2.msra.mxu1 %v4516_v53  ;;  %v4512_v53 = vld [vmem:[#allocation8 + $0x3d0] sm:$0xff]  ;;  %v10517_v4 = vld [vmem:[#allocation42_spill] sm:$0xff] }
 0x450   : > { %6306 = vmatmul.mubr.f32.gmra.mxu1 %v10514_v43  ;;  %4570 = vmatprep.subr.mxu1 %v10394_v49 }
 0x451   : > { %6308 = vmatprep.mubr.f32.mxu1 %v10515_v44  ;;  %4571 = vmatpush2.msra.mxu1 %v4515_v35  ;;  %v4511_v35 = vld [vmem:[#allocation8 + $0x3c8] sm:$0xff] }
 0x452   : > { %4129 = vmatmul.mubr.f32.gmra.mxu0 %v9023_v41  ;;  %4572 = vmatprep.subr.mxu1 %v10394_v49  ;;  %v10518_v41 = vld [vmem:[#allocation45_spill] sm:$0xff] }
 0x453   : > { %4133 = vmatprep.mubr.f32.mxu0 %v8782_v60  ;;  %4573 = vmatpush2.msra.mxu1 %v4514_v47  ;;  %v4510_v47 = vld [vmem:[#allocation8 + $0x3c0] sm:$0xff]  ;;  %v10519_v60 = vld [vmem:[#allocation47_spill] sm:$0xff] }
 0x454   : > { %6309 = vmatmul.mubr.f32.gmra.mxu1 %v10516_v50  ;;  %4574 = vmatprep.subr.mxu1 %v10394_v49 }
 0x455   : > { %6311 = vmatprep.mubr.f32.mxu1 %v10517_v4  ;;  %4575 = vmatpush2.msra.mxu1 %v4513_v17  ;;  %v4509_v17 = vld [vmem:[#allocation8 + $0x3b8] sm:$0xff] }
 0x456   : > { %4134 = vmatmul.mubr.f32.gmra.mxu0 %v9034_v12  ;;  %4576 = vmatprep.subr.mxu1 %v10394_v49  ;;  %v10520_v12 = vld [vmem:[#allocation49_spill] sm:$0xff] }
 0x457   : > { %4138 = vmatprep.mubr.f32.mxu0 %v8784_v18  ;;  %4577 = vmatpush2.msra.mxu1 %v4512_v53  ;;  %v4508_v53 = vld [vmem:[#allocation8 + $0x3b0] sm:$0xff]  ;;  %v10521_v18 = vld [vmem:[#allocation50_spill] sm:$0xff] }
 0x458   : > { %6312 = vmatmul.mubr.f32.gmra.mxu1 %v10518_v41  ;;  %4578 = vmatprep.subr.mxu1 %v10394_v49 }
 0x459   : > { %6314 = vmatprep.mubr.f32.mxu1 %v10519_v60  ;;  %4579 = vmatpush2.msra.mxu1 %v4511_v35  ;;  %v4507_v35 = vld [vmem:[#allocation8 + $0x3a8] sm:$0xff] }
 0x45a   : > { %4139 = vmatmul.mubr.f32.gmra.mxu0 %v9043_v30  ;;  %4580 = vmatprep.subr.mxu1 %v10394_v49  ;;  %v10522_v30 = vld [vmem:[#allocation53_spill] sm:$0xff] }
 0x45b   : > { %4143 = vmatprep.mubr.f32.mxu0 %v8804_v59  ;;  %4581 = vmatpush2.msra.mxu1 %v4510_v47  ;;  %v4506_v47 = vld [vmem:[#allocation8 + $0x3a0] sm:$0xff]  ;;  %v10523_v59 = vld [vmem:[#allocation55_spill] sm:$0xff] }
 0x45c   : > { %6315 = vmatmul.mubr.f32.gmra.mxu1 %v10520_v12  ;;  %4582 = vmatprep.subr.mxu1 %v10394_v49 }
 0x45d   : > { %6317 = vmatprep.mubr.f32.mxu1 %v10521_v18  ;;  %4583 = vmatpush2.msra.mxu1 %v4509_v17  ;;  %v4505_v17 = vld [vmem:[#allocation8 + $0x398] sm:$0xff] }
 0x45e   : > { %4144 = vmatmul.mubr.f32.gmra.mxu0 %v9053_v2  ;;  %4584 = vmatprep.subr.mxu1 %v10394_v49  ;;  %v10524_v2 = vld [vmem:[#allocation57_spill] sm:$0xff] }
 0x45f   : > { %4148 = vmatprep.mubr.f32.mxu0 %v8814_v57  ;;  %4585 = vmatpush2.msra.mxu1 %v4508_v53  ;;  %v4504_v53 = vld [vmem:[#allocation8 + $0x390] sm:$0xff]  ;;  %v10525_v57 = vld [vmem:[#allocation58_spill] sm:$0xff] }
 0x460   : > { %6318 = vmatmul.mubr.f32.gmra.mxu1 %v10522_v30  ;;  %4586 = vmatprep.subr.mxu1 %v10394_v49 }
 0x461   : > { %6320 = vmatprep.mubr.f32.mxu1 %v10523_v59  ;;  %4587 = vmatpush2.msra.mxu1 %v4507_v35  ;;  %v4503_v35 = vld [vmem:[#allocation8 + $0x388] sm:$0xff] }
 0x462   : > { %4149 = vmatmul.mubr.f32.gmra.mxu0 %v9062_v34  ;;  %4588 = vmatprep.subr.mxu1 %v10394_v49  ;;  %v10526_v34 = vld [vmem:[#allocation59_spill] sm:$0xff] }
 0x463   : > { %4153 = vmatprep.mubr.f32.mxu0 %v8852_v26  ;;  %4589 = vmatpush2.msra.mxu1 %v4506_v47  ;;  %v4502_v47 = vld [vmem:[#allocation8 + $0x380] sm:$0xff] }
 0x464   : > { %6321 = vmatmul.mubr.f32.gmra.mxu1 %v10524_v2  ;;  %4590 = vmatprep.subr.mxu1 %v10394_v49 }
 0x465   : > { %6323 = vmatprep.mubr.f32.mxu1 %v10525_v57  ;;  %4591 = vmatpush2.msra.mxu1 %v4505_v17 }
 0x466   : > { %4154 = vmatmul.mubr.f32.gmra.mxu0 %v9072_v46  ;;  %4592 = vmatprep.subr.mxu1 %v10394_v49 }
 0x467   : > { %4158 = vmatprep.mubr.f32.mxu0 %v8854_v45  ;;  %4593 = vmatpush2.msra.mxu1 %v4504_v53 }
 0x468   : > { %6324 = vmatmul.mubr.f32.gmra.mxu1 %v10526_v34  ;;  %4594 = vmatprep.subr.mxu1 %v10394_v49 }
 0x469   : > { %4595 = vmatpush2.msra.mxu1 %v4503_v35  ;;  %4598 = vmatprep.mubr.f32.mxu1 %v8422_v11  ;;  %v3555_v26 = vpop.f32.mrf.mxu1 }
 0x46a   : > { %4159 = vmatmul.mubr.f32.gmra.mxu0 %v9081_v33  ;;  %4596 = vmatprep.subr.mxu1 %v10394_v49  ;;  %v6200_v17 = vpop.f32.mrf.mxu0 }
 0x46b   : > { %6358 = vmatprep.mubr.f32.mxu0 %v8465_v22  ;;  %4597 = vmatpush2.msra.mxu1 %v4502_v47  ;;  %v3557_v46 = vpop.f32.mrf.mxu1  ;;  %v10527_v47 = vld [vmem:[#allocation13_spill] sm:$0xff] }
 0x46c   : > { %4599 = vmatmul.mubr.f32.vlgmr.msra.gmra.mxu1 %v8517_v38  ;;  %v3780_v53 = vpop.f32.mrf.mxu0 }
 0x46d   : > { %4603 = vmatprep.mubr.f32.mxu1 %v8424_v7  ;;  %v9203_v45 = vadd.f32 %v3780_v53, %v3555_v26  ;;  %v3560_v35 = vpop.f32.mrf.mxu1 }
 0x46e   : > { %6359 = vmatmul.mubr.f32.vlgmr.msra.gmra.mxu0 %v8492_v62  ;;  %v9206_v11 = vadd.f32 %v6200_v17, %v3560_v35  ;;  %v6203_v33 = vpop.f32.mrf.mxu0  ;;  %v10528_v17 = vld [vmem:[#allocation21_spill] sm:$0xff] }
 0x46f   : > { %6361 = vmatprep.mubr.f32.mxu0 %v10501_v0  ;;  %v3562_v49 = vpop.f32.mrf.mxu1 }
 0x470   : > { %4604 = vmatmul.mubr.f32.gmra.mxu1 %v8552_v9  ;;  %v3790_v22 = vpop.f32.mrf.mxu0 }
 0x471   : > { %4608 = vmatprep.mubr.f32.mxu1 %v8435_v58  ;;  %v3565_v38 = vpop.f32.mrf.mxu1 }
 0x472   : > { %6362 = vmatmul.mubr.f32.gmra.mxu0 %v10502_v1  ;;  %v9212_v7 = vadd.f32 %v3790_v22, %v3565_v38  ;;  %v10530_v38 = vld [vmem:[#allocation24_spill] sm:$0xff] }
 0x473   : > { %6364 = vmatprep.mubr.f32.mxu0 %v10503_v42  ;;  %v6206_v26 = vpop.f32.mrf.mxu0  ;;  %v3567_v62 = vpop.f32.mrf.mxu1 }
 0x474   : > { %4609 = vmatmul.mubr.f32.gmra.mxu1 %v8587_v6 }
 0x475   : > { %4613 = vmatprep.mubr.f32.mxu1 %v8437_v55  ;;  %v3800_v46 = vpop.f32.mrf.mxu0  ;;  %v3570_v0 = vpop.f32.mrf.mxu1 }
 0x476   : > { %6365 = vmatmul.mubr.f32.gmra.mxu0 %v10504_v36  ;;  %v9218_v9 = vadd.f32 %v6203_v33, %v3570_v0  ;;  %v10529_v33 = vld [vmem:[#allocation22_spill] sm:$0xff] }
 0x477   : > { %6367 = vmatprep.mubr.f32.mxu0 %v10505_v14  ;;  %v6209_v58 = vpop.f32.mrf.mxu0  ;;  %v3572_v1 = vpop.f32.mrf.mxu1 }
 0x478   : > { %4614 = vmatmul.mubr.f32.gmra.mxu1 %v10527_v47 }
 0x479   : > { %4618 = vmatprep.mubr.f32.mxu1 %v10528_v17  ;;  %v3810_v42 = vpop.f32.mrf.mxu0  ;;  %v3575_v53 = vpop.f32.mrf.mxu1 }
 0x47a   : > { %6368 = vmatmul.mubr.f32.gmra.mxu0 %v10506_v15  ;;  %v9224_v6 = vadd.f32 %v3800_v46, %v3575_v53 }
 0x47b   : > { %6370 = vmatprep.mubr.f32.mxu0 %v10507_v3  ;;  %v6212_v55 = vpop.f32.mrf.mxu0  ;;  %v3577_v36 = vpop.f32.mrf.mxu1 }
 0x47c   : > { %4619 = vmatmul.mubr.f32.gmra.mxu1 %v8656_v5 }
 0x47d   : > { %4623 = vmatprep.mubr.f32.mxu1 %v10529_v33  ;;  %v3820_v14 = vpop.f32.mrf.mxu0  ;;  %v3580_v35 = vpop.f32.mrf.mxu1 }
 0x47e   : > { %6371 = vmatmul.mubr.f32.gmra.mxu0 %v10508_v23  ;;  %v9230_v49 = vadd.f32 %v6206_v26, %v3580_v35  ;;  %v10531_v26 = vld [vmem:[#allocation25_spill] sm:$0xff] }
 0x47f   : > { %6373 = vmatprep.mubr.f32.mxu0 %v10509_v52  ;;  %v6215_v22 = vpop.f32.mrf.mxu0  ;;  %v3582_v15 = vpop.f32.mrf.mxu1 }
 0x480   : > { %4624 = vmatmul.mubr.f32.gmra.mxu1 %v8690_v37 }
 0x481   : > { %4628 = vmatprep.mubr.f32.mxu1 %v10530_v38  ;;  %v3830_v3 = vpop.f32.mrf.mxu0  ;;  %v3585_v62 = vpop.f32.mrf.mxu1  ;;  %v10535_v38 = vld [vmem:[#allocation61_spill] sm:$0xff] }
 0x482   : > { %6374 = vmatmul.mubr.f32.gmra.mxu0 %v10510_v32  ;;  %v9236_v5 = vadd.f32 %v3810_v42, %v3585_v62 }
 0x483   : > { %6376 = vmatprep.mubr.f32.mxu0 %v10511_v54  ;;  %v6218_v46 = vpop.f32.mrf.mxu0  ;;  %v3587_v23 = vpop.f32.mrf.mxu1  ;;  %v10532_v54 = vld [vmem:[#allocation26_spill] sm:$0xff] }
 0x484   : > { %4629 = vmatmul.mubr.f32.gmra.mxu1 %v8721_v61 }
 0x485   : > { %4633 = vmatprep.mubr.f32.mxu1 %v10531_v26  ;;  %v3840_v52 = vpop.f32.mrf.mxu0  ;;  %v3590_v0 = vpop.f32.mrf.mxu1  ;;  %v10537_v26 = vld [vmem:[#allocation37_spill] sm:$0xff] }
 0x486   : > { %6377 = vmatmul.mubr.f32.gmra.mxu0 %v10512_v51  ;;  %v9242_v37 = vadd.f32 %v6209_v58, %v3590_v0 }
 0x487   : > { %6379 = vmatprep.mubr.f32.mxu0 %v10513_v19  ;;  %v9245_v1 = vpop.f32.mrf.mxu0  ;;  %v3592_v32 = vpop.f32.mrf.mxu1  ;;  %v10533_v19 = vld [vmem:[#allocation28_spill] sm:$0xff] }
 0x488   : > { %4634 = vmatmul.mubr.f32.gmra.mxu1 %v8755_v29  ;;  %v10538_v32 = vld [vmem:[#allocation62_spill] sm:$0xff] }
 0x489   : > { %4638 = vmatprep.mubr.f32.mxu1 %v10532_v54  ;;  %v3850_v47 = vpop.f32.mrf.mxu0  ;;  %v3595_v17 = vpop.f32.mrf.mxu1  ;;  %v10539_v54 = vld [vmem:[#allocation39_spill] sm:$0xff] }
 0x48a   : > { %6380 = vmatmul.mubr.f32.gmra.mxu0 %v10514_v43  ;;  %v9250_v61 = vadd.f32 %v3820_v14, %v3595_v17 }
 0x48b   : > { %6382 = vmatprep.mubr.f32.mxu0 %v10515_v44  ;;  %v9253_v51 = vpop.f32.mrf.mxu0  ;;  %v3597_v58 = vpop.f32.mrf.mxu1 }
 0x48c   : > { %4639 = vmatmul.mubr.f32.gmra.mxu1 %v8790_v31 }
 0x48d   : > { %4643 = vmatprep.mubr.f32.mxu1 %v10533_v19  ;;  %v9257_v42 = vpop.f32.mrf.mxu0  ;;  %v3600_v29 = vpop.f32.mrf.mxu1 }
 0x48e   : > { %6383 = vmatmul.mubr.f32.gmra.mxu0 %v10516_v50  ;;  %v9260_v53 = vadd.f32 %v6212_v55, %v3600_v29  ;;  %v10540_v29 = vld [vmem:[#allocation63_spill] sm:$0xff] }
 0x48f   : > { %6385 = vmatprep.mubr.f32.mxu0 %v10517_v4  ;;  %v9263_v43 = vpop.f32.mrf.mxu0  ;;  %v3602_v36 = vpop.f32.mrf.mxu1 }
 0x490   : > { %4644 = vmatmul.mubr.f32.gmra.mxu1 %v8821_v20 }
 0x491   : > { %4648 = vmatprep.mubr.f32.mxu1 %v8561_v27  ;;  %v9267_v44 = vpop.f32.mrf.mxu0 }
 0x492   : > { %v3605_v31 = vpop.f32.mrf.mxu1  ;;  %6386 = vmatmul.mubr.f32.gmra.mxu0 %v10518_v41 }
 0x493   : > { %v9270_v33 = vadd.f32 %v3830_v3, %v3605_v31  ;;  %6388 = vmatprep.mubr.f32.mxu0 %v10519_v60  ;;  %v9273_v50 = vpop.f32.mrf.mxu0 }
 0x494   : > { %v3607_v55 = vpop.f32.mrf.mxu1  ;;  %4649 = vmatmul.mubr.f32.gmra.mxu1 %v8860_v21 }
 0x495   : > { %4653 = vmatprep.mubr.f32.mxu1 %v8570_v13  ;;  %v9277_v4 = vpop.f32.mrf.mxu0 }
 0x496   : > { %v3610_v20 = vpop.f32.mrf.mxu1  ;;  %6389 = vmatmul.mubr.f32.gmra.mxu0 %v10520_v12 }
 0x497   : > { %v9280_v27 = vadd.f32 %v6215_v22, %v3610_v20  ;;  %6391 = vmatprep.mubr.f32.mxu0 %v10521_v18 }
 0x498   : > { %v3612_v41 = vpop.f32.mrf.mxu1  ;;  %4654 = vmatmul.mubr.f32.gmra.mxu1 %v8886_v8  ;;  %v9284_v60 = vpop.f32.mrf.mxu0 }
 0x499   : > { %4658 = vmatprep.mubr.f32.mxu1 %v8595_v56  ;;  %v10542_v41 = vld [vmem:[#allocation64_spill] sm:$0xff] }
 0x49a   : > { %6392 = vmatmul.mubr.f32.gmra.mxu0 %v10522_v30  ;;  %v9288_v21 = vpop.f32.mrf.mxu0  ;;  %v3615_v13 = vpop.f32.mrf.mxu1 }
 0x49b   : > { %6394 = vmatprep.mubr.f32.mxu0 %v10523_v59  ;;  %v9291_v14 = vadd.f32 %v3840_v52, %v3615_v13 }
 0x49c   : > { %4659 = vmatmul.mubr.f32.gmra.mxu1 %v8913_v48  ;;  %v9294_v12 = vpop.f32.mrf.mxu0  ;;  %v3617_v18 = vpop.f32.mrf.mxu1  ;;  %v10534_v48 = vld [vmem:[#allocation60_spill] sm:$0xff] }
 0x49d   : > { %4663 = vmatprep.mubr.f32.mxu1 %v8604_v10 }
 0x49e   : > { %6395 = vmatmul.mubr.f32.gmra.mxu0 %v10524_v2  ;;  %v9298_v8 = vpop.f32.mrf.mxu0  ;;  %v3620_v56 = vpop.f32.mrf.mxu1 }
 0x49f   : > { %6397 = vmatprep.mubr.f32.mxu0 %v10525_v57  ;;  %v9301_v30 = vadd.f32 %v6218_v46, %v3620_v56 }
 0x4a0   : > { %4664 = vmatmul.mubr.f32.gmra.mxu1 %v8935_v39  ;;  %v3622_v59 = vpop.f32.mrf.mxu1 }
 0x4a1   : > { %v9304_v35 = vpop.f32.mrf.mxu0  ;;  %4668 = vmatprep.mubr.f32.mxu1 %v8630_v63 }
 0x4a2   : > { %6398 = vmatmul.mubr.f32.gmra.mxu0 %v10526_v34 }
 0x4a3   : > { %6400 = vmatprep.mubr.f32.mxu0 %v10534_v48  ;;  %v9309_v10 = vpop.f32.mrf.mxu0  ;;  %v3625_v2 = vpop.f32.mrf.mxu1 }
 0x4a4   : > { %v9311_v22 = vadd.f32 %v3850_v47, %v3625_v2  ;;  %4669 = vmatmul.mubr.f32.gmra.mxu1 %v8952_v24 }
 0x4a5   : > { %v9314_v15 = vpop.f32.mrf.mxu0  ;;  %4673 = vmatprep.mubr.f32.mxu1 %v8639_v25  ;;  %v3627_v39 = vpop.f32.mrf.mxu1  ;;  %v10536_v25 = vmov 1.0  }
 0x4a6   : > { %6401 = vmatmul.mubr.f32.gmra.mxu0 %v10535_v38  ;;  %v10544_v39 = vld [vmem:[#allocation65_spill] sm:$0xff]  ;;  %v10545_v38 = vld [vmem:[#allocation16_spill] sm:$0xff] }
 0x4a7   : > { %6403 = vmatprep.mubr.f32.mxu0 %v10525_v57  ;;  %v9319_v63 = vpop.f32.mrf.mxu0  ;;  %v3630_v3 = vpop.f32.mrf.mxu1 }
 0x4a8   : > { %v9322_v62 = vadd.f32 %v9245_v1, %v3630_v3  ;;  %4674 = vmatmul.mubr.f32.gmra.mxu1 %v8964_v40 }
 0x4a9   : > { %4678 = vmatprep.mubr.f32.mxu1 %v8664_v16  ;;  %v3632_v24 = vpop.f32.mrf.mxu1 }
 0x4aa   : > { %v9326_v46 = vpop.f32.mrf.mxu0  ;;  %6404 = vmatmul.mubr.f32.gmra.mxu0 %v10526_v34 }
 0x4ab   : > { %5119 = vmatprep.mubr.f32.mxu0 %v10536_v25 }
 0x4ac   : > { %v9330_v23 = vpop.f32.mrf.mxu0  ;;  %v9332_v57 = vpop.f32.mrf.mxu1  ;;  %4679 = vmatmul.mubr.f32.gmra.mxu1 %v8975_v28 }
 0x4ad   : > { %4683 = vmatprep.mubr.f32.mxu1 %v10537_v26 }
 0x4ae   : > { %v4005_v52 = vpop.f32.mrf.mxu0  ;;  %v3637_v0 = vpop.f32.mrf.mxu1 }
 0x4af   : > { %v9337_v40 = vadd.f32 %v4005_v52, %v9203_v45  ;;  %v10541_v45 = vld [vmem:[#allocation19_spill] sm:$0xff]  ;;  %v10546_v0 = vld [vmem:[#allocation66_spill] sm:$0xff] }
 0x4b0   : > { %v4007_v16 = vpop.f32.mrf.mxu0  ;;  %v3640_v1 = vpop.f32.mrf.mxu1  ;;  %4684 = vmatmul.mubr.f32.gmra.mxu1 %v10538_v32 }
 0x4b1   : > { %v9341_v34 = vadd.f32 %v9253_v51, %v3640_v1  ;;  %4688 = vmatprep.mubr.f32.mxu1 %v10539_v54  ;;  %v10547_v16 = vld [vmem:[#allocation43_spill] sm:$0xff] }
 0x4b2   : > { %v4010_v47 = vpop.f32.mrf.mxu0  ;;  %v3642_v17 = vpop.f32.mrf.mxu1 }
 0x4b3   : > { %v9345_v28 = vadd.f32 %v4010_v47, %v9206_v11  ;;  %v10543_v11 = vld [vmem:[#allocation14_spill] sm:$0xff]  ;;  %v10548_v17 = vld [vmem:[#allocation67_spill] sm:$0xff] }
 0x4b4   : > { %v4012_v58 = vpop.f32.mrf.mxu0  ;;  %v9347_v19 = vpop.f32.mrf.mxu1  ;;  %4689 = vmatmul.mubr.f32.gmra.mxu1 %v10540_v29 }
 0x4b5   : > { %4693 = vmatprep.mubr.f32.mxu1 %v10541_v45  ;;  %v10549_v58 = vld [vmem:[#allocation44_spill] sm:$0xff] }
 0x4b6   : > { %v4015_v36 = vpop.f32.mrf.mxu0  ;;  %v3647_v31 = vpop.f32.mrf.mxu1 }
 0x4b7   : > { %v9352_v55 = vadd.f32 %v4015_v36, %v9212_v7 }
 0x4b8   : > { %v4017_v51 = vpop.f32.mrf.mxu0  ;;  %v3650_v20 = vpop.f32.mrf.mxu1  ;;  %4694 = vmatmul.mubr.f32.gmra.mxu1 %v10542_v41 }
 0x4b9   : > { %v9356_v13 = vadd.f32 %v9263_v43, %v3650_v20  ;;  %4698 = vmatprep.mubr.f32.mxu1 %v10543_v11  ;;  %v10550_v51 = vld [vmem:[#allocation68_spill] sm:$0xff]  ;;  %v10551_v20 = vld [vmem:[#allocation46_spill] sm:$0xff] }
 0x4ba   : > { %v4020_v18 = vpop.f32.mrf.mxu0  ;;  %v3652_v56 = vpop.f32.mrf.mxu1 }
 0x4bb   : > { %v9360_v59 = vadd.f32 %v4020_v18, %v9218_v9 }
 0x4bc   : > { %v4022_v48 = vpop.f32.mrf.mxu0  ;;  %v3655_v2 = vpop.f32.mrf.mxu1  ;;  %4699 = vmatmul.mubr.f32.gmra.mxu1 %v10544_v39 }
 0x4bd   : > { %v9364_v7 = vadd.f32 %v9277_v4, %v3655_v2  ;;  %4703 = vmatprep.mubr.f32.mxu1 %v10545_v38  ;;  %v10552_v48 = vld [vmem:[#allocation69_spill] sm:$0xff]  ;;  %v10553_v2 = vld [vmem:[#allocation48_spill] sm:$0xff] }
 0x4be   : > { %v4025_v3 = vpop.f32.mrf.mxu0  ;;  %v3657_v24 = vpop.f32.mrf.mxu1 }
 0x4bf   : > { %v9368_v43 = vadd.f32 %v4025_v3, %v9224_v6 }
 0x4c0   : > { %v4027_v26 = vpop.f32.mrf.mxu0  ;;  %v3660_v52 = vpop.f32.mrf.mxu1  ;;  %4704 = vmatmul.mubr.f32.gmra.mxu1 %v10546_v0 }
 0x4c1   : > { %v9372_v9 = vadd.f32 %v9273_v50, %v3660_v52  ;;  %4708 = vmatprep.mubr.f32.mxu1 %v10547_v16  ;;  %v10554_v26 = vld [vmem:[#allocation70_spill] sm:$0xff]  ;;  %v10555_v52 = vld [vmem:[#allocation51_spill] sm:$0xff] }
 0x4c2   : > { %v4030_v1 = vpop.f32.mrf.mxu0  ;;  %v3662_v32 = vpop.f32.mrf.mxu1 }
 0x4c3   : > { %v9376_v4 = vadd.f32 %v4030_v1, %v9230_v49 }
 0x4c4   : > { %v4032_v54 = vpop.f32.mrf.mxu0  ;;  %v3665_v47 = vpop.f32.mrf.mxu1  ;;  %4709 = vmatmul.mubr.f32.gmra.mxu1 %v10548_v17 }
 0x4c5   : > { %v9380_v6 = vadd.f32 %v9288_v21, %v3665_v47  ;;  %4713 = vmatprep.mubr.f32.mxu1 %v10549_v58  ;;  %v10556_v54 = vld [vmem:[#allocation71_spill] sm:$0xff]  ;;  %v10557_v47 = vld [vmem:[#allocation52_spill] sm:$0xff] }
 0x4c6   : > { %v4035_v29 = vpop.f32.mrf.mxu0  ;;  %v3667_v45 = vpop.f32.mrf.mxu1 }
 0x4c7   : > { %v9384_v50 = vadd.f32 %v4035_v29, %v9236_v5 }
 0x4c8   : > { %v4037_v36 = vpop.f32.mrf.mxu0  ;;  %v3670_v31 = vpop.f32.mrf.mxu1  ;;  %4714 = vmatmul.mubr.f32.gmra.mxu1 %v10550_v51 }
 0x4c9   : > { %v9388_v49 = vadd.f32 %v9284_v60, %v3670_v31  ;;  %4718 = vmatprep.mubr.f32.mxu1 %v10551_v20  ;;  %v10558_v36 = vld [vmem:[#allocation72_spill] sm:$0xff]  ;;  %v10559_v31 = vld [vmem:[#allocation54_spill] sm:$0xff] }
 0x4ca   : > { %v4040_v41 = vpop.f32.mrf.mxu0  ;;  %v3672_v11 = vpop.f32.mrf.mxu1 }
 0x4cb   : > { %v9392_v21 = vadd.f32 %v4040_v41, %v9242_v37 }
 0x4cc   : > { %v4042_v18 = vpop.f32.mrf.mxu0  ;;  %v3675_v56 = vpop.f32.mrf.mxu1  ;;  %4719 = vmatmul.mubr.f32.gmra.mxu1 %v10552_v48 }
 0x4cd   : > { %v9396_v5 = vadd.f32 %v9298_v8, %v3675_v56  ;;  %4723 = vmatprep.mubr.f32.mxu1 %v10553_v2  ;;  %v10560_v18 = vld [vmem:[#allocation73_spill] sm:$0xff]  ;;  %v10561_v56 = vld [vmem:[#allocation56_spill] sm:$0xff] }
 0x4ce   : > { %v4045_v39 = vpop.f32.mrf.mxu0  ;;  %v3677_v38 = vpop.f32.mrf.mxu1 }
 0x4cf   : > { %v9400_v60 = vadd.f32 %v4045_v39, %v9250_v61 }
 0x4d0   : > { %v4047_v3 = vpop.f32.mrf.mxu0  ;;  %v3680_v24 = vpop.f32.mrf.mxu1  ;;  %4724 = vmatmul.mubr.f32.gmra.mxu1 %v10554_v26 }
 0x4d1   : > { %v9404_v37 = vadd.f32 %v9294_v12, %v3680_v24  ;;  %4728 = vmatprep.mubr.f32.mxu1 %v10555_v52  ;;  %v10562_v3 = vld [vmem:[#allocation74_spill] sm:$0xff] }
 0x4d2   : > { %v4050_v0 = vpop.f32.mrf.mxu0  ;;  %v3682_v16 = vpop.f32.mrf.mxu1 }
 0x4d3   : > { %v9408_v8 = vadd.f32 %v4050_v0, %v9260_v53 }
 0x4d4   : > { %v4052_v1 = vpop.f32.mrf.mxu0  ;;  %v3685_v32 = vpop.f32.mrf.mxu1  ;;  %4729 = vmatmul.mubr.f32.gmra.mxu1 %v10556_v54 }
 0x4d5   : > { %v9412_v61 = vadd.f32 %v9309_v10, %v3685_v32  ;;  %4733 = vmatprep.mubr.f32.mxu1 %v10557_v47 }
 0x4d6   : > { %v4055_v17 = vpop.f32.mrf.mxu0  ;;  %v3687_v58 = vpop.f32.mrf.mxu1 }
 0x4d7   : > { %v9416_v12 = vadd.f32 %v4055_v17, %v9270_v33 }
 0x4d8   : > { %v4057_v29 = vpop.f32.mrf.mxu0  ;;  %v3690_v45 = vpop.f32.mrf.mxu1  ;;  %4734 = vmatmul.mubr.f32.gmra.mxu1 %v10558_v36 }
 0x4d9   : > { %v9420_v53 = vadd.f32 %v9304_v35, %v3690_v45  ;;  %4738 = vmatprep.mubr.f32.mxu1 %v10559_v31 }
 0x4da   : > { %v4060_v51 = vpop.f32.mrf.mxu0  ;;  %v3692_v20 = vpop.f32.mrf.mxu1 }
 0x4db   : > { %v9424_v10 = vadd.f32 %v4060_v51, %v9280_v27 }
 0x4dc   : > { %v4062_v41 = vpop.f32.mrf.mxu0  ;;  %v3695_v11 = vpop.f32.mrf.mxu1  ;;  %4739 = vmatmul.mubr.f32.gmra.mxu1 %v10560_v18 }
 0x4dd   : > { %v9428_v33 = vadd.f32 %v9319_v63, %v3695_v11  ;;  %4743 = vmatprep.mubr.f32.mxu1 %v10561_v56 }
 0x4de   : > { %v4065_v48 = vpop.f32.mrf.mxu0  ;;  %v3697_v2 = vpop.f32.mrf.mxu1 }
 0x4df   : > { %v9432_v35 = vadd.f32 %v4065_v48, %v9291_v14  ;;  %v3871_v48 = vadd.f32 %v9267_v44, %v9347_v19 }
 0x4e0   : > { %v4067_v39 = vpop.f32.mrf.mxu0  ;;  %v3700_v38 = vpop.f32.mrf.mxu1  ;;  %4744 = vmatmul.mubr.f32.gmra.mxu1 %v10562_v3 }
 0x4e1   : > { %v9436_v27 = vadd.f32 %v9314_v15, %v3700_v38  ;;  %4748 = vmatprep.mubr.f32.mxu1 %v10555_v52 }
 0x4e2   : > { %v4070_v24 = vpop.f32.mrf.mxu0  ;;  %v3702_v26 = vpop.f32.mrf.mxu1 }
 0x4e3   : > { %v4071_v63 = vadd.f32 %v4070_v24, %v9301_v30 }
 0x4e4   : > { %v4072_v0 = vpop.f32.mrf.mxu0  ;;  %v3705_v16 = vpop.f32.mrf.mxu1  ;;  %4749 = vmatmul.mubr.f32.gmra.mxu1 %v10556_v54 }
 0x4e5   : > { %v9442_v14 = vadd.f32 %v9330_v23, %v3705_v16  ;;  %4753 = vmatprep.mubr.f32.mxu1 %v10557_v47  ;;  %v3861_v47 = vadd.f32 %v9257_v42, %v9332_v57 }
 0x4e6   : > { %v4075_v1 = vpop.f32.mrf.mxu0  ;;  %v3707_v32 = vpop.f32.mrf.mxu1 }
 0x4e7   : > { %v9446_v15 = vadd.f32 %v4075_v1, %v9311_v22 }
 0x4e8   : > { %v4077_v17 = vpop.f32.mrf.mxu0  ;;  %v3710_v52 = vpop.f32.mrf.mxu1  ;;  %4754 = vmatmul.mubr.f32.gmra.mxu1 %v10558_v36 }
 0x4e9   : > { %v9450_v30 = vadd.f32 %v9326_v46, %v3710_v52 }
 0x4ea   : > { %v4080_v58 = vpop.f32.mrf.mxu0  ;;  %v3712_v29 = vpop.f32.mrf.mxu1 }
 0x4eb   : > { %v4081_v54 = vadd.f32 %v4080_v58, %v9322_v62 }
 0x4ec   : > { %v4082_v23 = vpop.f32.mrf.mxu0  ;;  %v6280_v45 = vpop.f32.mrf.mxu1 }
 0x4ed   : > { %v9456_v31 = vadd.f32 %v6280_v45, %v9345_v28 }
 0x4ee   : > { %v4085_v22 = vpop.f32.mrf.mxu0  ;;  %v4230_v51 = vpop.f32.mrf.mxu1 }
 0x4ef   : > { %v4086_v20 = vadd.f32 %v4085_v22, %v3861_v47  ;;  %v9459_v36 = vadd.f32 %v4230_v51, %v9337_v40 }
 0x4f0   : > { %v4087_v46 = vpop.f32.mrf.mxu0  ;;  %v6283_v41 = vpop.f32.mrf.mxu1 }
 0x4f1   : > { %v9462_v11 = vadd.f32 %v6283_v41, %v9360_v59 }
 0x4f2   : > { %v4090_v62 = vpop.f32.mrf.mxu0  ;;  %v4240_v18 = vpop.f32.mrf.mxu1 }
 0x4f3   : > { %v4091_v56 = vadd.f32 %v4090_v62, %v9341_v34  ;;  %v9466_v42 = vadd.f32 %v4240_v18, %v9352_v55 }
 0x4f4   : > { %v4092_v57 = vpop.f32.mrf.mxu0  ;;  %v6286_v28 = vpop.f32.mrf.mxu1 }
 0x4f5   : > { %v9471_v40 = vadd.f32 %v6286_v28, %v9376_v4 }
 0x4f6   : > { %v4095_v2 = vpop.f32.mrf.mxu0  ;;  %v4250_v39 = vpop.f32.mrf.mxu1 }
 0x4f7   : > { %v4096_v38 = vadd.f32 %v4095_v2, %v3871_v48  ;;  %v9474_v59 = vadd.f32 %v4250_v39, %v9368_v43 }
 0x4f8   : > { %v4097_v3 = vpop.f32.mrf.mxu0  ;;  %v6289_v24 = vpop.f32.mrf.mxu1 }
 0x4f9   : > { %v9477_v34 = vadd.f32 %v6289_v24, %v9392_v21 }
 0x4fa   : > { %v4100_v55 = vpop.f32.mrf.mxu0  ;;  %v4260_v26 = vpop.f32.mrf.mxu1 }
 0x4fb   : > { %v4101_v0 = vadd.f32 %v4100_v55, %v9356_v13  ;;  %v9481_v44 = vadd.f32 %v4260_v26, %v9384_v50 }
 0x4fc   : > { %v4102_v19 = vpop.f32.mrf.mxu0  ;;  %v6292_v4 = vpop.f32.mrf.mxu1 }
 0x4fd   : > { %v9484_v16 = vadd.f32 %v6292_v4, %v9408_v8 }
 0x4fe   : > { %v4105_v1 = vpop.f32.mrf.mxu0  ;;  %v4270_v43 = vpop.f32.mrf.mxu1 }
 0x4ff   : > { %v4106_v32 = vadd.f32 %v4105_v1, %v9364_v7  ;;  %v9488_v17 = vadd.f32 %v4270_v43, %v9400_v60 }
 0x500   : > { %v4107_v21 = vpop.f32.mrf.mxu0  ;;  %v6295_v52 = vpop.f32.mrf.mxu1 }
 0x501   : > { %v9491_v58 = vadd.f32 %v6295_v52, %v9424_v10 }
 0x502   : > { %v4110_v13 = vpop.f32.mrf.mxu0  ;;  %v4280_v50 = vpop.f32.mrf.mxu1 }
 0x503   : > { %v4111_v29 = vadd.f32 %v4110_v13, %v9372_v9  ;;  %v9495_v23 = vadd.f32 %v4280_v50, %v9416_v12 }
 0x504   : > { %v4112_v8 = vpop.f32.mrf.mxu0  ;;  %v6298_v45 = vpop.f32.mrf.mxu1 }
 0x505   : > { %v9497_v47 = vadd.f32 %v6298_v45, %v4071_v63 }
 0x506   : > { %v4115_v7 = vpop.f32.mrf.mxu0  ;;  %v4290_v22 = vpop.f32.mrf.mxu1 }
 0x507   : > { %v4116_v60 = vadd.f32 %v4115_v7, %v9380_v6  ;;  %v9501_v51 = vadd.f32 %v4290_v22, %v9432_v35 }
 0x508   : > { %v4117_v10 = vpop.f32.mrf.mxu0  ;;  %v6301_v46 = vpop.f32.mrf.mxu1 }
 0x509   : > { %v9503_v41 = vadd.f32 %v6301_v46, %v4081_v54 }
 0x50a   : > { %v4120_v62 = vpop.f32.mrf.mxu0  ;;  %v4300_v9 = vpop.f32.mrf.mxu1 }
 0x50b   : > { %v4121_v12 = vadd.f32 %v4120_v62, %v9388_v49  ;;  %v9507_v18 = vadd.f32 %v4300_v9, %v9446_v15 }
 0x50c   : > { %v4122_v63 = vpop.f32.mrf.mxu0  ;;  %v6304_v57 = vpop.f32.mrf.mxu1 }
 0x50d   : > { %v9509_v28 = vadd.f32 %v6304_v57, %v4091_v56 }
 0x50e   : > { %v4125_v48 = vpop.f32.mrf.mxu0  ;;  %v4310_v6 = vpop.f32.mrf.mxu1 }
 0x50f   : > { %v4126_v35 = vadd.f32 %v4125_v48, %v9396_v5  ;;  %v9512_v2 = vadd.f32 %v4310_v6, %v4086_v20 }
 0x510   : > { %v4127_v39 = vpop.f32.mrf.mxu0  ;;  %v6307_v54 = vpop.f32.mrf.mxu1 }
 0x511   : > { %v9514_v3 = vadd.f32 %v6307_v54, %v4101_v0 }
 0x512   : > { %v4130_v24 = vpop.f32.mrf.mxu0  ;;  %v4320_v55 = vpop.f32.mrf.mxu1 }
 0x513   : > { %v4131_v49 = vadd.f32 %v4130_v24, %v9404_v37  ;;  %v9517_v15 = vadd.f32 %v4320_v55, %v4096_v38 }
 0x514   : > { %v4132_v26 = vpop.f32.mrf.mxu0  ;;  %v6310_v19 = vpop.f32.mrf.mxu1 }
 0x515   : > { %v9519_v56 = vadd.f32 %v6310_v19, %v4111_v29 }
 0x516   : > { %v4135_v4 = vpop.f32.mrf.mxu0  ;;  %v4330_v1 = vpop.f32.mrf.mxu1 }
 0x517   : > { %v4136_v5 = vadd.f32 %v4135_v4, %v9412_v61  ;;  %v9522_v20 = vadd.f32 %v4330_v1, %v4106_v32 }
 0x518   : > { %v4137_v43 = vpop.f32.mrf.mxu0  ;;  %v6313_v21 = vpop.f32.mrf.mxu1 }
 0x519   : > { %v9524_v0 = vadd.f32 %v6313_v21, %v4121_v12 }
 0x51a   : > { %v4140_v52 = vpop.f32.mrf.mxu0  ;;  %v4340_v13 = vpop.f32.mrf.mxu1 }
 0x51b   : > { %v4141_v37 = vadd.f32 %v4140_v52, %v9420_v53  ;;  %v9527_v38 = vadd.f32 %v4340_v13, %v4116_v60 }
 0x51c   : > { %v4142_v50 = vpop.f32.mrf.mxu0  ;;  %v6316_v8 = vpop.f32.mrf.mxu1 }
 0x51d   : > { %v9529_v29 = vadd.f32 %v6316_v8, %v4131_v49 }
 0x51e   : > { %v4145_v45 = vpop.f32.mrf.mxu0  ;;  %v4350_v7 = vpop.f32.mrf.mxu1 }
 0x51f   : > { %v4146_v61 = vadd.f32 %v4145_v45, %v9428_v33  ;;  %v9532_v32 = vadd.f32 %v4350_v7, %v4126_v35 }
 0x520   : > { %v4147_v22 = vpop.f32.mrf.mxu0  ;;  %v6319_v10 = vpop.f32.mrf.mxu1 }
 0x521   : > { %v9534_v46 = vadd.f32 %v6319_v10, %v4141_v37 }
 0x522   : > { %v4150_v62 = vpop.f32.mrf.mxu0  ;;  %v4360_v9 = vpop.f32.mrf.mxu1 }
 0x523   : > { %v4151_v53 = vadd.f32 %v4150_v62, %v9436_v27  ;;  %v9537_v60 = vadd.f32 %v4360_v9, %v4136_v5 }
 0x524   : > { %v4152_v12 = vpop.f32.mrf.mxu0  ;;  %v6322_v63 = vpop.f32.mrf.mxu1 }
 0x525   : > { %v9539_v57 = vadd.f32 %v6322_v63, %v4151_v53 }
 0x526   : > { %v4155_v48 = vpop.f32.mrf.mxu0  ;;  %v4370_v6 = vpop.f32.mrf.mxu1 }
 0x527   : > { %v4156_v33 = vadd.f32 %v4155_v48, %v9442_v14  ;;  %v9542_v35 = vadd.f32 %v4370_v6, %v4146_v61 }
 0x528   : > { %v4157_v39 = vpop.f32.mrf.mxu0  ;;  %v6325_v54 = vpop.f32.mrf.mxu1 }
 0x52a   : > { %v4160_v24 = vpop.f32.mrf.mxu0  ;;  %v4380_v55 = vpop.f32.mrf.mxu1 }
 0x52b   : > { %v4161_v49 = vadd.f32 %v4160_v24, %v9450_v30  ;;  %v9545_v26 = vadd.f32 %v4380_v55, %v4156_v33 }
 0x52c   : > { %v4162_v27 = vpop.f32.mrf.mxu0  ;;  %v4600_v19 = vpop.f32.mrf.mxu1 }
 0x52d   : > { %v9547_v4 = vadd.f32 %v6325_v54, %v4161_v49 }
 0x52e   : > { %v6360_v1 = vpop.f32.mrf.mxu0  ;;  %v4602_v5 = vpop.f32.mrf.mxu1 }
 0x530   : > { %v4825_v43 = vpop.f32.mrf.mxu0  ;;  %v4605_v21 = vpop.f32.mrf.mxu1 }
 0x531   : > { %v4826_v52 = vadd.f32 %v4825_v43, %v4600_v19  ;;  %v4831_v14 = vadd.f32 %v6360_v1, %v4605_v21 }
 0x532   : > { %v6363_v13 = vpop.f32.mrf.mxu0  ;;  %v4607_v37 = vpop.f32.mrf.mxu1 }
 0x533   : > { %v9550_v50 = vadd.f32 %v4826_v52, %v9459_v36  ;;  %v9553_v8 = vadd.f32 %v4831_v14, %v9456_v31 }
 0x534   : > { %v4835_v30 = vpop.f32.mrf.mxu0  ;;  %v4610_v45 = vpop.f32.mrf.mxu1 }
 0x535   : > { %10563 = vst [vmem:[#allocation23_spill] sm:$0xff] %v9550_v50  ;;  %v4836_v7 = vadd.f32 %v4835_v30, %v4610_v45 }
 0x536   : > { %v4612_v61 = vpop.f32.mrf.mxu1  ;;  %v6366_v10 = vpop.f32.mrf.mxu0 }
 0x537   : > { %v9556_v22 = vadd.f32 %v4836_v7, %v9466_v42 }
 0x538   : > { %v4615_v62 = vpop.f32.mrf.mxu1  ;;  %v4845_v63 = vpop.f32.mrf.mxu0 }
 0x539   : > { %v4841_v9 = vadd.f32 %v6363_v13, %v4615_v62 }
 0x53a   : > { %v4617_v53 = vpop.f32.mrf.mxu1  ;;  %v6369_v33 = vpop.f32.mrf.mxu0 }
 0x53b   : > { %v9559_v12 = vadd.f32 %v4841_v9, %v9462_v11 }
 0x53c   : > { %v4620_v36 = vpop.f32.mrf.mxu1  ;;  %v4855_v55 = vpop.f32.mrf.mxu0 }
 0x53d   : > { %v4846_v48 = vadd.f32 %v4845_v63, %v4620_v36 }
 0x53e   : > { %v4622_v6 = vpop.f32.mrf.mxu1  ;;  %v6372_v1 = vpop.f32.mrf.mxu0 }
 0x53f   : > { %v9562_v31 = vadd.f32 %v4846_v48, %v9474_v59 }
 0x540   : > { %v4625_v39 = vpop.f32.mrf.mxu1  ;;  %v4865_v52 = vpop.f32.mrf.mxu0 }
 0x541   : > { %v4851_v54 = vadd.f32 %v6366_v10, %v4625_v39 }
 0x542   : > { %v4627_v24 = vpop.f32.mrf.mxu1  ;;  %v6375_v30 = vpop.f32.mrf.mxu0 }
 0x543   : > { %v9565_v42 = vadd.f32 %v4851_v54, %v9471_v40 }
 0x544   : > { %v4630_v49 = vpop.f32.mrf.mxu1  ;;  %v4875_v10 = vpop.f32.mrf.mxu0 }
 0x545   : > { %v4856_v27 = vadd.f32 %v4855_v55, %v4630_v49 }
 0x546   : > { %v4632_v19 = vpop.f32.mrf.mxu1  ;;  %v6378_v63 = vpop.f32.mrf.mxu0 }
 0x547   : > { %v9568_v11 = vadd.f32 %v4856_v27, %v9481_v44 }
 0x548   : > { %v4635_v5 = vpop.f32.mrf.mxu1 }
 0x549   : > { %v4861_v43 = vadd.f32 %v6369_v33, %v4635_v5  ;;  %v4885_v33 = vpop.f32.mrf.mxu0 }
 0x54a   : > { %v4637_v21 = vpop.f32.mrf.mxu1 }
 0x54b   : > { %v9571_v59 = vadd.f32 %v4861_v43, %v9477_v34  ;;  %v6381_v55 = vpop.f32.mrf.mxu0 }
 0x54c   : > { %v4640_v14 = vpop.f32.mrf.mxu1 }
 0x54d   : > { %v4866_v13 = vadd.f32 %v4865_v52, %v4640_v14 }
 0x54e   : > { %v4642_v37 = vpop.f32.mrf.mxu1 }
 0x54f   : > { %v9574_v40 = vadd.f32 %v4866_v13, %v9488_v17 }
 0x550   : > { %v4645_v45 = vpop.f32.mrf.mxu1 }
 0x551   : > { %v4871_v7 = vadd.f32 %v6372_v1, %v4645_v45  ;;  %v4895_v1 = vpop.f32.mrf.mxu0 }
 0x552   : > { %v4647_v61 = vpop.f32.mrf.mxu1 }
 0x553   : > { %v9577_v44 = vadd.f32 %v4871_v7, %v9484_v16  ;;  %v6384_v52 = vpop.f32.mrf.mxu0 }
 0x554   : > { %v4650_v62 = vpop.f32.mrf.mxu1 }
 0x555   : > { %v4876_v9 = vadd.f32 %v4875_v10, %v4650_v62 }
 0x556   : > { %v4652_v53 = vpop.f32.mrf.mxu1 }
 0x557   : > { %v9580_v34 = vadd.f32 %v4876_v9, %v9495_v23 }
 0x558   : > { %v4655_v36 = vpop.f32.mrf.mxu1 }
 0x559   : > { %v4881_v48 = vadd.f32 %v6375_v30, %v4655_v36  ;;  %v4905_v30 = vpop.f32.mrf.mxu0 }
 0x55a   : > { %v4657_v6 = vpop.f32.mrf.mxu1 }
 0x55b   : > { %v9583_v17 = vadd.f32 %v4881_v48, %v9491_v58  ;;  %v6387_v10 = vpop.f32.mrf.mxu0 }
 0x55c   : > { %v4660_v39 = vpop.f32.mrf.mxu1 }
 0x55d   : > { %v4886_v54 = vadd.f32 %v4885_v33, %v4660_v39 }
 0x55e   : > { %v4662_v24 = vpop.f32.mrf.mxu1 }
 0x55f   : > { %v9586_v16 = vadd.f32 %v4886_v54, %v9501_v51 }
 0x560   : > { %v4665_v49 = vpop.f32.mrf.mxu1 }
 0x561   : > { %v4891_v27 = vadd.f32 %v6378_v63, %v4665_v49  ;;  %v4915_v63 = vpop.f32.mrf.mxu0 }
 0x562   : > { %v4667_v19 = vpop.f32.mrf.mxu1 }
 0x563   : > { %v9589_v23 = vadd.f32 %v4891_v27, %v9497_v47  ;;  %v9606_v33 = vpop.f32.mrf.mxu0 }
 0x564   : > { %v4670_v5 = vpop.f32.mrf.mxu1 }
 0x565   : > { %v4896_v43 = vadd.f32 %v4895_v1, %v4670_v5 }
 0x566   : > { %v4672_v21 = vpop.f32.mrf.mxu1 }
 0x567   : > { %v9592_v58 = vadd.f32 %v4896_v43, %v9507_v18 }
 0x568   : > { %v4675_v14 = vpop.f32.mrf.mxu1 }
 0x569   : > { %v4901_v13 = vadd.f32 %v6381_v55, %v4675_v14  ;;  %v4925_v55 = vpop.f32.mrf.mxu0 }
 0x56a   : > { %v4677_v37 = vpop.f32.mrf.mxu1 }
 0x56b   : > { %v9595_v51 = vadd.f32 %v4901_v13, %v9503_v41  ;;  %v6393_v5 = vpop.f32.mrf.mxu0 }
 0x56c   : > { %v4680_v45 = vpop.f32.mrf.mxu1 }
 0x56d   : > { %v4906_v7 = vadd.f32 %v4905_v30, %v4680_v45  ;;  %v9618_v21 = vpop.f32.mrf.mxu0 }
 0x56e   : > { %v4682_v61 = vpop.f32.mrf.mxu1 }
 0x56f   : > { %v9598_v47 = vadd.f32 %v4906_v7, %v9512_v2  ;;  %v6396_v13 = vpop.f32.mrf.mxu0 }
 0x570   : > { %v4685_v62 = vpop.f32.mrf.mxu1 }
 0x571   : > { %v4911_v9 = vadd.f32 %v6384_v52, %v4685_v62  ;;  %v4945_v30 = vpop.f32.mrf.mxu0 }
 0x572   : > { %v4687_v53 = vpop.f32.mrf.mxu1 }
 0x573   : > { %v9601_v18 = vadd.f32 %v4911_v9, %v9509_v28  ;;  %v6399_v61 = vpop.f32.mrf.mxu0 }
 0x574   : > { %v4690_v36 = vpop.f32.mrf.mxu1 }
 0x575   : > { %v4916_v48 = vadd.f32 %v4915_v63, %v4690_v36  ;;  %v4955_v62 = vpop.f32.mrf.mxu0 }
 0x576   : > { %v4692_v6 = vpop.f32.mrf.mxu1 }
 0x577   : > { %v9604_v41 = vadd.f32 %v4916_v48, %v9517_v15  ;;  %v6402_v63 = vpop.f32.mrf.mxu0 }
 0x578   : > { %v4695_v39 = vpop.f32.mrf.mxu1 }
 0x579   : > { %v4921_v54 = vadd.f32 %v6387_v10, %v4695_v39  ;;  %v4965_v6 = vpop.f32.mrf.mxu0 }
 0x57a   : > { %v4697_v2 = vpop.f32.mrf.mxu1 }
 0x57b   : > { %v9609_v24 = vadd.f32 %v4921_v54, %v9514_v3  ;;  %v6405_v2 = vpop.f32.mrf.mxu0 }
 0x57c   : > { %v4700_v49 = vpop.f32.mrf.mxu1 }
 0x57d   : > { %v4926_v27 = vadd.f32 %v4925_v55, %v4700_v49 }
 0x57e   : > { %v4702_v28 = vpop.f32.mrf.mxu1 }
 0x57f   : > { %v9612_v19 = vadd.f32 %v4926_v27, %v9522_v20  ;;  %v4975_v27 = vpop.f32.mrf.mxu0 }
 0x580   : > { %v9614_v1 = vpop.f32.mrf.mxu1 }
 0x582   : > { %v4707_v15 = vpop.f32.mrf.mxu1 }
 0x584   : > { %v9616_v43 = vpop.f32.mrf.mxu1 }
 0x586   : > { %v4712_v52 = vpop.f32.mrf.mxu1 }
 0x588   : > { %v4715_v14 = vpop.f32.mrf.mxu1 }
 0x58a   : > { %v4717_v3 = vpop.f32.mrf.mxu1 }
 0x58c   : > { %v4720_v37 = vpop.f32.mrf.mxu1 }
 0x58e   : > { %v4722_v45 = vpop.f32.mrf.mxu1 }
 0x590   : > { %v4725_v7 = vpop.f32.mrf.mxu1 }
 0x592   : > { %v4727_v10 = vpop.f32.mrf.mxu1 }
 0x594   : > { %v4730_v20 = vpop.f32.mrf.mxu1 }
 0x596   : > { %v4732_v9 = vpop.f32.mrf.mxu1 }
 0x598   : > { %v4735_v53 = vpop.f32.mrf.mxu1 }
 0x59a   : > { %v4737_v36 = vpop.f32.mrf.mxu1 }
 0x59b   : > { %v9625_v36 = vld [vmem:[%s10089_s4] ss:$0 sm:$0xff] }
 0x59c   : > { %v4740_v48 = vpop.f32.mrf.mxu1 }
 0x59d   : > { %v4966_v25 = vadd.f32 %v4965_v6, %v4740_v48  ;;  %v4956_v48 = vadd.f32 %v4955_v62, %v4730_v20  ;;  %v9740_v20 = vadd.f32 %v9625_v36, %v9612_v19  ;;  %v9754_v62 = vadd.f32 %v9625_v36, %v9559_v12 }
 0x59e   : > { %v4742_v39 = vpop.f32.mrf.mxu1  ;;  %v9764_v19 = vadd.f32 %v9625_v36, %v9556_v22  ;;  %v9770_v12 = vadd.f32 %v9625_v36, %v9601_v18  ;;  %v9780_v22 = vadd.f32 %v9625_v36, %v9598_v47  ;;  %v10565_v6 = vmov 1.0  }
 0x59f   : > { %v4961_v39 = vadd.f32 %v6399_v61, %v4735_v53  ;;  %v9642_v61 = vadd.f32 %v9625_v36, %v9592_v58  ;;  %v5010_v58 = vadd.f32 %v4956_v48, %v9537_v60  ;;  %v9672_v60 = vadd.f32 %v9625_v36, %v9583_v17 }
 0x5a0   : > { %v4745_v54 = vpop.f32.mrf.mxu1  ;;  %v4931_v17 = vadd.f32 %v9606_v33, %v9614_v1  ;;  %v9725_v1 = vadd.f32 %v9625_v36, %v9568_v11  ;;  %v9744_v11 = vadd.f32 %v9625_v36, %v9562_v31  ;;  %v9760_v31 = vadd.f32 %v9625_v36, %v9604_v41  ;;  %v10564_v41 = vld [vmem:[#allocation23_spill] sm:$0xff] }
 0x5a1   : > { %v4971_v3 = vadd.f32 %v6402_v63, %v4745_v54  ;;  %v9633_v63 = vadd.f32 %v9625_v36, %v9595_v51  ;;  %v9784_v53 = vadd.f32 %v9625_v36, %v10564_v41  ;;  %v5139_v54 = vmul.f32 %v9642_v61, %v9642_v61 }
 0x5a2   : > { %v4747_v55 = vpop.f32.mrf.mxu1  ;;  %v5005_v33 = vadd.f32 %v4931_v17, %v9519_v56  ;;  %v5143_v17 = vmul.f32 %v9760_v31, %v9760_v31  ;;  %v5141_v41 = vmul.f32 %v9780_v22, %v9780_v22 }
 0x5a3   : > { %v5013_v55 = vadd.f32 %v4971_v3, %v9539_v57  ;;  %v4951_v57 = vadd.f32 %v6396_v13, %v4725_v7  ;;  %v4941_v7 = vadd.f32 %v6393_v5, %v4715_v14  ;;  %v9684_v5 = vadd.f32 %v9625_v36, %v9580_v34 }
 0x5a4   : > { %v4750_v49 = vpop.f32.mrf.mxu1  ;;  %v9730_v56 = vadd.f32 %v9625_v36, %v5005_v33  ;;  %v5140_v18 = vmul.f32 %v9633_v63, %v9633_v63  ;;  %v5136_v3 = vmul.f32 %v9672_v60, %v9672_v60 }
 0x5a5   : > { %v4976_v15 = vadd.f32 %v4975_v27, %v4750_v49  ;;  %v9648_v51 = vadd.f32 %v9625_v36, %v5013_v55  ;;  %v5007_v14 = vadd.f32 %v4941_v7, %v9524_v0  ;;  %v9706_v0 = vadd.f32 %v9625_v36, %v9574_v40 }
 0x5a6   : > { %v4752_v28 = vpop.f32.mrf.mxu1  ;;  %v5145_v7 = vmul.f32 %v9740_v20, %v9740_v20 }
 0x5a7   : > { %v5014_v9 = vadd.f32 %v4976_v15, %v9545_v26  ;;  %v5012_v26 = vadd.f32 %v4966_v25, %v9542_v35  ;;  %v9652_v25 = vadd.f32 %v9625_v36, %v9589_v23  ;;  %v4946_v35 = vadd.f32 %v4945_v30, %v4720_v37 }
 0x5a8   : > { %v4755_v52 = vpop.f32.mrf.mxu1  ;;  %v5009_v23 = vadd.f32 %v4951_v57, %v9529_v29  ;;  %v9680_v29 = vadd.f32 %v9625_v36, %v5010_v58  ;;  %v5133_v55 = vmul.f32 %v9706_v0, %v9706_v0 }
 0x5a9   : > { %v4981_v45 = vadd.f32 %v6405_v2, %v4755_v52  ;;  %v9658_v13 = vadd.f32 %v9625_v36, %v5012_v26  ;;  %v5008_v30 = vadd.f32 %v4946_v35, %v9532_v32  ;;  %v5154_v2 = vmul.f32 %v9648_v51, %v9648_v51 }
 0x5aa   : > { %v4757_v10 = vpop.f32.mrf.mxu1  ;;  %v9692_v32 = vadd.f32 %v9625_v36, %v5009_v23  ;;  %v5138_v49 = vmul.f32 %v9652_v25, %v9652_v25  ;;  %v5146_v35 = vmul.f32 %v9730_v56, %v9730_v56  ;;  %v5129_v23 = vmul.f32 %v9744_v11, %v9744_v11 }
 0x5ab   : > { %v5015_v50 = vadd.f32 %v4981_v45, %v9547_v4  ;;  %v9638_v4 = vadd.f32 %v9625_v36, %v5014_v9  ;;  %v5153_v27 = vmul.f32 %v9658_v13, %v9658_v13  ;;  %v5151_v45 = vmul.f32 %v9680_v29, %v9680_v29 }
 0x5ac   : > { %v5135_v10 = vmul.f32 %v9684_v5, %v9684_v5  ;;  %v5150_v9 = vmul.f32 %v9692_v32, %v9692_v32 }
 0x5ad   : > { %v9629_v28 = vadd.f32 %v9625_v36, %v5015_v50  ;;  %v5011_v50 = vadd.f32 %v4961_v39, %v9534_v46  ;;  %v9662_v46 = vadd.f32 %v9625_v36, %v9586_v16  ;;  %v4936_v16 = vadd.f32 %v9618_v21, %v9616_v43 }
 0x5ae   : > { %v9696_v43 = vadd.f32 %v9625_v36, %v9577_v44  ;;  %v9702_v21 = vadd.f32 %v9625_v36, %v5008_v30  ;;  %v9712_v44 = vadd.f32 %v9625_v36, %v5007_v14  ;;  %v5155_v47 = vmul.f32 %v9638_v4, %v9638_v4 }
 0x5af   : > { %5856 = vmatprep.subr.mxu0 %v9629_v28  ;;  %v9668_v37 = vadd.f32 %v9625_v36, %v5011_v50  ;;  %v5006_v34 = vadd.f32 %v4936_v16, %v9527_v38  ;;  %v9716_v38 = vadd.f32 %v9625_v36, %v9571_v59  ;;  %v9734_v59 = vadd.f32 %v9625_v36, %v9565_v42 }
 0x5b0   : > { %5857 = vmatpush3.msra.mxu0 %v9633_v63  ;;  %v9750_v42 = vadd.f32 %v9625_v36, %v9609_v24  ;;  %v9774_v24 = vadd.f32 %v9625_v36, %v9553_v8  ;;  %v5156_v8 = vmul.f32 %v9629_v28, %v9629_v28  ;;  %v5137_v15 = vmul.f32 %v9662_v46, %v9662_v46 }
 0x5b1   : > { %5858 = vmatprep.subr.mxu0 %v9638_v4  ;;  %v9721_v40 = vadd.f32 %v9625_v36, %v5006_v34  ;;  %v5152_v52 = vmul.f32 %v9668_v37, %v9668_v37  ;;  %v5134_v36 = vmul.f32 %v9696_v43, %v9696_v43  ;;  %v5149_v39 = vmul.f32 %v9702_v21, %v9702_v21 }
 0x5b2   : > { %5859 = vmatpush3.msra.mxu0 %v9642_v61  ;;  %v5148_v48 = vmul.f32 %v9712_v44, %v9712_v44  ;;  %v5132_v26 = vmul.f32 %v9716_v38, %v9716_v38  ;;  %v5131_v50 = vmul.f32 %v9725_v1, %v9725_v1  ;;  %v5130_v58 = vmul.f32 %v9734_v59, %v9734_v59 }
 0x5b3   : > { %5860 = vmatprep.subr.mxu0 %v9648_v51  ;;  %v5147_v57 = vmul.f32 %v9721_v40, %v9721_v40  ;;  %v5144_v16 = vmul.f32 %v9750_v42, %v9750_v42  ;;  %v5128_v30 = vmul.f32 %v9754_v62, %v9754_v62  ;;  %v5127_v14 = vmul.f32 %v9764_v19, %v9764_v19 }
 0x5b4   : > { %5861 = vmatpush3.msra.mxu0 %v9652_v25  ;;  %v5142_v34 = vmul.f32 %v9770_v12, %v9770_v12  ;;  %v5126_v33 = vmul.f32 %v9774_v24, %v9774_v24 }
 0x5b5   : > { %5862 = vmatprep.subr.mxu0 %v9658_v13 }
 0x5b6   : > { %5863 = vmatpush3.msra.mxu0 %v9662_v46 }
 0x5b7   : > { %5864 = vmatprep.subr.mxu0 %v9668_v37 }
 0x5b8   : > { %5865 = vmatpush3.msra.mxu0 %v9672_v60 }
 0x5b9   : > { %5866 = vmatprep.subr.mxu0 %v9680_v29 }
 0x5ba   : > { %5867 = vmatpush3.msra.mxu0 %v9684_v5 }
 0x5bb   : > { %5868 = vmatprep.subr.mxu0 %v9692_v32 }
 0x5bc   : > { %5869 = vmatpush3.msra.mxu0 %v9696_v43 }
 0x5bd   : > { %5870 = vmatprep.subr.mxu0 %v9702_v21 }
 0x5be   : > { %5871 = vmatpush3.msra.mxu0 %v9706_v0 }
 0x5bf   : > { %5872 = vmatprep.subr.mxu0 %v9712_v44 }
 0x5c0   : > { %5873 = vmatpush3.msra.mxu0 %v9716_v38 }
 0x5c1   : > { %5874 = vmatprep.subr.mxu0 %v9721_v40 }
 0x5c2   : > { %5875 = vmatpush3.msra.mxu0 %v9725_v1 }
 0x5c3   : > { %5876 = vmatprep.subr.mxu0 %v9730_v56 }
 0x5c4   : > { %5877 = vmatpush3.msra.mxu0 %v9734_v59 }
 0x5c5   : > { %5878 = vmatprep.subr.mxu0 %v9740_v20 }
 0x5c6   : > { %5879 = vmatpush3.msra.mxu0 %v9744_v11 }
 0x5c7   : > { %5880 = vmatprep.subr.mxu0 %v9750_v42 }
 0x5c8   : > { %5881 = vmatpush3.msra.mxu0 %v9754_v62 }
 0x5c9   : > { %5882 = vmatprep.subr.mxu0 %v9760_v31 }
 0x5ca   : > { %5883 = vmatpush3.msra.mxu0 %v9764_v19 }
 0x5cb   : > { %5884 = vmatprep.subr.mxu0 %v9770_v12 }
 0x5cc   : > { %5885 = vmatpush3.msra.mxu0 %v9774_v24 }
 0x5cd   : > { %5886 = vmatprep.subr.mxu0 %v9780_v22 }
 0x5ce   : > { %5887 = vmatpush3.msra.mxu0 %v9784_v53 }
 0x5cf   : > { %5120 = vmatmul.mubr.f32.vlgmr.msra.gmra.mxu0 %v10565_v6  ;;  %5891 = vmatprep.subr.mxu0 %v5156_v8  ;;  %v5125_v8 = vmul.f32 %v9784_v53, %v9784_v53 }
 0x5d0   : > { %5892 = vmatpush3.msra.mxu0 %v5140_v18  ;;  %5221 = vmatprep.mubr.f32.mxu0 %v10565_v6 }
 0x5d1   : > { %5893 = vmatprep.subr.mxu0 %v5155_v47 }
 0x5d2   : > { %5894 = vmatpush3.msra.mxu0 %v5139_v54 }
 0x5d3   : > { %5895 = vmatprep.subr.mxu0 %v5154_v2 }
 0x5d4   : > { %5896 = vmatpush3.msra.mxu0 %v5138_v49 }
 0x5d5   : > { %5897 = vmatprep.subr.mxu0 %v5153_v27 }
 0x5d6   : > { %5898 = vmatpush3.msra.mxu0 %v5137_v15 }
 0x5d7   : > { %5899 = vmatprep.subr.mxu0 %v5152_v52 }
 0x5d8   : > { %5900 = vmatpush3.msra.mxu0 %v5136_v3 }
 0x5d9   : > { %5901 = vmatprep.subr.mxu0 %v5151_v45 }
 0x5da   : > { %5902 = vmatpush3.msra.mxu0 %v5135_v10 }
 0x5db   : > { %5903 = vmatprep.subr.mxu0 %v5150_v9 }
 0x5dc   : > { %5904 = vmatpush3.msra.mxu0 %v5134_v36  ;;  %v10566_v36 = vld [vmem:[#allocation20_spill] sm:$0xff] }
 0x5dd   : > { %5905 = vmatprep.subr.mxu0 %v5149_v39 }
 0x5de   : > { %5906 = vmatpush3.msra.mxu0 %v5133_v55 }
 0x5df   : > { %5907 = vmatprep.subr.mxu0 %v5148_v48 }
 0x5e0   : > { %5908 = vmatpush3.msra.mxu0 %v5132_v26 }
 0x5e1   : > { %5909 = vmatprep.subr.mxu0 %v5147_v57 }
 0x5e2   : > { %5910 = vmatpush3.msra.mxu0 %v5131_v50 }
 0x5e3   : > { %5911 = vmatprep.subr.mxu0 %v5146_v35 }
 0x5e4   : > { %5912 = vmatpush3.msra.mxu0 %v5130_v58 }
 0x5e5   : > { %5913 = vmatprep.subr.mxu0 %v5145_v7 }
 0x5e6   : > { %5914 = vmatpush3.msra.mxu0 %v5129_v23 }
 0x5e7   : > { %5915 = vmatprep.subr.mxu0 %v5144_v16 }
 0x5e8   : > { %5916 = vmatpush3.msra.mxu0 %v5128_v30 }
 0x5e9   : > { %5917 = vmatprep.subr.mxu0 %v5143_v17 }
 0x5ea   : > { %5918 = vmatpush3.msra.mxu0 %v5127_v14 }
 0x5eb   : > { %5919 = vmatprep.subr.mxu0 %v5142_v34 }
 0x5ec   : > { %5920 = vmatpush3.msra.mxu0 %v5126_v33 }
 0x5ed   : > { %5921 = vmatprep.subr.mxu0 %v5141_v41 }
 0x5ee   : > { %5922 = vmatpush3.msra.mxu0 %v5125_v8 }
 0x5ef   : > { %5222 = vmatmul.mubr.f32.vlgmr.msra.gmra.mxu0 %v10565_v6 }
 0x68f   : > { %v5888_v18 = vpop.f32.mrf.mxu0 }
 0x691   : > { %v5889_v47 = vpop.f32.mrf.mxu0 }
 0x692   : > { %v5890_v54 = vadd.f32 %v5889_v47, %v5888_v18 }
 0x694   : > { %v5227_v49 = vmul.f32 0.00390625, %v5890_v54 }
 0x696   : > { %v5229_v52 = vmul.f32 %v5227_v49, %v5227_v49  ;;  %v9857_v39 = vrot.slane %v5227_v49, %v10566_v36 }
 0x698   : > { %v5236_v55 = vsub.f32 %v9784_v53, %v9857_v39  ;;  %v5237_v6 = vsub.f32 %v9774_v24, %v9857_v39  ;;  %v5238_v48 = vsub.f32 %v9764_v19, %v9857_v39  ;;  %v5239_v26 = vsub.f32 %v9754_v62, %v9857_v39 }
 0x699   : > { %v5240_v57 = vsub.f32 %v9744_v11, %v9857_v39  ;;  %v5241_v50 = vsub.f32 %v9734_v59, %v9857_v39  ;;  %v5242_v35 = vsub.f32 %v9725_v1, %v9857_v39  ;;  %v5243_v53 = vsub.f32 %v9716_v38, %v9857_v39 }
 0x69a   : > { %v5244_v24 = vsub.f32 %v9706_v0, %v9857_v39  ;;  %v5245_v19 = vsub.f32 %v9696_v43, %v9857_v39  ;;  %v5246_v62 = vsub.f32 %v9684_v5, %v9857_v39  ;;  %v5247_v11 = vsub.f32 %v9672_v60, %v9857_v39 }
 0x69b   : > { %v5248_v59 = vsub.f32 %v9662_v46, %v9857_v39  ;;  %v5249_v1 = vsub.f32 %v9652_v25, %v9857_v39  ;;  %v5250_v38 = vsub.f32 %v9642_v61, %v9857_v39  ;;  %v5251_v0 = vsub.f32 %v9633_v63, %v9857_v39 }
 0x69c   : > { %v5252_v43 = vsub.f32 %v9780_v22, %v9857_v39  ;;  %v5253_v5 = vsub.f32 %v9770_v12, %v9857_v39  ;;  %v5254_v60 = vsub.f32 %v9760_v31, %v9857_v39  ;;  %v5255_v46 = vsub.f32 %v9750_v42, %v9857_v39 }
 0x69d   : > { %v5256_v25 = vsub.f32 %v9740_v20, %v9857_v39  ;;  %v5257_v61 = vsub.f32 %v9730_v56, %v9857_v39  ;;  %v5258_v63 = vsub.f32 %v9721_v40, %v9857_v39  ;;  %v5259_v22 = vsub.f32 %v9712_v44, %v9857_v39 }
 0x69e   : > { %v5260_v12 = vsub.f32 %v9702_v21, %v9857_v39  ;;  %v5261_v31 = vsub.f32 %v9692_v32, %v9857_v39  ;;  %v5262_v42 = vsub.f32 %v9680_v29, %v9857_v39  ;;  %v5263_v20 = vsub.f32 %v9668_v37, %v9857_v39 }
 0x69f   : > { %v5264_v40 = vsub.f32 %v9658_v13, %v9857_v39  ;;  %v5265_v44 = vsub.f32 %v9648_v51, %v9857_v39  ;;  %v5266_v21 = vsub.f32 %v9638_v4, %v9857_v39  ;;  %v5267_v32 = vsub.f32 %v9629_v28, %v9857_v39 }
 0x6af   : > { %v5923_v2 = vpop.f32.mrf.mxu0 }
 0x6b1   : > { %v5924_v27 = vpop.f32.mrf.mxu0 }
 0x6b2   : > { %v5925_v15 = vadd.f32 %v5924_v27, %v5923_v2 }
 0x6b4   : > { %v5228_v3 = vmul.f32 0.00390625, %v5925_v15 }
 0x6b6   : > { %v5230_v45 = vsub.f32 %v5228_v3, %v5229_v52 }
 0x6b8   : > { %v5231_v10 = vmax.f32 %v5230_v45, 0.0 }
 0x6ba   : > { %v5268_v9 = vadd.f32 1e-05, %v5231_v10 }
 0x6bc   : > { %6481 = vrsqrt.f32 %v5268_v9 }
 0x6c9   : > { %v6482_v58 = vpop.eup %6481 }
 0x6ca   : > { %v5273_v56 = vrot.slane %v6482_v58, %v10566_v36 }
 0x6cc   : > { %v5274_v7 = vmul.f32 %v5273_v56, %v5236_v55  ;;  %v5275_v23 = vmul.f32 %v5273_v56, %v5237_v6  ;;  %v5276_v29 = vmul.f32 %v5273_v56, %v5238_v48  ;;  %v5277_v16 = vmul.f32 %v5273_v56, %v5239_v26  ;;  %v6513_v48 = vld [vmem:[%s6877_s13] sm:$0xff] }
 0x6cd   : > { %v5278_v30 = vmul.f32 %v5273_v56, %v5240_v57  ;;  %v5279_v37 = vmul.f32 %v5273_v56, %v5241_v50  ;;  %v5280_v17 = vmul.f32 %v5273_v56, %v5242_v35  ;;  %v5281_v14 = vmul.f32 %v5273_v56, %v5243_v53  ;;  %v6514_v57 = vld [vmem:[%s6877_s13 + $0x8] sm:$0xff]  ;;  %v6515_v35 = vld [vmem:[%s6877_s13 + $0x10] sm:$0xff] }
 0x6ce   : > { %v5282_v34 = vmul.f32 %v5273_v56, %v5244_v24  ;;  %v5283_v33 = vmul.f32 %v5273_v56, %v5245_v19  ;;  %v5284_v13 = vmul.f32 %v5273_v56, %v5246_v62  ;;  %v5285_v41 = vmul.f32 %v5273_v56, %v5247_v11  ;;  %v6516_v24 = vld [vmem:[%s6877_s13 + $0x18] sm:$0xff]  ;;  %v6517_v62 = vld [vmem:[%s6877_s13 + $0x20] sm:$0xff] }
 0x6cf   : > { %v5286_v8 = vmul.f32 %v5273_v56, %v5248_v59  ;;  %v5287_v51 = vmul.f32 %v5273_v56, %v5249_v1  ;;  %v5288_v18 = vmul.f32 %v5273_v56, %v5250_v38  ;;  %v5289_v47 = vmul.f32 %v5273_v56, %v5251_v0  ;;  %v6518_v59 = vld [vmem:[%s6877_s13 + $0x28] sm:$0xff]  ;;  %v6519_v38 = vld [vmem:[%s6877_s13 + $0x30] sm:$0xff] }
 0x6d0   : > { %v5290_v4 = vmul.f32 %v5273_v56, %v5252_v43  ;;  %v5291_v54 = vmul.f32 %v5273_v56, %v5253_v5  ;;  %v5292_v28 = vmul.f32 %v5273_v56, %v5254_v60  ;;  %v9924_v2 = vmul.f32 %v5273_v56, %v5255_v46  ;;  %v6520_v43 = vld [vmem:[%s6877_s13 + $0x38] sm:$0xff]  ;;  %v6521_v60 = vld [vmem:[%s6877_s13 + $0x40] sm:$0xff] }
 0x6d1   : > { %v9926_v49 = vmul.f32 %v5273_v56, %v5256_v25  ;;  %v9928_v27 = vmul.f32 %v5273_v56, %v5257_v61  ;;  %v9930_v15 = vmul.f32 %v5273_v56, %v5258_v63  ;;  %v9932_v52 = vmul.f32 %v5273_v56, %v5259_v22  ;;  %v6522_v25 = vld [vmem:[%s6877_s13 + $0x48] sm:$0xff]  ;;  %v6523_v61 = vld [vmem:[%s6877_s13 + $0x50] sm:$0xff]  ;;  %v6524_v22 = vld [vmem:[%s6877_s13 + $0x58] sm:$0xff] }
 0x6d2   : > { %v9934_v3 = vmul.f32 %v5273_v56, %v5260_v12  ;;  %v9936_v45 = vmul.f32 %v5273_v56, %v5261_v31  ;;  %v9938_v10 = vmul.f32 %v5273_v56, %v5262_v42  ;;  %v9940_v9 = vmul.f32 %v5273_v56, %v5263_v20  ;;  %v6525_v31 = vld [vmem:[%s6877_s13 + $0x60] sm:$0xff]  ;;  %v6526_v20 = vld [vmem:[%s6877_s13 + $0x68] sm:$0xff] }
 0x6d3   : > { %v9942_v36 = vmul.f32 %v5273_v56, %v5264_v40  ;;  %v9944_v39 = vmul.f32 %v5273_v56, %v5265_v44  ;;  %v9946_v55 = vmul.f32 %v5273_v56, %v5266_v21  ;;  %v9948_v6 = vmul.f32 %v5273_v56, %v5267_v32  ;;  %v6527_v40 = vld [vmem:[%s6877_s13 + $0x70] sm:$0xff]  ;;  %v6528_v21 = vld [vmem:[%s6877_s13 + $0x78] sm:$0xff] }
 0x6d4   : > { %v5306_v26 = vadd.f32 %v6513_v48, %v5274_v7  ;;  %v5307_v50 = vadd.f32 %v6514_v57, %v5275_v23  ;;  %v5308_v53 = vadd.f32 %v6515_v35, %v5276_v29  ;;  %v5309_v19 = vadd.f32 %v6516_v24, %v5277_v16  ;;  %v6529_v7 = vld [vmem:[%s6877_s13 + $0x80] sm:$0xff]  ;;  %v6530_v29 = vld [vmem:[%s6877_s13 + $0x88] sm:$0xff]  ;;  %v6543_v48 = vld [vmem:[%s6877_s13 + $0xf0] sm:$0xff] }
 0x6d5   : > { %v5310_v11 = vadd.f32 %v6517_v62, %v5278_v30  ;;  %v5311_v1 = vadd.f32 %v6518_v59, %v5279_v37  ;;  %v5312_v0 = vadd.f32 %v6519_v38, %v5280_v17  ;;  %v5313_v5 = vadd.f32 %v6520_v43, %v5281_v14  ;;  %v6531_v30 = vld [vmem:[%s6877_s13 + $0x90] sm:$0xff]  ;;  %v6532_v17 = vld [vmem:[%s6877_s13 + $0x98] sm:$0xff] }
 0x6d6   : > { %v5314_v46 = vadd.f32 %v6521_v60, %v5282_v34  ;;  %v5315_v58 = vadd.f32 %v6522_v25, %v5283_v33  ;;  %v5316_v63 = vadd.f32 %v6523_v61, %v5284_v13  ;;  %v5317_v12 = vadd.f32 %v6524_v22, %v5285_v41  ;;  %5338 = vst [vmem:[%s9964_s12] sm:$0xff] %v5306_v26  ;;  %v6533_v34 = vld [vmem:[%s6877_s13 + $0xa0] sm:$0xff]  ;;  %v6534_v13 = vld [vmem:[%s6877_s13 + $0xa8] sm:$0xff]  ;;  %v6544_v57 = vld [vmem:[%s6877_s13 + $0xf8] sm:$0xff] }
 0x6d7   : > { %5339 = vst [vmem:[%s9964_s12 + $0x8] sm:$0xff] %v5307_v50  ;;  %5340 = vst [vmem:[%s9964_s12 + $0x10] sm:$0xff] %v5308_v53  ;;  %v5318_v42 = vadd.f32 %v6525_v31, %v5286_v8  ;;  %v5319_v56 = vadd.f32 %v6526_v20, %v5287_v51  ;;  %v5320_v44 = vadd.f32 %v6527_v40, %v5288_v18  ;;  %v6535_v8 = vld [vmem:[%s6877_s13 + $0xb0] sm:$0xff]  ;;  %v6536_v18 = vld [vmem:[%s6877_s13 + $0xb8] sm:$0xff] }
 0x6d8   : > { %5341 = vst [vmem:[%s9964_s12 + $0x18] sm:$0xff] %v5309_v19  ;;  %v5321_v32 = vadd.f32 %v6528_v21, %v5289_v47  ;;  %5342 = vst [vmem:[%s9964_s12 + $0x20] sm:$0xff] %v5310_v11  ;;  %v5322_v23 = vadd.f32 %v6529_v7, %v5290_v4  ;;  %v5323_v16 = vadd.f32 %v6530_v29, %v5291_v54  ;;  %v6537_v4 = vld [vmem:[%s6877_s13 + $0xc0] sm:$0xff] }
 0x6d9   : > { %5343 = vst [vmem:[%s9964_s12 + $0x28] sm:$0xff] %v5311_v1  ;;  %5344 = vst [vmem:[%s9964_s12 + $0x30] sm:$0xff] %v5312_v0  ;;  %v5324_v37 = vadd.f32 %v6531_v30, %v5292_v28  ;;  %v5325_v14 = vadd.f32 %v6532_v17, %v9924_v2  ;;  %v5326_v33 = vadd.f32 %v6533_v34, %v9926_v49  ;;  %v6538_v28 = vld [vmem:[%s6877_s13 + $0xc8] sm:$0xff]  ;;  %v6539_v49 = vld [vmem:[%s6877_s13 + $0xd0] sm:$0xff] }
 0x6da   : > { %5345 = vst [vmem:[%s9964_s12 + $0x38] sm:$0xff] %v5313_v5  ;;  %5346 = vst [vmem:[%s9964_s12 + $0x40] sm:$0xff] %v5314_v46  ;;  %v5327_v41 = vadd.f32 %v6534_v13, %v9928_v27  ;;  %v5328_v51 = vadd.f32 %v6535_v8, %v9930_v15  ;;  %v5329_v47 = vadd.f32 %v6536_v18, %v9932_v52  ;;  %v6540_v15 = vld [vmem:[%s6877_s13 + $0xd8] sm:$0xff] }
 0x6db   : > { %5347 = vst [vmem:[%s9964_s12 + $0x48] sm:$0xff] %v5315_v58  ;;  %5348 = vst [vmem:[%s9964_s12 + $0x50] sm:$0xff] %v5316_v63  ;;  %v5330_v54 = vadd.f32 %v6537_v4, %v9934_v3  ;;  %v5331_v2 = vadd.f32 %v6538_v28, %v9936_v45  ;;  %v5332_v27 = vadd.f32 %v6539_v49, %v9938_v10  ;;  %v6541_v3 = vld [vmem:[%s6877_s13 + $0xe0] sm:$0xff]  ;;  %v6542_v10 = vld [vmem:[%s6877_s13 + $0xe8] sm:$0xff] }
 0x6dc   : > { %5349 = vst [vmem:[%s9964_s12 + $0x58] sm:$0xff] %v5317_v12  ;;  %5350 = vst [vmem:[%s9964_s12 + $0x60] sm:$0xff] %v5318_v42  ;;  %v5333_v52 = vadd.f32 %v6540_v15, %v9940_v9  ;;  %v5334_v45 = vadd.f32 %v6541_v3, %v9942_v36  ;;  %v5335_v9 = vadd.f32 %v6542_v10, %v9944_v39 }
 0x6dd   : > { %5351 = vst [vmem:[%s9964_s12 + $0x68] sm:$0xff] %v5319_v56  ;;  %5352 = vst [vmem:[%s9964_s12 + $0x70] sm:$0xff] %v5320_v44  ;;  %v5336_v26 = vadd.f32 %v6543_v48, %v9946_v55  ;;  %v5337_v50 = vadd.f32 %v6544_v57, %v9948_v6 }
 0x6de   : > { %5353 = vst [vmem:[%s9964_s12 + $0x78] sm:$0xff] %v5321_v32  ;;  %5354 = vst [vmem:[%s9964_s12 + $0x80] sm:$0xff] %v5322_v23 }
 0x6df   : > { %5355 = vst [vmem:[%s9964_s12 + $0x88] sm:$0xff] %v5323_v16  ;;  %5356 = vst [vmem:[%s9964_s12 + $0x90] sm:$0xff] %v5324_v37 }
 0x6e0   : > { %5357 = vst [vmem:[%s9964_s12 + $0x98] sm:$0xff] %v5325_v14  ;;  %5358 = vst [vmem:[%s9964_s12 + $0xa0] sm:$0xff] %v5326_v33 }
 0x6e1   : > { %5359 = vst [vmem:[%s9964_s12 + $0xa8] sm:$0xff] %v5327_v41  ;;  %5360 = vst [vmem:[%s9964_s12 + $0xb0] sm:$0xff] %v5328_v51 }
 0x6e2   : > { %5361 = vst [vmem:[%s9964_s12 + $0xb8] sm:$0xff] %v5329_v47  ;;  %5362 = vst [vmem:[%s9964_s12 + $0xc0] sm:$0xff] %v5330_v54 }
 0x6e3   : > { %5363 = vst [vmem:[%s9964_s12 + $0xc8] sm:$0xff] %v5331_v2  ;;  %5364 = vst [vmem:[%s9964_s12 + $0xd0] sm:$0xff] %v5332_v27 }
 0x6e4   : > { %5365 = vst [vmem:[%s9964_s12 + $0xd8] sm:$0xff] %v5333_v52  ;;  %5366 = vst [vmem:[%s9964_s12 + $0xe0] sm:$0xff] %v5334_v45 }
 0x6e5   : > { %5367 = vst [vmem:[%s9964_s12 + $0xe8] sm:$0xff] %v5335_v9  ;;  %5368 = vst [vmem:[%s9964_s12 + $0xf0] sm:$0xff] %v5336_v26 }
 0x6e6   : > { %5369 = vst [vmem:[%s9964_s12 + $0xf8] sm:$0xff] %v5337_v50 }
 0x6e7   : > { %6638 = shalt.err (!%p6635_p3)
}
 0x6e8   : > { %s6639_s13 = scalar_lea.hbm %s10018_s11, 4096  ;;  %s6643_s9 = scalar_lea.hbm %s10090_s5, 8192 }
 0x6e9   : > { %p6640_p11 = scmp.ne.s32.totalorder %s10018_s11, %s6639_s13  ;;  %p6644_p4 = scmp.lt.s32.totalorder %s10018_s11, %s10090_s5 }
 0x6ea   : > { %p6645_p6 = scmp.lt.s32.totalorder %s6643_s9, %s6639_s13 }
 0x6eb   : > { %p6641_p9 = pnand %p6640_p11, %p10567_p2 }
 0x6ec   : > { %p6646_p8 = por %p6645_p6, %p6644_p4 }
 0x6ed   : > { %p6642_p1 = pneg %p6641_p9 }
 0x6ef   : > { %p6647_p5 = pnand %p6646_p8, %p6642_p1 }
 0x6f1   : > { %6650 = shalt.err (!%p6647_p5)
}
 0x6f2   : > { %s6703_s14 = smov 128   ;;  %s6704_s7 = smov 8  }
 0x6f3   : > { %6416 = dma.vmem_to_hbm [thread:$0]  (%p10567_p2), %s10022_s6, 4096, %s10018_s11, %s5371_s22, %s6703_s14, %s6703_s14, %s6704_s7  }
 0x6f4 PF: > { %s5399_s28 = sand.u32 1, %s6681_s18   ;;  %p10568_p7 = scmp.ne.s32.totalorder %s10276_s25, 0 }
 0x6f5   : > { %p10569_p12 = scmp.ge.s32.totalorder %s6693_s21, 2  ;;  %s5400_s17 = scalar_lea.sflag [#allocation5], %s5399_s28 }
 0x6f7   : > { %p6430_p13 = pnand %p10569_p12, %p10568_p7 }
 0x6f9   : > { %p6431_p0 = pneg %p6430_p13 }
 0x6fb   : > { %6676 = dma.done.wait (%p6431_p0), %s5400_s17, 4096  }
 0x6fc   : > { %6678 = vsyncadd (%p6431_p0), %s5400_s17, 4294963200  ;;  %p19_p10 = scmp.ge.s32.totalorder %s6813_s15, 4   ;;  %s10570_s18 = smov %s6685_s19 }
 0x6fd   : > { %s10571_s19 = smov %s6689_s20  ;;  %s10572_s20 = smov %s6829_s27 }
 0x6fe   : > { %s10573_s21 = smov %s6813_s15  ;;  %21 = sbr.rel (!%p19_p10) target bundleno = 6 (0x6), region = 101 }
 0x703   :  { %5405 = vsyncpa [#allocation4], 1 }
 0x704   :  { %5407 = vsyncpa [#allocation4 + $0x1], 1 }
 0x705   :  { %5408 = vsyncpa [#allocation7], 1 }
 0x706   :  { %5409 = vsyncpa [#allocation5], 1 }
 0x707   :  { %5411 = vsyncpa [#allocation5 + $0x1], 1 }

</bundles_post_ra>
